<compile_context>
chip_gen: v7x
topology: tpu7x:2x2x1
jax: 0.10.0
libtpu: 0.0.40
codegen_flags: <defaults>
</compile_context>

<pallas_src>
import functools

import jax
import jax.numpy as jnp
from jax.experimental import pallas as pl
from jax.experimental.pallas import tpu as pltpu


# ---------------------------------------------------------------------------
# Pallas kernels
# ---------------------------------------------------------------------------
def _conv_pool_relu_kernel(a_ref, w_ref, b_ref, o_ref, *, n_win, s_out):
    """relu(maxpool(relu(conv2d(x) + b))) for one batch element.

    a_ref : (K, n_win * s_out)  im2col patches; columns ordered
                                (pool_i, pool_j, h_out, w_out)  -> lane dense.
    w_ref : (Cout, K)           conv weights flattened in PyTorch order.
    b_ref : (Cout, 1)           bias (column vector, broadcast over lanes).
    o_ref : (Cout, s_out)       pooled output, columns ordered (h_out, w_out).
    """
    acc = jnp.dot(w_ref[...], a_ref[...], preferred_element_type=jnp.float32)
    acc = jnp.maximum(acc + b_ref[...], 0.0)          # conv + bias + ReLU
    # Max-pool == elementwise max over the n_win contiguous lane chunks.
    pooled = acc[:, 0:s_out]
    for k in range(1, n_win):
        pooled = jnp.maximum(pooled, acc[:, k * s_out:(k + 1) * s_out])
    o_ref[...] = pooled                               # post-pool ReLU: no-op


def _fc_chain_relu_kernel(a_ref, w5_ref, b5_ref, w6_ref, b6_ref,
                          w7_ref, b7_ref, o_ref):
    """relu(fc7(relu(fc6(relu(fc5(a)))))) -- all three FCs in one kernel."""
    h = jnp.dot(a_ref[...], w5_ref[...], preferred_element_type=jnp.float32)
    h = jnp.maximum(h + b5_ref[...], 0.0)
    h = jnp.dot(h, w6_ref[...], preferred_element_type=jnp.float32)
    h = jnp.maximum(h + b6_ref[...], 0.0)
    h = jnp.dot(h, w7_ref[...], preferred_element_type=jnp.float32)
    h = jnp.maximum(h + b7_ref[...], 0.0)
    o_ref[...] = h


# ---------------------------------------------------------------------------
# Wrappers
# ---------------------------------------------------------------------------
def conv_pool_relu(x, w_flat, b_col, *, kh, kw, pad, pool):
    """Fused relu(maxpool_pool(relu(conv2d(x, w) + b))), NCHW in / NCHW out.

    x      : (N, Cin, H, W)  float32
    w_flat : (Cout, Cin*kh*kw) float32   (PyTorch weight.reshape(Cout, -1))
    b_col  : (Cout, 1) float32
    """
    N, Cin, H, W = x.shape
    Cout, K = w_flat.shape
    if pad:
        x = jnp.pad(x, ((0, 0), (0, 0), (pad, pad), (pad, pad)))
    Hp, Wp = x.shape[2], x.shape[3]
    Ho, Wo = Hp - kh + 1, Wp - kw + 1
    Ho2, Wo2 = Ho // pool, Wo // pool
    s_out = Ho2 * Wo2
    n_win = pool * pool

    # im2col glue (plain JAX): rows ordered (ci, kh, kw) to match PyTorch's
    # weight flatten; columns ordered (pool_i, pool_j, h_out, w_out) so the
    # in-kernel max-pool reduces over contiguous lane chunks.
    cols = [x[:, :, di:di + Ho, dj:dj + Wo]
            for di in range(kh) for dj in range(kw)]
    patches = jnp.stack(cols, axis=2)                  # (N, Cin, kh*kw, Ho, Wo)
    patches = patches.reshape(N, K, Ho2, pool, Wo2, pool)
    a_t = patches.transpose(0, 1, 3, 5, 2, 4).reshape(N, K, n_win * s_out)

    kernel = functools.partial(_conv_pool_relu_kernel, n_win=n_win, s_out=s_out)
    out = pl.pallas_call(
        kernel,
        out_shape=jax.ShapeDtypeStruct((N, Cout, s_out), jnp.float32),
        grid=(N,),
        in_specs=[
            pl.BlockSpec((None, K, n_win * s_out), lambda n: (n, 0, 0)),
            pl.BlockSpec((Cout, K), lambda n: (0, 0)),
            pl.BlockSpec((Cout, 1), lambda n: (0, 0)),
        ],
        out_specs=pl.BlockSpec((None, Cout, s_out), lambda n: (n, 0, 0)),
        compiler_params=pltpu.CompilerParams(dimension_semantics=("parallel",)),
    )(a_t, w_flat, b_col)
    return out.reshape(N, Cout, Ho2, Wo2)


def fc_chain_relu(a, w5t, b5, w6t, b6, w7t, b7):
    """Single pallas_call computing relu(fc7(relu(fc6(relu(fc5(a))))))."""
    N, D0 = a.shape
    D1, D2, K = w5t.shape[1], w6t.shape[1], w7t.shape[1]
    return pl.pallas_call(
        _fc_chain_relu_kernel,
        out_shape=jax.ShapeDtypeStruct((N, K), jnp.float32),
        grid=(1,),
        in_specs=[
            pl.BlockSpec((N, D0), lambda i: (0, 0)),
            pl.BlockSpec((D0, D1), lambda i: (0, 0)),
            pl.BlockSpec((1, D1), lambda i: (0, 0)),
            pl.BlockSpec((D1, D2), lambda i: (0, 0)),
            pl.BlockSpec((1, D2), lambda i: (0, 0)),
            pl.BlockSpec((D2, K), lambda i: (0, 0)),
            pl.BlockSpec((1, K), lambda i: (0, 0)),
        ],
        out_specs=pl.BlockSpec((N, K), lambda i: (0, 0)),
        compiler_params=pltpu.CompilerParams(dimension_semantics=("arbitrary",)),
    )(a, w5t, b5, w6t, b6, w7t, b7)


# ---------------------------------------------------------------------------
# QModel forward (ReLU after every layer, matching the PyTorch reference)
# ---------------------------------------------------------------------------
def prepare_params(params):
    """One-time weight layout prep OUTSIDE the hot path (no per-call .T)."""
    return {
        "w1f": params["w1"].reshape(params["w1"].shape[0], -1),  # (6, 25)
        "b1c": params["b1"].reshape(-1, 1),
        "w3f": params["w3"].reshape(params["w3"].shape[0], -1),  # (16, 150)
        "b3c": params["b3"].reshape(-1, 1),
        "w5t": params["w5"].T, "b5r": params["b5"].reshape(1, -1),
        "w6t": params["w6"].T, "b6r": params["b6"].reshape(1, -1),
        "w7t": params["w7"].T, "b7r": params["b7"].reshape(1, -1),
    }


def qmodel_forward(x, prep):
    a = x.reshape(-1, 1, 80, 80)
    # conv1(1->6, k5, pad2) + ReLU, maxpool4 + ReLU   -> (N, 6, 20, 20)
    a = conv_pool_relu(a, prep["w1f"], prep["b1c"], kh=5, kw=5, pad=2, pool=4)
    # conv3(6->16, k5)      + ReLU, maxpool2 + ReLU   -> (N, 16, 8, 8)
    a = conv_pool_relu(a, prep["w3f"], prep["b3c"], kh=5, kw=5, pad=0, pool=2)
    a = a.reshape(a.shape[0], -1)          # Flatten (ReLU after it is a no-op)
    # fc5 -> ReLU -> fc6 -> ReLU -> fc7 -> ReLU, fused in one kernel
    return fc_chain_relu(a, prep["w5t"], prep["b5r"], prep["w6t"], prep["b6r"],
                         prep["w7t"], prep["b7r"])


# ---------------------------------------------------------------------------
# Plain-JAX reference (for correctness check only)
# ---------------------------------------------------------------------------
def _reference_forward(x, params):
    hi = jax.lax.Precision.HIGHEST
    a = x.reshape(-1, 1, 80, 80)

    def conv(a, w, b, pad):
        y = jax.lax.conv_general_dilated(
            a, w, window_strides=(1, 1), padding=[(pad, pad), (pad, pad)],
            dimension_numbers=("NCHW", "OIHW", "NCHW"), precision=hi)
        return jax.nn.relu(y + b.reshape(1, -1, 1, 1))

    def pool(a, p):
        y = jax.lax.reduce_window(a, -jnp.inf, jax.lax.max,
                                  (1, 1, p, p), (1, 1, p, p), "VALID")
        return jax.nn.relu(y)

    a = pool(conv(a, params["w1"], params["b1"], 2), 4)
    a = pool(conv(a, params["w3"], params["b3"], 0), 2)
    a = jax.nn.relu(a.reshape(a.shape[0], -1))
    a = jax.nn.relu(jnp.dot(a, params["w5"].T, precision=hi) + params["b5"])
    a = jax.nn.relu(jnp.dot(a, params["w6"].T, precision=hi) + params["b6"])
    a = jax.nn.relu(jnp.dot(a, params["w7"].T, precision=hi) + params["b7"])
    return a


def init_params(key, K):
    """Deterministic synthetic parameters with PyTorch-style uniform bounds."""
    ks = jax.random.split(key, 10)

    def u(k, shape, fan_in):
        bound = 1.0 / (fan_in ** 0.5)
        return jax.random.uniform(k, shape, jnp.float32, -bound, bound)

    return {
        "w1": u(ks[0], (6, 1, 5, 5), 25),    "b1": u(ks[1], (6,), 25),
        "w3": u(ks[2], (16, 6, 5, 5), 150),  "b3": u(ks[3], (16,), 150),
        "w5": u(ks[4], (256, 1024), 1024),   "b5": u(ks[5], (256,), 1024),
        "w6": u(ks[6], (84, 256), 256),      "b6": u(ks[7], (84,), 256),
        "w7": u(ks[8], (K, 84), 84),         "b7": u(ks[9], (K,), 84),
    }


if __name__ == "__main__":
    K = 4
    key = jax.random.PRNGKey(0)
    pkey, xkey = jax.random.split(key)
    params = init_params(pkey, K)
    # Forward reshapes input to (-1, 1, 80, 80); use batch=2.
    x = jax.random.normal(xkey, (2, 1, 80, 80), dtype=jnp.float32)

    prep = prepare_params(params)           # one-time weight layout prep
    fwd = jax.jit(qmodel_forward)

    out = jax.block_until_ready(fwd(x, prep))
    assert out.shape == (2, K), out.shape
    assert bool(jnp.all(out >= 0.0))        # final ReLU

    ref = jax.block_until_ready(_reference_forward(x, params))
    assert bool(jnp.allclose(out, ref, rtol=2e-2, atol=2e-2)), (
        float(jnp.max(jnp.abs(out - ref))))

    print("KERNEL_OK")
</pallas_src>

<mosaic_0001>
module attributes {stable_mosaic.version = 11 : i64} {
  func.func @_conv_pool_relu_kernel(%arg0: i32, %arg1: memref<1x25x6400xf32, #tpu.memory_space<vmem>>, %arg2: memref<6x25xf32, #tpu.memory_space<vmem>>, %arg3: memref<6x1xf32, #tpu.memory_space<vmem>>, %arg4: memref<1x6x400xf32, #tpu.memory_space<vmem>>) attributes {dimension_semantics = [#tpu.dimension_semantics<parallel>], iteration_bounds = array<i64: 2>, scalar_prefetch = 0 : i64, scratch_operands = 0 : i64, tpu.core_type = #tpu.core_type<tc>, window_params = [{transform_indices = @transform_0, window_bounds = array<i64: 1, 25, 6400>}, {pipeline_mode = #tpu.pipeline_mode<synchronous>, transform_indices = @transform_1, window_bounds = array<i64: 6, 25>}, {pipeline_mode = #tpu.pipeline_mode<synchronous>, transform_indices = @transform_2, window_bounds = array<i64: 6, 1>}, {transform_indices = @transform_3, window_bounds = array<i64: 1, 6, 400>}]} {
    %c0 = arith.constant 0 : index
    %c0_0 = arith.constant 0 : index
    %0 = vector.load %arg2[%c0, %c0_0] : memref<6x25xf32, #tpu.memory_space<vmem>>, vector<6x25xf32>
    %c0_1 = arith.constant 0 : index
    %c0_2 = arith.constant 0 : index
    %c0_3 = arith.constant 0 : index
    %1 = vector.load %arg1[%c0_1, %c0_2, %c0_3] : memref<1x25x6400xf32, #tpu.memory_space<vmem>>, vector<1x25x6400xf32>
    %2 = vector.shape_cast %1 : vector<1x25x6400xf32> to vector<25x6400xf32>
    %cst = arith.constant dense<0.000000e+00> : vector<6x6400xf32>
    %3 = tpu.matmul %0, %2, %cst {dimension_numbers = #tpu.dot_dimension_numbers<[1], [0], [0], [1], [0, 0, 1, 1], [], []>} : vector<6x25xf32>, vector<25x6400xf32>, vector<6x6400xf32> -> vector<6x6400xf32>
    %c0_4 = arith.constant 0 : index
    %c0_5 = arith.constant 0 : index
    %4 = vector.load %arg3[%c0_4, %c0_5] : memref<6x1xf32, #tpu.memory_space<vmem>>, vector<6x1xf32>
    %5 = vector.broadcast %4 : vector<6x1xf32> to vector<6x6400xf32>
    %6 = arith.addf %3, %5 : vector<6x6400xf32>
    %cst_6 = arith.constant 0.000000e+00 : f32
    %7 = vector.broadcast %cst_6 : f32 to vector<6x6400xf32>
    %8 = arith.maximumf %6, %7 : vector<6x6400xf32>
    %9 = vector.extract_strided_slice %8 {offsets = [0, 0], sizes = [6, 400], strides = [1, 1]} : vector<6x6400xf32> to vector<6x400xf32>
    %10 = vector.extract_strided_slice %8 {offsets = [0, 400], sizes = [6, 400], strides = [1, 1]} : vector<6x6400xf32> to vector<6x400xf32>
    %11 = arith.maximumf %9, %10 : vector<6x400xf32>
    %12 = vector.extract_strided_slice %8 {offsets = [0, 800], sizes = [6, 400], strides = [1, 1]} : vector<6x6400xf32> to vector<6x400xf32>
    %13 = arith.maximumf %11, %12 : vector<6x400xf32>
    %14 = vector.extract_strided_slice %8 {offsets = [0, 1200], sizes = [6, 400], strides = [1, 1]} : vector<6x6400xf32> to vector<6x400xf32>
    %15 = arith.maximumf %13, %14 : vector<6x400xf32>
    %16 = vector.extract_strided_slice %8 {offsets = [0, 1600], sizes = [6, 400], strides = [1, 1]} : vector<6x6400xf32> to vector<6x400xf32>
    %17 = arith.maximumf %15, %16 : vector<6x400xf32>
    %18 = vector.extract_strided_slice %8 {offsets = [0, 2000], sizes = [6, 400], strides = [1, 1]} : vector<6x6400xf32> to vector<6x400xf32>
    %19 = arith.maximumf %17, %18 : vector<6x400xf32>
    %20 = vector.extract_strided_slice %8 {offsets = [0, 2400], sizes = [6, 400], strides = [1, 1]} : vector<6x6400xf32> to vector<6x400xf32>
    %21 = arith.maximumf %19, %20 : vector<6x400xf32>
    %22 = vector.extract_strided_slice %8 {offsets = [0, 2800], sizes = [6, 400], strides = [1, 1]} : vector<6x6400xf32> to vector<6x400xf32>
    %23 = arith.maximumf %21, %22 : vector<6x400xf32>
    %24 = vector.extract_strided_slice %8 {offsets = [0, 3200], sizes = [6, 400], strides = [1, 1]} : vector<6x6400xf32> to vector<6x400xf32>
    %25 = arith.maximumf %23, %24 : vector<6x400xf32>
    %26 = vector.extract_strided_slice %8 {offsets = [0, 3600], sizes = [6, 400], strides = [1, 1]} : vector<6x6400xf32> to vector<6x400xf32>
    %27 = arith.maximumf %25, %26 : vector<6x400xf32>
    %28 = vector.extract_strided_slice %8 {offsets = [0, 4000], sizes = [6, 400], strides = [1, 1]} : vector<6x6400xf32> to vector<6x400xf32>
    %29 = arith.maximumf %27, %28 : vector<6x400xf32>
    %30 = vector.extract_strided_slice %8 {offsets = [0, 4400], sizes = [6, 400], strides = [1, 1]} : vector<6x6400xf32> to vector<6x400xf32>
    %31 = arith.maximumf %29, %30 : vector<6x400xf32>
    %32 = vector.extract_strided_slice %8 {offsets = [0, 4800], sizes = [6, 400], strides = [1, 1]} : vector<6x6400xf32> to vector<6x400xf32>
    %33 = arith.maximumf %31, %32 : vector<6x400xf32>
    %34 = vector.extract_strided_slice %8 {offsets = [0, 5200], sizes = [6, 400], strides = [1, 1]} : vector<6x6400xf32> to vector<6x400xf32>
    %35 = arith.maximumf %33, %34 : vector<6x400xf32>
    %36 = vector.extract_strided_slice %8 {offsets = [0, 5600], sizes = [6, 400], strides = [1, 1]} : vector<6x6400xf32> to vector<6x400xf32>
    %37 = arith.maximumf %35, %36 : vector<6x400xf32>
    %38 = vector.extract_strided_slice %8 {offsets = [0, 6000], sizes = [6, 400], strides = [1, 1]} : vector<6x6400xf32> to vector<6x400xf32>
    %39 = arith.maximumf %37, %38 : vector<6x400xf32>
    %c0_7 = arith.constant 0 : index
    %c0_8 = arith.constant 0 : index
    %c0_9 = arith.constant 0 : index
    %40 = vector.load %arg4[%c0_7, %c0_8, %c0_9] : memref<1x6x400xf32, #tpu.memory_space<vmem>>, vector<1x6x400xf32>
    %41 = vector.shape_cast %40 : vector<1x6x400xf32> to vector<6x400xf32>
    %42 = vector.shape_cast %39 : vector<6x400xf32> to vector<1x6x400xf32>
    tpu.vector_store %arg4[%c0_7, %c0_8, %c0_9], %42 {strides = array<i32>} : memref<1x6x400xf32, #tpu.memory_space<vmem>>, vector<1x6x400xf32>,
    return
  }
  func.func @transform_0(%arg0: i32) -> (i32, i32, i32) {
    %c0_i32 = arith.constant 0 : i32
    %c0_i32_0 = arith.constant 0 : i32
    %c0_i32_1 = arith.constant 0 : i32
    return %arg0, %c0_i32, %c0_i32_0 : i32, i32, i32
  }
  func.func @transform_1(%arg0: i32) -> (i32, i32) {
    %c0_i32 = arith.constant 0 : i32
    %c0_i32_0 = arith.constant 0 : i32
    %c0_i32_1 = arith.constant 0 : i32
    return %c0_i32, %c0_i32_0 : i32, i32
  }
  func.func @transform_2(%arg0: i32) -> (i32, i32) {
    %c0_i32 = arith.constant 0 : i32
    %c0_i32_0 = arith.constant 0 : i32
    %c0_i32_1 = arith.constant 0 : i32
    return %c0_i32, %c0_i32_0 : i32, i32
  }
  func.func @transform_3(%arg0: i32) -> (i32, i32, i32) {
    %c0_i32 = arith.constant 0 : i32
    %c0_i32_0 = arith.constant 0 : i32
    %c0_i32_1 = arith.constant 0 : i32
    return %arg0, %c0_i32, %c0_i32_0 : i32, i32, i32
  }
}

module attributes {stable_mosaic.version = 11 : i64} {
  func.func @_conv_pool_relu_kernel(%arg0: i32, %arg1: memref<1x150x256xf32, #tpu.memory_space<vmem>>, %arg2: memref<16x150xf32, #tpu.memory_space<vmem>>, %arg3: memref<16x1xf32, #tpu.memory_space<vmem>>, %arg4: memref<1x16x64xf32, #tpu.memory_space<vmem>>) attributes {dimension_semantics = [#tpu.dimension_semantics<parallel>], iteration_bounds = array<i64: 2>, scalar_prefetch = 0 : i64, scratch_operands = 0 : i64, tpu.core_type = #tpu.core_type<tc>, window_params = [{transform_indices = @transform_0, window_bounds = array<i64: 1, 150, 256>}, {pipeline_mode = #tpu.pipeline_mode<synchronous>, transform_indices = @transform_1, window_bounds = array<i64: 16, 150>}, {pipeline_mode = #tpu.pipeline_mode<synchronous>, transform_indices = @transform_2, window_bounds = array<i64: 16, 1>}, {transform_indices = @transform_3, window_bounds = array<i64: 1, 16, 64>}]} {
    %c0 = arith.constant 0 : index
    %c0_0 = arith.constant 0 : index
    %0 = vector.load %arg2[%c0, %c0_0] : memref<16x150xf32, #tpu.memory_space<vmem>>, vector<16x150xf32>
    %c0_1 = arith.constant 0 : index
    %c0_2 = arith.constant 0 : index
    %c0_3 = arith.constant 0 : index
    %1 = vector.load %arg1[%c0_1, %c0_2, %c0_3] : memref<1x150x256xf32, #tpu.memory_space<vmem>>, vector<1x150x256xf32>
    %2 = vector.shape_cast %1 : vector<1x150x256xf32> to vector<150x256xf32>
    %cst = arith.constant dense<0.000000e+00> : vector<16x256xf32>
    %3 = tpu.matmul %0, %2, %cst {dimension_numbers = #tpu.dot_dimension_numbers<[1], [0], [0], [1], [0, 0, 1, 1], [], []>} : vector<16x150xf32>, vector<150x256xf32>, vector<16x256xf32> -> vector<16x256xf32>
    %c0_4 = arith.constant 0 : index
    %c0_5 = arith.constant 0 : index
    %4 = vector.load %arg3[%c0_4, %c0_5] : memref<16x1xf32, #tpu.memory_space<vmem>>, vector<16x1xf32>
    %5 = vector.broadcast %4 : vector<16x1xf32> to vector<16x256xf32>
    %6 = arith.addf %3, %5 : vector<16x256xf32>
    %cst_6 = arith.constant 0.000000e+00 : f32
    %7 = vector.broadcast %cst_6 : f32 to vector<16x256xf32>
    %8 = arith.maximumf %6, %7 : vector<16x256xf32>
    %9 = vector.extract_strided_slice %8 {offsets = [0, 0], sizes = [16, 64], strides = [1, 1]} : vector<16x256xf32> to vector<16x64xf32>
    %10 = vector.extract_strided_slice %8 {offsets = [0, 64], sizes = [16, 64], strides = [1, 1]} : vector<16x256xf32> to vector<16x64xf32>
    %11 = arith.maximumf %9, %10 : vector<16x64xf32>
    %12 = vector.extract_strided_slice %8 {offsets = [0, 128], sizes = [16, 64], strides = [1, 1]} : vector<16x256xf32> to vector<16x64xf32>
    %13 = arith.maximumf %11, %12 : vector<16x64xf32>
    %14 = vector.extract_strided_slice %8 {offsets = [0, 192], sizes = [16, 64], strides = [1, 1]} : vector<16x256xf32> to vector<16x64xf32>
    %15 = arith.maximumf %13, %14 : vector<16x64xf32>
    %c0_7 = arith.constant 0 : index
    %c0_8 = arith.constant 0 : index
    %c0_9 = arith.constant 0 : index
    %16 = vector.load %arg4[%c0_7, %c0_8, %c0_9] : memref<1x16x64xf32, #tpu.memory_space<vmem>>, vector<1x16x64xf32>
    %17 = vector.shape_cast %16 : vector<1x16x64xf32> to vector<16x64xf32>
    %18 = vector.shape_cast %15 : vector<16x64xf32> to vector<1x16x64xf32>
    tpu.vector_store %arg4[%c0_7, %c0_8, %c0_9], %18 {strides = array<i32>} : memref<1x16x64xf32, #tpu.memory_space<vmem>>, vector<1x16x64xf32>,
    return
  }
  func.func @transform_0(%arg0: i32) -> (i32, i32, i32) {
    %c0_i32 = arith.constant 0 : i32
    %c0_i32_0 = arith.constant 0 : i32
    %c0_i32_1 = arith.constant 0 : i32
    return %arg0, %c0_i32, %c0_i32_0 : i32, i32, i32
  }
  func.func @transform_1(%arg0: i32) -> (i32, i32) {
    %c0_i32 = arith.constant 0 : i32
    %c0_i32_0 = arith.constant 0 : i32
    %c0_i32_1 = arith.constant 0 : i32
    return %c0_i32, %c0_i32_0 : i32, i32
  }
  func.func @transform_2(%arg0: i32) -> (i32, i32) {
    %c0_i32 = arith.constant 0 : i32
    %c0_i32_0 = arith.constant 0 : i32
    %c0_i32_1 = arith.constant 0 : i32
    return %c0_i32, %c0_i32_0 : i32, i32
  }
  func.func @transform_3(%arg0: i32) -> (i32, i32, i32) {
    %c0_i32 = arith.constant 0 : i32
    %c0_i32_0 = arith.constant 0 : i32
    %c0_i32_1 = arith.constant 0 : i32
    return %arg0, %c0_i32, %c0_i32_0 : i32, i32, i32
  }
}

module attributes {stable_mosaic.version = 11 : i64} {
  func.func @_fc_chain_relu_kernel(%arg0: i32, %arg1: memref<2x1024xf32, #tpu.memory_space<vmem>>, %arg2: memref<1024x256xf32, #tpu.memory_space<vmem>>, %arg3: memref<1x256xf32, #tpu.memory_space<vmem>>, %arg4: memref<256x84xf32, #tpu.memory_space<vmem>>, %arg5: memref<1x84xf32, #tpu.memory_space<vmem>>, %arg6: memref<84x4xf32, #tpu.memory_space<vmem>>, %arg7: memref<1x4xf32, #tpu.memory_space<vmem>>, %arg8: memref<2x4xf32, #tpu.memory_space<vmem>>) attributes {dimension_semantics = [#tpu.dimension_semantics<arbitrary>], iteration_bounds = array<i64: 1>, scalar_prefetch = 0 : i64, scratch_operands = 0 : i64, tpu.core_type = #tpu.core_type<tc>, window_params = [{pipeline_mode = #tpu.pipeline_mode<synchronous>, transform_indices = @transform_0, window_bounds = array<i64: 2, 1024>}, {pipeline_mode = #tpu.pipeline_mode<synchronous>, transform_indices = @transform_1, window_bounds = array<i64: 1024, 256>}, {pipeline_mode = #tpu.pipeline_mode<synchronous>, transform_indices = @transform_2, window_bounds = array<i64: 1, 256>}, {pipeline_mode = #tpu.pipeline_mode<synchronous>, transform_indices = @transform_3, window_bounds = array<i64: 256, 84>}, {pipeline_mode = #tpu.pipeline_mode<synchronous>, transform_indices = @transform_4, window_bounds = array<i64: 1, 84>}, {pipeline_mode = #tpu.pipeline_mode<synchronous>, transform_indices = @transform_5, window_bounds = array<i64: 84, 4>}, {pipeline_mode = #tpu.pipeline_mode<synchronous>, transform_indices = @transform_6, window_bounds = array<i64: 1, 4>}, {pipeline_mode = #tpu.pipeline_mode<synchronous>, transform_indices = @transform_7, window_bounds = array<i64: 2, 4>}]} {
    %c0 = arith.constant 0 : index
    %c0_0 = arith.constant 0 : index
    %0 = vector.load %arg1[%c0, %c0_0] : memref<2x1024xf32, #tpu.memory_space<vmem>>, vector<2x1024xf32>
    %c0_1 = arith.constant 0 : index
    %c0_2 = arith.constant 0 : index
    %1 = vector.load %arg2[%c0_1, %c0_2] : memref<1024x256xf32, #tpu.memory_space<vmem>>, vector<1024x256xf32>
    %cst = arith.constant dense<0.000000e+00> : vector<2x256xf32>
    %2 = tpu.matmul %0, %1, %cst {dimension_numbers = #tpu.dot_dimension_numbers<[1], [0], [0], [1], [0, 0, 1, 1], [], []>} : vector<2x1024xf32>, vector<1024x256xf32>, vector<2x256xf32> -> vector<2x256xf32>
    %c0_3 = arith.constant 0 : index
    %c0_4 = arith.constant 0 : index
    %3 = vector.load %arg3[%c0_3, %c0_4] : memref<1x256xf32, #tpu.memory_space<vmem>>, vector<1x256xf32>
    %4 = vector.broadcast %3 : vector<1x256xf32> to vector<2x256xf32>
    %5 = arith.addf %2, %4 : vector<2x256xf32>
    %cst_5 = arith.constant 0.000000e+00 : f32
    %6 = vector.broadcast %cst_5 : f32 to vector<2x256xf32>
    %7 = arith.maximumf %5, %6 : vector<2x256xf32>
    %c0_6 = arith.constant 0 : index
    %c0_7 = arith.constant 0 : index
    %8 = vector.load %arg4[%c0_6, %c0_7] : memref<256x84xf32, #tpu.memory_space<vmem>>, vector<256x84xf32>
    %cst_8 = arith.constant dense<0.000000e+00> : vector<2x84xf32>
    %9 = tpu.matmul %7, %8, %cst_8 {dimension_numbers = #tpu.dot_dimension_numbers<[1], [0], [0], [1], [0, 0, 1, 1], [], []>} : vector<2x256xf32>, vector<256x84xf32>, vector<2x84xf32> -> vector<2x84xf32>
    %c0_9 = arith.constant 0 : index
    %c0_10 = arith.constant 0 : index
    %10 = vector.load %arg5[%c0_9, %c0_10] : memref<1x84xf32, #tpu.memory_space<vmem>>, vector<1x84xf32>
    %11 = vector.broadcast %10 : vector<1x84xf32> to vector<2x84xf32>
    %12 = arith.addf %9, %11 : vector<2x84xf32>
    %cst_11 = arith.constant 0.000000e+00 : f32
    %13 = vector.broadcast %cst_11 : f32 to vector<2x84xf32>
    %14 = arith.maximumf %12, %13 : vector<2x84xf32>
    %c0_12 = arith.constant 0 : index
    %c0_13 = arith.constant 0 : index
    %15 = vector.load %arg6[%c0_12, %c0_13] : memref<84x4xf32, #tpu.memory_space<vmem>>, vector<84x4xf32>
    %cst_14 = arith.constant dense<0.000000e+00> : vector<2x4xf32>
    %16 = tpu.matmul %14, %15, %cst_14 {dimension_numbers = #tpu.dot_dimension_numbers<[1], [0], [0], [1], [0, 0, 1, 1], [], []>} : vector<2x84xf32>, vector<84x4xf32>, vector<2x4xf32> -> vector<2x4xf32>
    %c0_15 = arith.constant 0 : index
    %c0_16 = arith.constant 0 : index
    %17 = vector.load %arg7[%c0_15, %c0_16] : memref<1x4xf32, #tpu.memory_space<vmem>>, vector<1x4xf32>
    %18 = vector.broadcast %17 : vector<1x4xf32> to vector<2x4xf32>
    %19 = arith.addf %16, %18 : vector<2x4xf32>
    %cst_17 = arith.constant 0.000000e+00 : f32
    %20 = vector.broadcast %cst_17 : f32 to vector<2x4xf32>
    %21 = arith.maximumf %19, %20 : vector<2x4xf32>
    %c0_18 = arith.constant 0 : index
    %c0_19 = arith.constant 0 : index
    %22 = vector.load %arg8[%c0_18, %c0_19] : memref<2x4xf32, #tpu.memory_space<vmem>>, vector<2x4xf32>
    tpu.vector_store %arg8[%c0_18, %c0_19], %21 {strides = array<i32>} : memref<2x4xf32, #tpu.memory_space<vmem>>, vector<2x4xf32>,
    return
  }
  func.func @transform_0(%arg0: i32) -> (i32, i32) {
    %c0_i32 = arith.constant 0 : i32
    %c0_i32_0 = arith.constant 0 : i32
    %c0_i32_1 = arith.constant 0 : i32
    return %c0_i32, %c0_i32_0 : i32, i32
  }
  func.func @transform_1(%arg0: i32) -> (i32, i32) {
    %c0_i32 = arith.constant 0 : i32
    %c0_i32_0 = arith.constant 0 : i32
    %c0_i32_1 = arith.constant 0 : i32
    return %c0_i32, %c0_i32_0 : i32, i32
  }
  func.func @transform_2(%arg0: i32) -> (i32, i32) {
    %c0_i32 = arith.constant 0 : i32
    %c0_i32_0 = arith.constant 0 : i32
    %c0_i32_1 = arith.constant 0 : i32
    return %c0_i32, %c0_i32_0 : i32, i32
  }
  func.func @transform_3(%arg0: i32) -> (i32, i32) {
    %c0_i32 = arith.constant 0 : i32
    %c0_i32_0 = arith.constant 0 : i32
    %c0_i32_1 = arith.constant 0 : i32
    return %c0_i32, %c0_i32_0 : i32, i32
  }
  func.func @transform_4(%arg0: i32) -> (i32, i32) {
    %c0_i32 = arith.constant 0 : i32
    %c0_i32_0 = arith.constant 0 : i32
    %c0_i32_1 = arith.constant 0 : i32
    return %c0_i32, %c0_i32_0 : i32, i32
  }
  func.func @transform_5(%arg0: i32) -> (i32, i32) {
    %c0_i32 = arith.constant 0 : i32
    %c0_i32_0 = arith.constant 0 : i32
    %c0_i32_1 = arith.constant 0 : i32
    return %c0_i32, %c0_i32_0 : i32, i32
  }
  func.func @transform_6(%arg0: i32) -> (i32, i32) {
    %c0_i32 = arith.constant 0 : i32
    %c0_i32_0 = arith.constant 0 : i32
    %c0_i32_1 = arith.constant 0 : i32
    return %c0_i32, %c0_i32_0 : i32, i32
  }
  func.func @transform_7(%arg0: i32) -> (i32, i32) {
    %c0_i32 = arith.constant 0 : i32
    %c0_i32_0 = arith.constant 0 : i32
    %c0_i32_1 = arith.constant 0 : i32
    return %c0_i32, %c0_i32_0 : i32, i32
  }
}

</mosaic_0001>

<bundles_post_ra>
// kernel: qmodel_forward.3
= control target key start
LH: loop header
LB: loop body
LE: loop exit
PB: predicated region body
PF: predicated region fallthrough
CT: control target
= control target key end

     0   :  { %s3133_s12 = smov 0   ;;  %s3732_s0 = inlined_call_operand.vmem [shape: f32[2,25,6400], index: 0, kind: input, shape index: {}]   ;;  %s3733_s1 = inlined_call_operand.vmem [shape: f32[6,25], index: 1, kind: input, shape index: {}]   ;;  %s3734_s2 = inlined_call_operand.vmem [shape: f32[6,1], index: 2, kind: input, shape index: {}]   ;;  %s3735_s3 = inlined_call_operand.vmem [shape: f32[2,6,400], index: 3, kind: output, shape index: {}]  }
   0x1 LB: > { %s2739_s13 = sadd.s32 4294967295, %s3101_s12   ;;  %p2743_p0 = scmp.ge.s32.totalorder %s3101_s12, 1  ;;  %s3101_s12 = sphi %s3133_s12, %s13_s12  }
   0x2   : > { %p137_p1 = scmp.lt.s32.totalorder %s3101_s12, 3 }
   0x4   : > { %p138_p2 = pnand %p2743_p0, %p137_p1 }
   0x5   : > { %p161_p3 = scmp.lt.s32.totalorder (!%p138_p2), %s2739_s13, 1  ;;  %v3103_v0 = vmov (!%p138_p2), 0.0   ;;  %v372_v1 = vld [vmem:[%s3734_s2] sm:$0x3f] (!%p138_p2)  ;;  %v3104_v2 = vmov (!%p138_p2), 0   ;;  %vm382_vm0 = vcmask (!%p138_p2), 1040384  }
   0x6   : > { %141 = sbr.rel (%p138_p2) target bundleno = 479 (0x1df), region = 32  ;;  %597 = vmatprep.mubr.f32.mxu0 (!%p138_p2), %v3103_v0  ;;  %668 = vmatprep.mubr.f32.mxu1 (!%p138_p2), %v3103_v0  ;;  %vm3105_vm1 = vmmov (!%p138_p2), 1   ;;  %v3183_v30 = vld [vmem:[%s3733_s1] sm:$0x3f] (!%p138_p2)  ;;  %vm378_vm3 = vcmask (!%p138_p2), 203776   ;;  %s3106_s22 = smov (!%p138_p2), 112  }
   0x7   : > { %3094 = vset.pattern.permute.xlu0 (!%p138_p2), %v3104_v2  ;;  %vm3154_vm2 = vmpackc.low (!%p138_p2), %vm382_vm0, %vm3105_vm1  ;;  %s3107_s23 = smov (!%p138_p2), 96   ;;  %s3108_s24 = smov (!%p138_p2), 80   ;;  %vm2370_vm4 = vcmask (!%p138_p2), 916480   ;;  %vm2393_vm5 = vcmask (!%p138_p2), 785408   ;;  %vm2416_vm6 = vcmask (!%p138_p2), 654336   ;;  %vm2439_vm7 = vcmask (!%p138_p2), 523264  }
   0x8   : > { %375 = vperm.xlu0 (!%p138_p2), %3094, %v372_v1   ;;  %s3109_s25 = smov (!%p138_p2), 64   ;;  %s3110_s26 = smov (!%p138_p2), 48   ;;  %vm2462_vm8 = vcmask (!%p138_p2), 392192   ;;  %vm2485_vm9 = vcmask (!%p138_p2), 261120   ;;  %vm2508_vm10 = vcmask (!%p138_p2), 130048   ;;  %vm2682_vm11 = vcmask (!%p138_p2), 128000  }
   0x9   : > { %s3111_s27 = smov (!%p138_p2), 32   ;;  %s3112_s28 = smov (!%p138_p2), 16  }
   0xd   : > { %s3739_s13 = smov (!%p161_p3, %s2739_s13), 1 }
   0xe   : > { %s3075_s16 = smul.u32 1600, %s3739_s13  ;;  %s2824_s29 = sshll.u32 %s3739_s13, 5 }
   0xf   : > { %s170_s5 = scalar_lea.vmem %s3735_s3, %s2824_s29 }
  0x10   : > { %s3152_s19 = scalar_lea.vmem %s3732_s0, %s3075_s16 }
  0x11   : > { %v173_v4 = vld [vmem:[%s3152_s19 + $0x8] sm:$0xff]  ;;  %v223_v5 = vld [vmem:[%s3152_s19 + $0x198] sm:$0xff]  ;;  %v172_v9 = vld [vmem:[%s3152_s19] sm:$0xff] }
  0x12   : > { %v175_v6 = vld [vmem:[%s3152_s19 + $0x18] sm:$0xff]  ;;  %v2825_v7 = vpack.c.bf16 %v223_v5, %v173_v4  ;;  %v225_v8 = vld [vmem:[%s3152_s19 + $0x1a8] sm:$0xff]  ;;  %v222_v10 = vld [vmem:[%s3152_s19 + $0x190] sm:$0xff] }
  0x13   : > { %v2835_v11 = vpack.c.bf16 %v225_v8, %v175_v6  ;;  %v2827_v12 = vpack.c.bf16 %v222_v10, %v172_v9  ;;  %v174_v13 = vld [vmem:[%s3152_s19 + $0x10] sm:$0xff]  ;;  %v224_v14 = vld [vmem:[%s3152_s19 + $0x1a0] sm:$0xff]  ;;  %v273_v15 = vld [vmem:[%s3152_s19 + $0x328] sm:$0xff] }
  0x14   : > { %2826 = vmatprep.subr.bf16.mxu0 %v2825_v7  ;;  %v2837_v16 = vpack.c.bf16 %v224_v14, %v174_v13  ;;  %v323_v17 = vld [vmem:[%s3152_s19 + $0x4b8] sm:$0x1]  ;;  %v325_v19 = vld [vmem:[%s3152_s19 + $0x4c8] sm:$0x1]  ;;  %v272_v22 = vld [vmem:[%s3152_s19 + $0x320] sm:$0xff] }
  0x15   : > { %v275_v18 = vld [vmem:[%s3152_s19 + $0x338] sm:$0xff]  ;;  %2836 = vmatprep.subr.bf16.mxu1 %v2835_v11  ;;  %2828 = vmatpush1.bf16.msra.mxu0 %v2827_v12  ;;  %v2829_v20 = vpack.c.bf16 %v323_v17, %v273_v15  ;;  %v322_v23 = vld [vmem:[%s3152_s19 + $0x4b0] sm:$0x1]  ;;  %v324_v26 = vld [vmem:[%s3152_s19 + $0x4c0] sm:$0x1] }
  0x16   : > { %v2839_v21 = vpack.c.bf16 %v325_v19, %v275_v18  ;;  %v274_v24 = vld [vmem:[%s3152_s19 + $0x330] sm:$0xff]  ;;  %2838 = vmatpush1.bf16.msra.mxu1 %v2837_v16  ;;  %v2832_v25 = vpack.c.bf16 %v322_v23, %v272_v22  ;;  %v177_v27 = vld [vmem:[%s3152_s19 + $0x28] sm:$0xff]  ;;  %v227_v28 = vld [vmem:[%s3152_s19 + $0x1b8] sm:$0xff] }
  0x17   : > { %2831 = vmatprep.subr.msk.bf16.mxu0 %vm3154_vm2, %v2829_v20  ;;  %v2842_v29 = vpack.c.bf16 %v324_v26, %v274_v24  ;;  %v2845_v31 = vpack.c.bf16 %v227_v28, %v177_v27  ;;  %v179_v32 = vld [vmem:[%s3152_s19 + $0x38] sm:$0xff]  ;;  %v229_v33 = vld [vmem:[%s3152_s19 + $0x1c8] sm:$0xff]  ;;  %v176_v34 = vld [vmem:[%s3152_s19 + $0x20] sm:$0xff] }
  0x18   : > { %2841 = vmatprep.subr.msk.bf16.mxu1 %vm3154_vm2, %v2839_v21  ;;  %v2855_v35 = vpack.c.bf16 %v229_v33, %v179_v32  ;;  %v226_v36 = vld [vmem:[%s3152_s19 + $0x1b0] sm:$0xff]  ;;  %v228_v38 = vld [vmem:[%s3152_s19 + $0x1c0] sm:$0xff]  ;;  %v277_v40 = vld [vmem:[%s3152_s19 + $0x348] sm:$0xff] }
  0x19   : > { %v178_v37 = vld [vmem:[%s3152_s19 + $0x30] sm:$0xff]  ;;  %2834 = vmatpush1.bf16.msk.msra.mxu0 %vm3154_vm2, %v2832_v25  ;;  %v2847_v39 = vpack.c.bf16 %v226_v36, %v176_v34  ;;  %v327_v41 = vld [vmem:[%s3152_s19 + $0x4d8] sm:$0x1]  ;;  %v329_v45 = vld [vmem:[%s3152_s19 + $0x4e8] sm:$0x1] }
  0x1a   : > { %v279_v42 = vld [vmem:[%s3152_s19 + $0x358] sm:$0xff]  ;;  %2844 = vmatpush1.bf16.msk.msra.mxu1 %vm3154_vm2, %v2842_v29  ;;  %2846 = vmatprep.subr.bf16.mxu0 %v2845_v31  ;;  %v2857_v43 = vpack.c.bf16 %v228_v38, %v178_v37  ;;  %v2849_v44 = vpack.c.bf16 %v327_v41, %v277_v40  ;;  %v276_v46 = vld [vmem:[%s3152_s19 + $0x340] sm:$0xff]  ;;  %v326_v47 = vld [vmem:[%s3152_s19 + $0x4d0] sm:$0x1] }
  0x1b   : > { %2856 = vmatprep.subr.bf16.mxu1 %v2855_v35  ;;  %v2859_v48 = vpack.c.bf16 %v329_v45, %v279_v42  ;;  %v278_v49 = vld [vmem:[%s3152_s19 + $0x350] sm:$0xff]  ;;  %v328_v50 = vld [vmem:[%s3152_s19 + $0x4e0] sm:$0x1]  ;;  %v181_v51 = vld [vmem:[%s3152_s19 + $0x48] sm:$0xff]  ;;  %v2852_v55 = vpack.c.bf16 %v326_v47, %v276_v46 }
  0x1c   : > { %2749 = vmatmul.mubr.msk.f32.vlgmr.msra.gmra.mrb[0].mxu0 %vm378_vm3, %v3183_v30  ;;  %v231_v52 = vld [vmem:[%s3152_s19 + $0x1d8] sm:$0xff]  ;;  %v233_v54 = vld [vmem:[%s3152_s19 + $0x1e8] sm:$0xff]  ;;  %v2862_v56 = vpack.c.bf16 %v328_v50, %v278_v49  ;;  %v180_v58 = vld [vmem:[%s3152_s19 + $0x40] sm:$0xff] }
  0x1d   : > { %v183_v53 = vld [vmem:[%s3152_s19 + $0x58] sm:$0xff]  ;;  %2752 = vmatmul.mubr.msk.f32.vlgmr.msra.gmra.mrb[0].mxu1 %vm378_vm3, %v3183_v30  ;;  %2848 = vmatpush1.bf16.msra.mxu0 %v2847_v39  ;;  %v2865_v57 = vpack.c.bf16 %v231_v52, %v181_v51  ;;  %v230_v59 = vld [vmem:[%s3152_s19 + $0x1d0] sm:$0xff]  ;;  %v232_v62 = vld [vmem:[%s3152_s19 + $0x1e0] sm:$0xff] }
  0x1e   : > { %2858 = vmatpush1.bf16.msra.mxu1 %v2857_v43  ;;  %2851 = vmatprep.subr.msk.bf16.mxu0 %vm3154_vm2, %v2849_v44  ;;  %v182_v60 = vld [vmem:[%s3152_s19 + $0x50] sm:$0xff]  ;;  %v2875_v61 = vpack.c.bf16 %v233_v54, %v183_v53  ;;  %v281_v63 = vld [vmem:[%s3152_s19 + $0x368] sm:$0xff]  ;;  %v331_v1 = vld [vmem:[%s3152_s19 + $0x4f8] sm:$0x1]  ;;  %v2867_v5 = vpack.c.bf16 %v230_v59, %v180_v58 }
  0x1f   : > { %2861 = vmatprep.subr.msk.bf16.mxu1 %vm3154_vm2, %v2859_v48  ;;  %739 = vmatprep.mubr.f32.mxu0 %v3103_v0  ;;  %v283_v2 = vld [vmem:[%s3152_s19 + $0x378] sm:$0xff]  ;;  %v333_v4 = vld [vmem:[%s3152_s19 + $0x508] sm:$0x1]  ;;  %v2877_v6 = vpack.c.bf16 %v232_v62, %v182_v60  ;;  %v2869_v7 = vpack.c.bf16 %v331_v1, %v281_v63  ;;  %v280_v8 = vld [vmem:[%s3152_s19 + $0x360] sm:$0xff] }
  0x20   : > { %810 = vmatprep.mubr.f32.mxu1 %v3103_v0  ;;  %v330_v9 = vld [vmem:[%s3152_s19 + $0x4f0] sm:$0x1]  ;;  %v2879_v11 = vpack.c.bf16 %v333_v4, %v283_v2  ;;  %v332_v12 = vld [vmem:[%s3152_s19 + $0x500] sm:$0x1]  ;;  %v185_v13 = vld [vmem:[%s3152_s19 + $0x68] sm:$0xff] }
  0x21   : > { %2854 = vmatpush1.bf16.msk.msra.mxu0 %vm3154_vm2, %v2852_v55  ;;  %v282_v10 = vld [vmem:[%s3152_s19 + $0x370] sm:$0xff]  ;;  %v235_v14 = vld [vmem:[%s3152_s19 + $0x1f8] sm:$0xff]  ;;  %v237_v16 = vld [vmem:[%s3152_s19 + $0x208] sm:$0xff]  ;;  %v2872_v17 = vpack.c.bf16 %v330_v9, %v280_v8 }
  0x22   : > { %2864 = vmatpush1.bf16.msk.msra.mxu1 %vm3154_vm2, %v2862_v56  ;;  %2866 = vmatprep.subr.bf16.mxu0 %v2865_v57  ;;  %v187_v15 = vld [vmem:[%s3152_s19 + $0x78] sm:$0xff]  ;;  %v2882_v18 = vpack.c.bf16 %v332_v12, %v282_v10  ;;  %v2885_v19 = vpack.c.bf16 %v235_v14, %v185_v13  ;;  %v184_v20 = vld [vmem:[%s3152_s19 + $0x60] sm:$0xff]  ;;  %v234_v21 = vld [vmem:[%s3152_s19 + $0x1f0] sm:$0xff] }
  0x23   : > { %2876 = vmatprep.subr.bf16.mxu1 %v2875_v61  ;;  %v186_v22 = vld [vmem:[%s3152_s19 + $0x70] sm:$0xff]  ;;  %v2895_v23 = vpack.c.bf16 %v237_v16, %v187_v15  ;;  %v236_v24 = vld [vmem:[%s3152_s19 + $0x200] sm:$0xff]  ;;  %v285_v25 = vld [vmem:[%s3152_s19 + $0x388] sm:$0xff]  ;;  %v2887_v29 = vpack.c.bf16 %v234_v21, %v184_v20 }
  0x24   : > { %2755 = vmatmul.mubr.msk.f32.vlgmr.msra.gmra.mrb[2].mxu0 %vm378_vm3, %v3183_v30  ;;  %v335_v26 = vld [vmem:[%s3152_s19 + $0x518] sm:$0x1]  ;;  %v337_v28 = vld [vmem:[%s3152_s19 + $0x528] sm:$0x1]  ;;  %v2897_v31 = vpack.c.bf16 %v236_v24, %v186_v22  ;;  %v284_v33 = vld [vmem:[%s3152_s19 + $0x380] sm:$0xff] }
  0x25   : > { %2758 = vmatmul.mubr.msk.f32.vlgmr.msra.gmra.mrb[2].mxu1 %vm378_vm3, %v3183_v30  ;;  %2868 = vmatpush1.bf16.msra.mxu0 %v2867_v5  ;;  %v287_v27 = vld [vmem:[%s3152_s19 + $0x398] sm:$0xff]  ;;  %v2889_v32 = vpack.c.bf16 %v335_v26, %v285_v25  ;;  %v334_v34 = vld [vmem:[%s3152_s19 + $0x510] sm:$0x1]  ;;  %v336_v37 = vld [vmem:[%s3152_s19 + $0x520] sm:$0x1] }
  0x26   : > { %2878 = vmatpush1.bf16.msra.mxu1 %v2877_v6  ;;  %2871 = vmatprep.subr.msk.bf16.mxu0 %vm3154_vm2, %v2869_v7  ;;  %v286_v35 = vld [vmem:[%s3152_s19 + $0x390] sm:$0xff]  ;;  %v2899_v36 = vpack.c.bf16 %v337_v28, %v287_v27  ;;  %v189_v38 = vld [vmem:[%s3152_s19 + $0x88] sm:$0xff]  ;;  %v239_v39 = vld [vmem:[%s3152_s19 + $0x218] sm:$0xff]  ;;  %v2892_v42 = vpack.c.bf16 %v334_v34, %v284_v33 }
  0x27   : > { %2881 = vmatprep.subr.msk.bf16.mxu1 %vm3154_vm2, %v2879_v11  ;;  %881 = vmatprep.mubr.f32.mxu0 %v3103_v0  ;;  %v191_v40 = vld [vmem:[%s3152_s19 + $0x98] sm:$0xff]  ;;  %v241_v41 = vld [vmem:[%s3152_s19 + $0x228] sm:$0xff]  ;;  %v2902_v43 = vpack.c.bf16 %v336_v37, %v286_v35  ;;  %v2905_v44 = vpack.c.bf16 %v239_v39, %v189_v38  ;;  %v188_v45 = vld [vmem:[%s3152_s19 + $0x80] sm:$0xff] }
  0x28   : > { %952 = vmatprep.mubr.f32.mxu1 %v3103_v0  ;;  %v238_v46 = vld [vmem:[%s3152_s19 + $0x210] sm:$0xff]  ;;  %v2915_v48 = vpack.c.bf16 %v241_v41, %v191_v40  ;;  %v240_v49 = vld [vmem:[%s3152_s19 + $0x220] sm:$0xff]  ;;  %v289_v50 = vld [vmem:[%s3152_s19 + $0x3a8] sm:$0xff] }
  0x29   : > { %2874 = vmatpush1.bf16.msk.msra.mxu0 %vm3154_vm2, %v2872_v17  ;;  %v190_v47 = vld [vmem:[%s3152_s19 + $0x90] sm:$0xff]  ;;  %v339_v51 = vld [vmem:[%s3152_s19 + $0x538] sm:$0x1]  ;;  %v341_v53 = vld [vmem:[%s3152_s19 + $0x548] sm:$0x1]  ;;  %v2907_v54 = vpack.c.bf16 %v238_v46, %v188_v45 }
  0x2a   : > { %2884 = vmatpush1.bf16.msk.msra.mxu1 %vm3154_vm2, %v2882_v18  ;;  %2886 = vmatprep.subr.bf16.mxu0 %v2885_v19  ;;  %v291_v52 = vld [vmem:[%s3152_s19 + $0x3b8] sm:$0xff]  ;;  %v2917_v55 = vpack.c.bf16 %v240_v49, %v190_v47  ;;  %v2909_v56 = vpack.c.bf16 %v339_v51, %v289_v50  ;;  %v288_v57 = vld [vmem:[%s3152_s19 + $0x3a0] sm:$0xff]  ;;  %v338_v58 = vld [vmem:[%s3152_s19 + $0x530] sm:$0x1] }
  0x2b   : > { %2896 = vmatprep.subr.bf16.mxu1 %v2895_v23  ;;  %v290_v59 = vld [vmem:[%s3152_s19 + $0x3b0] sm:$0xff]  ;;  %v2919_v60 = vpack.c.bf16 %v341_v53, %v291_v52  ;;  %v340_v61 = vld [vmem:[%s3152_s19 + $0x540] sm:$0x1]  ;;  %v193_v62 = vld [vmem:[%s3152_s19 + $0xa8] sm:$0xff]  ;;  %v2912_v4 = vpack.c.bf16 %v338_v58, %v288_v57 }
  0x2c   : > { %2761 = vmatmul.mubr.msk.f32.vlgmr.msra.gmra.mrb[4].mxu0 %vm378_vm3, %v3183_v30  ;;  %v243_v63 = vld [vmem:[%s3152_s19 + $0x238] sm:$0xff]  ;;  %v245_v2 = vld [vmem:[%s3152_s19 + $0x248] sm:$0xff]  ;;  %v2922_v5 = vpack.c.bf16 %v340_v61, %v290_v59  ;;  %v192_v7 = vld [vmem:[%s3152_s19 + $0xa0] sm:$0xff] }
  0x2d   : > { %2764 = vmatmul.mubr.msk.f32.vlgmr.msra.gmra.mrb[4].mxu1 %vm378_vm3, %v3183_v30  ;;  %2888 = vmatpush1.bf16.msra.mxu0 %v2887_v29  ;;  %v195_v1 = vld [vmem:[%s3152_s19 + $0xb8] sm:$0xff]  ;;  %v2925_v6 = vpack.c.bf16 %v243_v63, %v193_v62  ;;  %v242_v8 = vld [vmem:[%s3152_s19 + $0x230] sm:$0xff]  ;;  %v244_v11 = vld [vmem:[%s3152_s19 + $0x240] sm:$0xff] }
  0x2e   : > { %2898 = vmatpush1.bf16.msra.mxu1 %v2897_v31  ;;  %2891 = vmatprep.subr.msk.bf16.mxu0 %vm3154_vm2, %v2889_v32  ;;  %v194_v9 = vld [vmem:[%s3152_s19 + $0xb0] sm:$0xff]  ;;  %v2935_v10 = vpack.c.bf16 %v245_v2, %v195_v1  ;;  %v293_v12 = vld [vmem:[%s3152_s19 + $0x3c8] sm:$0xff]  ;;  %v343_v13 = vld [vmem:[%s3152_s19 + $0x558] sm:$0x1]  ;;  %v2927_v16 = vpack.c.bf16 %v242_v8, %v192_v7 }
  0x2f   : > { %2901 = vmatprep.subr.msk.bf16.mxu1 %vm3154_vm2, %v2899_v36  ;;  %1023 = vmatprep.mubr.f32.mxu0 %v3103_v0  ;;  %v295_v14 = vld [vmem:[%s3152_s19 + $0x3d8] sm:$0xff]  ;;  %v345_v15 = vld [vmem:[%s3152_s19 + $0x568] sm:$0x1]  ;;  %v2937_v17 = vpack.c.bf16 %v244_v11, %v194_v9  ;;  %v2929_v18 = vpack.c.bf16 %v343_v13, %v293_v12  ;;  %v292_v19 = vld [vmem:[%s3152_s19 + $0x3c0] sm:$0xff] }
  0x30   : > { %1094 = vmatprep.mubr.f32.mxu1 %v3103_v0  ;;  %v342_v20 = vld [vmem:[%s3152_s19 + $0x550] sm:$0x1]  ;;  %v2939_v22 = vpack.c.bf16 %v345_v15, %v295_v14  ;;  %v344_v23 = vld [vmem:[%s3152_s19 + $0x560] sm:$0x1]  ;;  %v197_v24 = vld [vmem:[%s3152_s19 + $0xc8] sm:$0xff] }
  0x31   : > { %2894 = vmatpush1.bf16.msk.msra.mxu0 %vm3154_vm2, %v2892_v42  ;;  %v294_v21 = vld [vmem:[%s3152_s19 + $0x3d0] sm:$0xff]  ;;  %v247_v25 = vld [vmem:[%s3152_s19 + $0x258] sm:$0xff]  ;;  %v249_v27 = vld [vmem:[%s3152_s19 + $0x268] sm:$0xff]  ;;  %v2932_v28 = vpack.c.bf16 %v342_v20, %v292_v19 }
  0x32   : > { %2904 = vmatpush1.bf16.msk.msra.mxu1 %vm3154_vm2, %v2902_v43  ;;  %2906 = vmatprep.subr.bf16.mxu0 %v2905_v44  ;;  %v199_v26 = vld [vmem:[%s3152_s19 + $0xd8] sm:$0xff]  ;;  %v2942_v29 = vpack.c.bf16 %v344_v23, %v294_v21  ;;  %v2945_v31 = vpack.c.bf16 %v247_v25, %v197_v24  ;;  %v196_v32 = vld [vmem:[%s3152_s19 + $0xc0] sm:$0xff]  ;;  %v246_v33 = vld [vmem:[%s3152_s19 + $0x250] sm:$0xff] }
  0x33   : > { %2916 = vmatprep.subr.bf16.mxu1 %v2915_v48  ;;  %v198_v34 = vld [vmem:[%s3152_s19 + $0xd0] sm:$0xff]  ;;  %v2955_v35 = vpack.c.bf16 %v249_v27, %v199_v26  ;;  %v248_v36 = vld [vmem:[%s3152_s19 + $0x260] sm:$0xff]  ;;  %v297_v37 = vld [vmem:[%s3152_s19 + $0x3e8] sm:$0xff]  ;;  %v2947_v41 = vpack.c.bf16 %v246_v33, %v196_v32 }
  0x34   : > { %2767 = vmatmul.mubr.msk.f32.vlgmr.msra.gmra.mrb[6].mxu0 %vm378_vm3, %v3183_v30  ;;  %v347_v38 = vld [vmem:[%s3152_s19 + $0x578] sm:$0x1]  ;;  %v349_v40 = vld [vmem:[%s3152_s19 + $0x588] sm:$0x1]  ;;  %v2957_v42 = vpack.c.bf16 %v248_v36, %v198_v34  ;;  %v296_v44 = vld [vmem:[%s3152_s19 + $0x3e0] sm:$0xff] }
  0x35   : > { %2770 = vmatmul.mubr.msk.f32.vlgmr.msra.gmra.mrb[6].mxu1 %vm378_vm3, %v3183_v30  ;;  %2908 = vmatpush1.bf16.msra.mxu0 %v2907_v54  ;;  %v299_v39 = vld [vmem:[%s3152_s19 + $0x3f8] sm:$0xff]  ;;  %v2949_v43 = vpack.c.bf16 %v347_v38, %v297_v37  ;;  %v346_v45 = vld [vmem:[%s3152_s19 + $0x570] sm:$0x1]  ;;  %v348_v48 = vld [vmem:[%s3152_s19 + $0x580] sm:$0x1] }
  0x36   : > { %2918 = vmatpush1.bf16.msra.mxu1 %v2917_v55  ;;  %2911 = vmatprep.subr.msk.bf16.mxu0 %vm3154_vm2, %v2909_v56  ;;  %v298_v46 = vld [vmem:[%s3152_s19 + $0x3f0] sm:$0xff]  ;;  %v2959_v47 = vpack.c.bf16 %v349_v40, %v299_v39  ;;  %v201_v49 = vld [vmem:[%s3152_s19 + $0xe8] sm:$0xff]  ;;  %v251_v50 = vld [vmem:[%s3152_s19 + $0x278] sm:$0xff]  ;;  %v2952_v53 = vpack.c.bf16 %v346_v45, %v296_v44 }
  0x37   : > { %2921 = vmatprep.subr.msk.bf16.mxu1 %vm3154_vm2, %v2919_v60  ;;  %1165 = vmatprep.mubr.f32.mxu0 %v3103_v0  ;;  %v203_v51 = vld [vmem:[%s3152_s19 + $0xf8] sm:$0xff]  ;;  %v253_v52 = vld [vmem:[%s3152_s19 + $0x288] sm:$0xff]  ;;  %v2962_v54 = vpack.c.bf16 %v348_v48, %v298_v46  ;;  %v2965_v55 = vpack.c.bf16 %v251_v50, %v201_v49  ;;  %v200_v56 = vld [vmem:[%s3152_s19 + $0xe0] sm:$0xff] }
  0x38   : > { %1236 = vmatprep.mubr.f32.mxu1 %v3103_v0  ;;  %v250_v57 = vld [vmem:[%s3152_s19 + $0x270] sm:$0xff]  ;;  %v2975_v59 = vpack.c.bf16 %v253_v52, %v203_v51  ;;  %v252_v60 = vld [vmem:[%s3152_s19 + $0x280] sm:$0xff]  ;;  %v301_v61 = vld [vmem:[%s3152_s19 + $0x408] sm:$0xff] }
  0x39   : > { %2914 = vmatpush1.bf16.msk.msra.mxu0 %vm3154_vm2, %v2912_v4  ;;  %v202_v58 = vld [vmem:[%s3152_s19 + $0xf0] sm:$0xff]  ;;  %v351_v62 = vld [vmem:[%s3152_s19 + $0x598] sm:$0x1]  ;;  %v353_v1 = vld [vmem:[%s3152_s19 + $0x5a8] sm:$0x1]  ;;  %v2967_v2 = vpack.c.bf16 %v250_v57, %v200_v56 }
  0x3a   : > { %2924 = vmatpush1.bf16.msk.msra.mxu1 %vm3154_vm2, %v2922_v5  ;;  %2926 = vmatprep.subr.bf16.mxu0 %v2925_v6  ;;  %v303_v63 = vld [vmem:[%s3152_s19 + $0x418] sm:$0xff]  ;;  %v2977_v4 = vpack.c.bf16 %v252_v60, %v202_v58  ;;  %v2969_v5 = vpack.c.bf16 %v351_v62, %v301_v61  ;;  %v300_v6 = vld [vmem:[%s3152_s19 + $0x400] sm:$0xff]  ;;  %v350_v7 = vld [vmem:[%s3152_s19 + $0x590] sm:$0x1] }
  0x3b   : > { %2936 = vmatprep.subr.bf16.mxu1 %v2935_v10  ;;  %v302_v8 = vld [vmem:[%s3152_s19 + $0x410] sm:$0xff]  ;;  %v2979_v9 = vpack.c.bf16 %v353_v1, %v303_v63  ;;  %v352_v10 = vld [vmem:[%s3152_s19 + $0x5a0] sm:$0x1]  ;;  %v205_v11 = vld [vmem:[%s3152_s19 + $0x108] sm:$0xff]  ;;  %v2972_v15 = vpack.c.bf16 %v350_v7, %v300_v6 }
  0x3c   : > { %2773 = vmatmul.mubr.msk.f32.vlgmr.msra.gmra.mrb[8].mxu0 %vm378_vm3, %v3183_v30  ;;  %v255_v12 = vld [vmem:[%s3152_s19 + $0x298] sm:$0xff]  ;;  %v257_v14 = vld [vmem:[%s3152_s19 + $0x2a8] sm:$0xff]  ;;  %v254_v19 = vld [vmem:[%s3152_s19 + $0x290] sm:$0xff] }
  0x3d   : > { %2776 = vmatmul.mubr.msk.f32.vlgmr.msra.gmra.mrb[8].mxu1 %vm378_vm3, %v3183_v30  ;;  %2928 = vmatpush1.bf16.msra.mxu0 %v2927_v16  ;;  %v207_v13 = vld [vmem:[%s3152_s19 + $0x118] sm:$0xff]  ;;  %v2982_v16 = vpack.c.bf16 %v352_v10, %v302_v8  ;;  %v206_v20 = vld [vmem:[%s3152_s19 + $0x110] sm:$0xff]  ;;  %v305_v23 = vld [vmem:[%s3152_s19 + $0x428] sm:$0xff] }
  0x3e   : > { %2938 = vmatpush1.bf16.msra.mxu1 %v2937_v17  ;;  %2931 = vmatprep.subr.msk.bf16.mxu0 %vm3154_vm2, %v2929_v18  ;;  %v2985_v17 = vpack.c.bf16 %v255_v12, %v205_v11  ;;  %v204_v18 = vld [vmem:[%s3152_s19 + $0x100] sm:$0xff]  ;;  %v2995_v21 = vpack.c.bf16 %v257_v14, %v207_v13  ;;  %v355_v24 = vld [vmem:[%s3152_s19 + $0x5b8] sm:$0x1]  ;;  %v357_v26 = vld [vmem:[%s3152_s19 + $0x5c8] sm:$0x1] }
  0x3f   : > { %2941 = vmatprep.subr.msk.bf16.mxu1 %vm3154_vm2, %v2939_v22  ;;  %1307 = vmatprep.mubr.f32.mxu0 %v3103_v0  ;;  %v256_v22 = vld [vmem:[%s3152_s19 + $0x2a0] sm:$0xff]  ;;  %v307_v25 = vld [vmem:[%s3152_s19 + $0x438] sm:$0xff]  ;;  %v2987_v27 = vpack.c.bf16 %v254_v19, %v204_v18  ;;  %v354_v32 = vld [vmem:[%s3152_s19 + $0x5b0] sm:$0x1] }
  0x40   : > { %1378 = vmatprep.mubr.f32.mxu1 %v3103_v0  ;;  %v306_v33 = vld [vmem:[%s3152_s19 + $0x430] sm:$0xff]  ;;  %v2999_v34 = vpack.c.bf16 %v357_v26, %v307_v25  ;;  %v209_v36 = vld [vmem:[%s3152_s19 + $0x128] sm:$0xff]  ;;  %v259_v37 = vld [vmem:[%s3152_s19 + $0x2b8] sm:$0xff] }
  0x41   : > { %2934 = vmatpush1.bf16.msk.msra.mxu0 %vm3154_vm2, %v2932_v28  ;;  %v2997_v28 = vpack.c.bf16 %v256_v22, %v206_v20  ;;  %v211_v38 = vld [vmem:[%s3152_s19 + $0x138] sm:$0xff]  ;;  %v261_v39 = vld [vmem:[%s3152_s19 + $0x2c8] sm:$0xff]  ;;  %v258_v44 = vld [vmem:[%s3152_s19 + $0x2b0] sm:$0xff] }
  0x42   : > { %2944 = vmatpush1.bf16.msk.msra.mxu1 %vm3154_vm2, %v2942_v29  ;;  %2946 = vmatprep.subr.bf16.mxu0 %v2945_v31  ;;  %v2989_v29 = vpack.c.bf16 %v355_v24, %v305_v23  ;;  %v304_v31 = vld [vmem:[%s3152_s19 + $0x420] sm:$0xff]  ;;  %v210_v45 = vld [vmem:[%s3152_s19 + $0x130] sm:$0xff]  ;;  %v3015_v46 = vpack.c.bf16 %v261_v39, %v211_v38  ;;  %v309_v48 = vld [vmem:[%s3152_s19 + $0x448] sm:$0xff] }
  0x43   : > { %2956 = vmatprep.subr.bf16.mxu1 %v2955_v35  ;;  %v356_v35 = vld [vmem:[%s3152_s19 + $0x5c0] sm:$0x1]  ;;  %v2992_v40 = vpack.c.bf16 %v354_v32, %v304_v31  ;;  %v359_v49 = vld [vmem:[%s3152_s19 + $0x5d8] sm:$0x1]  ;;  %v361_v51 = vld [vmem:[%s3152_s19 + $0x5e8] sm:$0x1] }
  0x44   : > { %2779 = vmatmul.mubr.msk.f32.vlgmr.msra.gmra.mrb[10].mxu0 %vm378_vm3, %v3183_v30  ;;  %v311_v50 = vld [vmem:[%s3152_s19 + $0x458] sm:$0xff]  ;;  %v358_v56 = vld [vmem:[%s3152_s19 + $0x5d0] sm:$0x1]  ;;  %v213_v60 = vld [vmem:[%s3152_s19 + $0x148] sm:$0xff] }
  0x45   : > { %2782 = vmatmul.mubr.msk.f32.vlgmr.msra.gmra.mrb[10].mxu1 %vm378_vm3, %v3183_v30  ;;  %2948 = vmatpush1.bf16.msra.mxu0 %v2947_v41  ;;  %v3002_v41 = vpack.c.bf16 %v356_v35, %v306_v33  ;;  %v310_v57 = vld [vmem:[%s3152_s19 + $0x450] sm:$0xff]  ;;  %v3019_v58 = vpack.c.bf16 %v361_v51, %v311_v50  ;;  %v263_v61 = vld [vmem:[%s3152_s19 + $0x2d8] sm:$0xff]  ;;  %v265_v63 = vld [vmem:[%s3152_s19 + $0x2e8] sm:$0xff] }
  0x46   : > { %2958 = vmatpush1.bf16.msra.mxu1 %v2957_v42  ;;  %2951 = vmatprep.subr.msk.bf16.mxu0 %vm3154_vm2, %v2949_v43  ;;  %v3005_v42 = vpack.c.bf16 %v259_v37, %v209_v36  ;;  %v208_v43 = vld [vmem:[%s3152_s19 + $0x120] sm:$0xff]  ;;  %v215_v62 = vld [vmem:[%s3152_s19 + $0x158] sm:$0xff]  ;;  %v262_v6 = vld [vmem:[%s3152_s19 + $0x2d0] sm:$0xff] }
  0x47   : > { %2961 = vmatprep.subr.msk.bf16.mxu1 %vm3154_vm2, %v2959_v47  ;;  %1449 = vmatprep.mubr.f32.mxu0 %v3103_v0  ;;  %v260_v47 = vld [vmem:[%s3152_s19 + $0x2c0] sm:$0xff]  ;;  %v3007_v52 = vpack.c.bf16 %v258_v44, %v208_v43  ;;  %v214_v7 = vld [vmem:[%s3152_s19 + $0x150] sm:$0xff]  ;;  %v3035_v8 = vpack.c.bf16 %v265_v63, %v215_v62  ;;  %v313_v10 = vld [vmem:[%s3152_s19 + $0x468] sm:$0xff] }
  0x48   : > { %1520 = vmatprep.mubr.f32.mxu1 %v3103_v0  ;;  %v363_v11 = vld [vmem:[%s3152_s19 + $0x5f8] sm:$0x1]  ;;  %v365_v13 = vld [vmem:[%s3152_s19 + $0x608] sm:$0x1]  ;;  %v362_v18 = vld [vmem:[%s3152_s19 + $0x5f0] sm:$0x1] }
  0x49   : > { %2954 = vmatpush1.bf16.msk.msra.mxu0 %vm3154_vm2, %v2952_v53  ;;  %v3017_v53 = vpack.c.bf16 %v260_v47, %v210_v45  ;;  %v315_v12 = vld [vmem:[%s3152_s19 + $0x478] sm:$0xff]  ;;  %v314_v19 = vld [vmem:[%s3152_s19 + $0x470] sm:$0xff]  ;;  %v217_v22 = vld [vmem:[%s3152_s19 + $0x168] sm:$0xff] }
  0x4a   : > { %2964 = vmatpush1.bf16.msk.msra.mxu1 %vm3154_vm2, %v2962_v54  ;;  %2966 = vmatprep.subr.bf16.mxu0 %v2965_v55  ;;  %v3009_v54 = vpack.c.bf16 %v359_v49, %v309_v48  ;;  %v308_v55 = vld [vmem:[%s3152_s19 + $0x440] sm:$0xff]  ;;  %v3039_v20 = vpack.c.bf16 %v365_v13, %v315_v12  ;;  %v267_v23 = vld [vmem:[%s3152_s19 + $0x2f8] sm:$0xff]  ;;  %v269_v25 = vld [vmem:[%s3152_s19 + $0x308] sm:$0xff] }
  0x4b   : > { %2976 = vmatprep.subr.bf16.mxu1 %v2975_v59  ;;  %v360_v59 = vld [vmem:[%s3152_s19 + $0x5e0] sm:$0x1]  ;;  %v3012_v1 = vpack.c.bf16 %v358_v56, %v308_v55  ;;  %v219_v24 = vld [vmem:[%s3152_s19 + $0x178] sm:$0xff]  ;;  %v266_v31 = vld [vmem:[%s3152_s19 + $0x2f0] sm:$0xff] }
  0x4c   : > { %2785 = vmatmul.mubr.msk.f32.vlgmr.msra.gmra.mrb[12].mxu0 %vm378_vm3, %v3183_v30  ;;  %v218_v32 = vld [vmem:[%s3152_s19 + $0x170] sm:$0xff]  ;;  %v3055_v33 = vpack.c.bf16 %v269_v25, %v219_v24  ;;  %v317_v35 = vld [vmem:[%s3152_s19 + $0x488] sm:$0xff]  ;;  %v367_v36 = vld [vmem:[%s3152_s19 + $0x618] sm:$0x1] }
  0x4d   : > { %2788 = vmatmul.mubr.msk.f32.vlgmr.msra.gmra.mrb[12].mxu1 %vm378_vm3, %v3183_v30  ;;  %2968 = vmatpush1.bf16.msra.mxu0 %v2967_v2  ;;  %v3022_v2 = vpack.c.bf16 %v360_v59, %v310_v57  ;;  %v319_v37 = vld [vmem:[%s3152_s19 + $0x498] sm:$0xff]  ;;  %v369_v38 = vld [vmem:[%s3152_s19 + $0x628] sm:$0x1]  ;;  %v366_v43 = vld [vmem:[%s3152_s19 + $0x610] sm:$0x1] }
  0x4e   : > { %2978 = vmatpush1.bf16.msra.mxu1 %v2977_v4  ;;  %2971 = vmatprep.subr.msk.bf16.mxu0 %vm3154_vm2, %v2969_v5  ;;  %v3025_v4 = vpack.c.bf16 %v263_v61, %v213_v60  ;;  %v212_v5 = vld [vmem:[%s3152_s19 + $0x140] sm:$0xff]  ;;  %v318_v44 = vld [vmem:[%s3152_s19 + $0x490] sm:$0xff]  ;;  %v3059_v45 = vpack.c.bf16 %v369_v38, %v319_v37  ;;  %v221_v47 = vld [vmem:[%s3152_s19 + $0x188] sm:$0xff] }
  0x4f   : > { %2981 = vmatprep.subr.msk.bf16.mxu1 %vm3154_vm2, %v2979_v9  ;;  %1591 = vmatprep.mubr.f32.mxu0 %v3103_v0  ;;  %v264_v9 = vld [vmem:[%s3152_s19 + $0x2e0] sm:$0xff]  ;;  %v3027_v14 = vpack.c.bf16 %v262_v6, %v212_v5  ;;  %v271_v48 = vld [vmem:[%s3152_s19 + $0x318] sm:$0xff]  ;;  %v370_v59 = vld [vmem:[%s3152_s19 + $0x630] sm:$0x1] }
  0x50   : > { %1662 = vmatprep.mubr.f32.mxu1 %v3103_v0  ;;  %v3065_v51 = vpack.c.bf16 %v271_v48, %v221_v47  ;;  %v371_v55 = vld [vmem:[%s3152_s19 + $0x638] sm:$0x1] }
  0x51   : > { %2974 = vmatpush1.bf16.msk.msra.mxu0 %vm3154_vm2, %v2972_v15  ;;  %v3037_v15 = vpack.c.bf16 %v264_v9, %v214_v7 }
  0x52   : > { %2984 = vmatpush1.bf16.msk.msra.mxu1 %vm3154_vm2, %v2982_v16  ;;  %2986 = vmatprep.subr.bf16.mxu0 %v2985_v17  ;;  %v3029_v16 = vpack.c.bf16 %v363_v11, %v313_v10  ;;  %v312_v17 = vld [vmem:[%s3152_s19 + $0x460] sm:$0xff] }
  0x53   : > { %2996 = vmatprep.subr.bf16.mxu1 %v2995_v21  ;;  %v364_v21 = vld [vmem:[%s3152_s19 + $0x600] sm:$0x1]  ;;  %v3032_v26 = vpack.c.bf16 %v362_v18, %v312_v17 }
  0x54   : > { %2791 = vmatmul.mubr.msk.f32.vlgmr.msra.gmra.mrb[14].mxu0 %vm378_vm3, %v3183_v30 }
  0x55   : > { %2794 = vmatmul.mubr.msk.f32.vlgmr.msra.gmra.mrb[14].mxu1 %vm378_vm3, %v3183_v30  ;;  %2988 = vmatpush1.bf16.msra.mxu0 %v2987_v27  ;;  %v3042_v27 = vpack.c.bf16 %v364_v21, %v314_v19 }
  0x56   : > { %2998 = vmatpush1.bf16.msra.mxu1 %v2997_v28  ;;  %2991 = vmatprep.subr.msk.bf16.mxu0 %vm3154_vm2, %v2989_v29  ;;  %v3045_v28 = vpack.c.bf16 %v267_v23, %v217_v22  ;;  %v216_v29 = vld [vmem:[%s3152_s19 + $0x160] sm:$0xff] }
  0x57   : > { %3001 = vmatprep.subr.msk.bf16.mxu1 %vm3154_vm2, %v2999_v34  ;;  %1733 = vmatprep.mubr.f32.mxu0 %v3103_v0  ;;  %v268_v34 = vld [vmem:[%s3152_s19 + $0x300] sm:$0xff]  ;;  %v3047_v39 = vpack.c.bf16 %v266_v31, %v216_v29 }
  0x58   : > { %1804 = vmatprep.mubr.f32.mxu1 %v3103_v0 }
  0x59   : > { %2994 = vmatpush1.bf16.msk.msra.mxu0 %vm3154_vm2, %v2992_v40  ;;  %v3057_v40 = vpack.c.bf16 %v268_v34, %v218_v32 }
  0x5a   : > { %3004 = vmatpush1.bf16.msk.msra.mxu1 %vm3154_vm2, %v3002_v41  ;;  %3006 = vmatprep.subr.bf16.mxu0 %v3005_v42  ;;  %v3049_v41 = vpack.c.bf16 %v367_v36, %v317_v35  ;;  %v316_v42 = vld [vmem:[%s3152_s19 + $0x480] sm:$0xff] }
  0x5b   : > { %3016 = vmatprep.subr.bf16.mxu1 %v3015_v46  ;;  %v368_v46 = vld [vmem:[%s3152_s19 + $0x620] sm:$0x1]  ;;  %v3052_v49 = vpack.c.bf16 %v366_v43, %v316_v42 }
  0x5c   : > { %2797 = vmatmul.mubr.msk.f32.vlgmr.msra.gmra.mrb[16].mxu0 %vm378_vm3, %v3183_v30  ;;  %v3062_v50 = vpack.c.bf16 %v368_v46, %v318_v44 }
  0x5d   : > { %2800 = vmatmul.mubr.msk.f32.vlgmr.msra.gmra.mrb[16].mxu1 %vm378_vm3, %v3183_v30  ;;  %3008 = vmatpush1.bf16.msra.mxu0 %v3007_v52  ;;  %v220_v52 = vld [vmem:[%s3152_s19 + $0x180] sm:$0xff] }
  0x5e   : > { %3018 = vmatpush1.bf16.msra.mxu1 %v3017_v53  ;;  %3011 = vmatprep.subr.msk.bf16.mxu0 %vm3154_vm2, %v3009_v54  ;;  %v270_v53 = vld [vmem:[%s3152_s19 + $0x310] sm:$0xff]  ;;  %v321_v54 = vld [vmem:[%s3152_s19 + $0x4a8] sm:$0xff] }
  0x5f   : > { %3021 = vmatprep.subr.msk.bf16.mxu1 %vm3154_vm2, %v3019_v58  ;;  %1875 = vmatprep.mubr.f32.mxu0 %v3103_v0  ;;  %v3067_v56 = vpack.c.bf16 %v270_v53, %v220_v52  ;;  %v3069_v57 = vpack.c.bf16 %v371_v55, %v321_v54  ;;  %v320_v58 = vld [vmem:[%s3152_s19 + $0x4a0] sm:$0xff] }
  0x60   : > { %1946 = vmatprep.mubr.f32.mxu1 %v3103_v0  ;;  %v3072_v60 = vpack.c.bf16 %v370_v59, %v320_v58 }
  0x61   : > { %3014 = vmatpush1.bf16.msk.msra.mxu0 %vm3154_vm2, %v3012_v1 }
  0x62   : > { %3024 = vmatpush1.bf16.msk.msra.mxu1 %vm3154_vm2, %v3022_v2  ;;  %3026 = vmatprep.subr.bf16.mxu0 %v3025_v4 }
  0x63   : > { %3036 = vmatprep.subr.bf16.mxu1 %v3035_v8 }
  0x64   : > { %2803 = vmatmul.mubr.msk.f32.vlgmr.msra.gmra.mrb[18].mxu0 %vm378_vm3, %v3183_v30 }
  0x65   : > { %2806 = vmatmul.mubr.msk.f32.vlgmr.msra.gmra.mrb[18].mxu1 %vm378_vm3, %v3183_v30  ;;  %3028 = vmatpush1.bf16.msra.mxu0 %v3027_v14 }
  0x66   : > { %3038 = vmatpush1.bf16.msra.mxu1 %v3037_v15  ;;  %3031 = vmatprep.subr.msk.bf16.mxu0 %vm3154_vm2, %v3029_v16 }
  0x67   : > { %3041 = vmatprep.subr.msk.bf16.mxu1 %vm3154_vm2, %v3039_v20  ;;  %2017 = vmatprep.mubr.f32.mxu0 %v3103_v0 }
  0x68   : > { %2088 = vmatprep.mubr.f32.mxu1 %v3103_v0 }
  0x69   : > { %3034 = vmatpush1.bf16.msk.msra.mxu0 %vm3154_vm2, %v3032_v26 }
  0x6a   : > { %3044 = vmatpush1.bf16.msk.msra.mxu1 %vm3154_vm2, %v3042_v27  ;;  %3046 = vmatprep.subr.bf16.mxu0 %v3045_v28 }
  0x6b   : > { %3056 = vmatprep.subr.bf16.mxu1 %v3055_v33 }
  0x6c   : > { %2809 = vmatmul.mubr.msk.f32.vlgmr.msra.gmra.mrb[20].mxu0 %vm378_vm3, %v3183_v30 }
  0x6d   : > { %2812 = vmatmul.mubr.msk.f32.vlgmr.msra.gmra.mrb[20].mxu1 %vm378_vm3, %v3183_v30  ;;  %3048 = vmatpush1.bf16.msra.mxu0 %v3047_v39 }
  0x6e   : > { %3058 = vmatpush1.bf16.msra.mxu1 %v3057_v40  ;;  %3051 = vmatprep.subr.msk.bf16.mxu0 %vm3154_vm2, %v3049_v41 }
  0x6f   : > { %3061 = vmatprep.subr.msk.bf16.mxu1 %vm3154_vm2, %v3059_v45  ;;  %2159 = vmatprep.mubr.f32.mxu0 %v3103_v0 }
  0x70   : > { %2230 = vmatprep.mubr.f32.mxu1 %v3103_v0 }
  0x71   : > { %3054 = vmatpush1.bf16.msk.msra.mxu0 %vm3154_vm2, %v3052_v49 }
  0x72   : > { %3064 = vmatpush1.bf16.msk.msra.mxu1 %vm3154_vm2, %v3062_v50  ;;  %3066 = vmatprep.subr.bf16.mxu0 %v3065_v51 }
  0x74   : > { %2815 = vmatmul.mubr.msk.f32.vlgmr.msra.gmra.mrb[22].mxu0 %vm378_vm3, %v3183_v30 }
  0x75   : > { %2818 = vmatmul.mubr.msk.f32.vlgmr.msra.gmra.mrb[22].mxu1 %vm378_vm3, %v3183_v30  ;;  %3068 = vmatpush1.bf16.msra.mxu0 %v3067_v56 }
  0x76   : > { %3071 = vmatprep.subr.msk.bf16.mxu0 %vm3154_vm2, %v3069_v57  ;;  %2301 = vmatprep.mubr.f32.mxu0 %v3103_v0 }
  0x79   : > { %3074 = vmatpush1.bf16.msk.msra.mxu0 %vm3154_vm2, %v3072_v60 }
  0x7c   : > { %2821 = vmatmul.mubr.msk.f32.vlgmr.msra.gmra.mrb[24].mxu0 %vm378_vm3, %v3183_v30 }
  0x87   : > { %v3542_v1 = vpop.permute.xlu0 %375 }
  0xef   : > { %v3536_v61 = vpop.f32.mrb[0].mxu0 }
  0xf0   : > { %v3538_v62 = vpop.f32.mrb[1].mxu0  ;;  %v3540_v63 = vpop.f32.mrb[0].mxu1 }
  0xf1   : > { %v672_v2 = vpop.f32.mrb[1].mxu1 }
  0xf2   : > { %v3545_v4 = vadd.f32 %v672_v2, %v3542_v1 }
  0xf4   : > { %v2311_v0 = vmax.f32 %v3545_v4, 0.0 }
  0xf6   : > { %2362 = vrot.lane.b32.xlu0 %v2311_v0, %s3106_s22 }
  0xf7   : > { %v741_v3 = vpop.f32.mrb[2].mxu0 }
  0xf8   : > { %v742_v30 = vadd.f32 %v741_v3, %v3542_v1  ;;  %v812_v5 = vpop.f32.mrb[2].mxu1  ;;  %v743_v6 = vpop.f32.mrb[3].mxu0 }
  0xf9   : > { %v813_v7 = vadd.f32 %v812_v5, %v3542_v1  ;;  %v814_v8 = vpop.f32.mrb[3].mxu1  ;;  %v744_v12 = vadd.f32 %v743_v6, %v3542_v1 }
  0xfa   : > { %v2312_v9 = vmax.f32 %v742_v30, 0.0  ;;  %v815_v11 = vadd.f32 %v814_v8, %v3542_v1 }
  0xfb   : > { %v2314_v10 = vmax.f32 %v813_v7, 0.0  ;;  %v2313_v19 = vmax.f32 %v744_v12, 0.0 }
  0xfc   : > { %2364 = vrot.lane.b32.xlu1 %v2312_v9, %s3106_s22  ;;  %v2315_v13 = vmax.f32 %v815_v11, 0.0 }
  0xfd   : > { %2368 = vrot.lane.b32.xlu0 %v2314_v10, %s3106_s22 }
  0xff   : > { %v883_v14 = vpop.f32.mrb[4].mxu0 }
 0x100   : > { %v954_v15 = vpop.f32.mrb[4].mxu1  ;;  %v885_v16 = vpop.f32.mrb[5].mxu0  ;;  %2385 = vrot.lane.b32.xlu1 %v2314_v10, %s3107_s23  ;;  %v884_v20 = vadd.f32 %v883_v14, %v3542_v1 }
 0x101   : > { %v955_v17 = vadd.f32 %v954_v15, %v3542_v1  ;;  %v956_v18 = vpop.f32.mrb[5].mxu1  ;;  %2387 = vrot.lane.b32.xlu0 %v2315_v13, %s3107_s23  ;;  %v886_v22 = vadd.f32 %v885_v16, %v3542_v1 }
 0x102   : > { %v2316_v23 = vmax.f32 %v884_v20, 0.0  ;;  %v957_v31 = vadd.f32 %v956_v18, %v3542_v1 }
 0x103   : > { %v2318_v21 = vmax.f32 %v955_v17, 0.0  ;;  %v2317_v24 = vmax.f32 %v886_v22, 0.0 }
 0x104   : > { %2366 = vrot.lane.b32.xlu1 %v2313_v19, %s3106_s22  ;;  %v2319_v34 = vmax.f32 %v957_v31, 0.0 }
 0x105   : > { %2410 = vrot.lane.b32.xlu0 %v2318_v21, %s3108_s24 }
 0x107   : > { %v1025_v25 = vpop.f32.mrb[6].mxu0 }
 0x108   : > { %v1026_v26 = vadd.f32 %v1025_v25, %v3542_v1  ;;  %v1096_v27 = vpop.f32.mrb[6].mxu1  ;;  %v1027_v28 = vpop.f32.mrb[7].mxu0  ;;  %2389 = vrot.lane.b32.xlu1 %v2316_v23, %s3107_s23 }
 0x109   : > { %v1098_v29 = vpop.f32.mrb[7].mxu1  ;;  %2391 = vrot.lane.b32.xlu0 %v2317_v24, %s3107_s23  ;;  %v1028_v33 = vadd.f32 %v1027_v28, %v3542_v1  ;;  %v1097_v41 = vadd.f32 %v1096_v27, %v3542_v1 }
 0x10a   : > { %v2320_v32 = vmax.f32 %v1026_v26, 0.0  ;;  %v1099_v36 = vadd.f32 %v1098_v29, %v3542_v1 }
 0x10b   : > { %v2321_v35 = vmax.f32 %v1028_v33, 0.0  ;;  %v2322_v44 = vmax.f32 %v1097_v41, 0.0 }
 0x10c   : > { %2408 = vrot.lane.b32.xlu1 %v2317_v24, %s3108_s24  ;;  %v2323_v42 = vmax.f32 %v1099_v36, 0.0 }
 0x10d   : > { %2414 = vrot.lane.b32.xlu0 %v2320_v32, %s3108_s24 }
 0x10f   : > { %v1167_v37 = vpop.f32.mrb[8].mxu0 }
 0x110   : > { %v1238_v38 = vpop.f32.mrb[8].mxu1  ;;  %v1169_v39 = vpop.f32.mrb[9].mxu0  ;;  %2412 = vrot.lane.b32.xlu1 %v2319_v34, %s3108_s24  ;;  %v1168_v43 = vadd.f32 %v1167_v37, %v3542_v1 }
 0x111   : > { %v1240_v40 = vpop.f32.mrb[9].mxu1  ;;  %2433 = vrot.lane.b32.xlu0 %v2321_v35, %s3109_s25  ;;  %v1239_v46 = vadd.f32 %v1238_v38, %v3542_v1  ;;  %v1170_v53 = vadd.f32 %v1169_v39, %v3542_v1 }
 0x112   : > { %v2324_v45 = vmax.f32 %v1168_v43, 0.0  ;;  %v1241_v52 = vadd.f32 %v1240_v40, %v3542_v1 }
 0x113   : > { %v2326_v51 = vmax.f32 %v1239_v46, 0.0  ;;  %v2325_v60 = vmax.f32 %v1170_v53, 0.0 }
 0x114   : > { %2431 = vrot.lane.b32.xlu1 %v2320_v32, %s3109_s25  ;;  %v2327_v54 = vmax.f32 %v1241_v52, 0.0 }
 0x115   : > { %2437 = vrot.lane.b32.xlu0 %v2323_v42, %s3109_s25 }
 0x117   : > { %v1309_v47 = vpop.f32.mrb[10].mxu0 }
 0x118   : > { %v1380_v48 = vpop.f32.mrb[10].mxu1  ;;  %v1311_v49 = vpop.f32.mrb[11].mxu0  ;;  %2435 = vrot.lane.b32.xlu1 %v2322_v44, %s3109_s25  ;;  %v1310_v2 = vadd.f32 %v1309_v47, %v3542_v1 }
 0x119   : > { %v1382_v50 = vpop.f32.mrb[11].mxu1  ;;  %2456 = vrot.lane.b32.xlu0 %v2324_v45, %s3110_s26  ;;  %v1381_v55 = vadd.f32 %v1380_v48, %v3542_v1  ;;  %v1312_v30 = vadd.f32 %v1311_v49, %v3542_v1 }
 0x11a   : > { %v2328_v5 = vmax.f32 %v1310_v2, 0.0  ;;  %v1383_v12 = vadd.f32 %v1382_v50, %v3542_v1 }
 0x11b   : > { %v2330_v3 = vmax.f32 %v1381_v55, 0.0  ;;  %v2329_v6 = vmax.f32 %v1312_v30, 0.0 }
 0x11c   : > { %2454 = vrot.lane.b32.xlu1 %v2323_v42, %s3110_s26  ;;  %v2331_v15 = vmax.f32 %v1383_v12, 0.0 }
 0x11d   : > { %2460 = vrot.lane.b32.xlu0 %v2326_v51, %s3110_s26 }
 0x11f   : > { %v1451_v56 = vpop.f32.mrb[12].mxu0 }
 0x120   : > { %v3586_v57 = vpop.f32.mrb[12].mxu1  ;;  %v3588_v58 = vpop.f32.mrb[13].mxu0  ;;  %2477 = vrot.lane.b32.xlu1 %v2326_v51, %s3111_s27  ;;  %v1452_v7 = vadd.f32 %v1451_v56, %v3542_v1 }
 0x121   : > { %v3591_v59 = vpop.f32.mrb[13].mxu1  ;;  %2479 = vrot.lane.b32.xlu0 %v2327_v54, %s3111_s27 }
 0x122   : > { %v2332_v13 = vmax.f32 %v1452_v7, 0.0 }
 0x124   : > { %2458 = vrot.lane.b32.xlu1 %v2325_v60, %s3110_s26 }
 0x125   : > { %2502 = vrot.lane.b32.xlu0 %v2330_v3, %s3112_s28 }
 0x127   : > { %v1593_v8 = vpop.f32.mrb[14].mxu0 }
 0x128   : > { %v1664_v9 = vpop.f32.mrb[14].mxu1  ;;  %v1595_v10 = vpop.f32.mrb[15].mxu0  ;;  %2481 = vrot.lane.b32.xlu1 %v2328_v5, %s3111_s27  ;;  %v3606_v16 = vadd.f32 %v1593_v8, %v3542_v1 }
 0x129   : > { %v1666_v11 = vpop.f32.mrb[15].mxu1  ;;  %2483 = vrot.lane.b32.xlu0 %v2329_v6, %s3111_s27  ;;  %v1596_v14 = vadd.f32 %v1595_v10, %v3542_v1  ;;  %v1665_v24 = vadd.f32 %v1664_v9, %v3542_v1 }
 0x12a   : > { %v1667_v18 = vadd.f32 %v1666_v11, %v3542_v1  ;;  %v2336_v23 = vmax.f32 %v3606_v16, 0.0 }
 0x12b   : > { %v2337_v17 = vmax.f32 %v1596_v14, 0.0  ;;  %v2338_v27 = vmax.f32 %v1665_v24, 0.0 }
 0x12c   : > { %2500 = vrot.lane.b32.xlu1 %v2329_v6, %s3112_s28  ;;  %v2339_v25 = vmax.f32 %v1667_v18, 0.0 }
 0x12d   : > { %2506 = vrot.lane.b32.xlu0 %v2332_v13, %s3112_s28 }
 0x12f   : > { %v1735_v19 = vpop.f32.mrb[16].mxu0 }
 0x130   : > { %v1806_v20 = vpop.f32.mrb[16].mxu1  ;;  %v1737_v21 = vpop.f32.mrb[17].mxu0  ;;  %2504 = vrot.lane.b32.xlu1 %v2331_v15, %s3112_s28  ;;  %v1736_v26 = vadd.f32 %v1735_v19, %v3542_v1 }
 0x131   : > { %v1808_v22 = vpop.f32.mrb[17].mxu1  ;;  %2530 = vrot.lane.b32.xlu0 %v2337_v17, %s3106_s22  ;;  %v1807_v29 = vadd.f32 %v1806_v20, %v3542_v1  ;;  %v1738_v37 = vadd.f32 %v1737_v21, %v3542_v1 }
 0x132   : > { %v2340_v28 = vmax.f32 %v1736_v26, 0.0  ;;  %v1809_v36 = vadd.f32 %v1808_v22, %v3542_v1 }
 0x133   : > { %v2342_v35 = vmax.f32 %v1807_v29, 0.0  ;;  %v2341_v44 = vmax.f32 %v1738_v37, 0.0 }
 0x134   : > { %2528 = vrot.lane.b32.xlu1 %v2336_v23, %s3106_s22  ;;  %v2343_v38 = vmax.f32 %v1809_v36, 0.0 }
 0x135   : > { %2534 = vrot.lane.b32.xlu0 %v2339_v25, %s3106_s22 }
 0x137   : > { %v1877_v31 = vpop.f32.mrb[18].mxu0 }
 0x138   : > { %v1948_v32 = vpop.f32.mrb[18].mxu1  ;;  %v1879_v33 = vpop.f32.mrb[19].mxu0  ;;  %2532 = vrot.lane.b32.xlu1 %v2338_v27, %s3106_s22  ;;  %v1878_v45 = vadd.f32 %v1877_v31, %v3542_v1 }
 0x139   : > { %v1950_v34 = vpop.f32.mrb[19].mxu1  ;;  %2552 = vrot.lane.b32.xlu0 %v2340_v28, %s3107_s23  ;;  %v1949_v39 = vadd.f32 %v1948_v32, %v3542_v1  ;;  %v1880_v47 = vadd.f32 %v1879_v33, %v3542_v1  ;;  %v602_v32 = vadd.f32 %v3538_v62, %v3542_v1  ;;  %v671_v33 = vadd.f32 %v3540_v63, %v3542_v1 }
 0x13a   : > { %v2344_v48 = vmax.f32 %v1878_v45, 0.0  ;;  %v1951_v55 = vadd.f32 %v1950_v34, %v3542_v1 }
 0x13b   : > { %v2346_v46 = vmax.f32 %v1949_v39, 0.0  ;;  %v2345_v49 = vmax.f32 %v1880_v47, 0.0 }
 0x13c   : > { %2550 = vrot.lane.b32.xlu1 %v2339_v25, %s3107_s23  ;;  %v2347_v2 = vmax.f32 %v1951_v55, 0.0  ;;  %v600_v25 = vadd.f32 %v3536_v61, %v3542_v1  ;;  %v2309_v61 = vmax.f32 %v602_v32, 0.0 }
 0x13d   : > { %2556 = vrot.lane.b32.xlu0 %v2342_v35, %s3107_s23 }
 0x13e   : > { %v2308_v27 = vmax.f32 %v600_v25, 0.0  ;;  %v1454_v25 = vadd.f32 %v3588_v58, %v3542_v1 }
 0x13f   : > { %v2019_v40 = vpop.f32.mrb[20].mxu0 }
 0x140   : > { %v2090_v41 = vpop.f32.mrb[20].mxu1  ;;  %v2021_v42 = vpop.f32.mrb[21].mxu0  ;;  %2572 = vrot.lane.b32.xlu1 %v2342_v35, %s3108_s24  ;;  %v2020_v50 = vadd.f32 %v2019_v40, %v3542_v1 }
 0x141   : > { %v2092_v43 = vpop.f32.mrb[21].mxu1  ;;  %2574 = vrot.lane.b32.xlu0 %v2343_v38, %s3108_s24  ;;  %v2022_v60 = vadd.f32 %v2021_v42, %v3542_v1  ;;  %v2091_v7 = vadd.f32 %v2090_v41, %v3542_v1  ;;  %v2310_v38 = vmax.f32 %v671_v33, 0.0 }
 0x142   : > { %v2348_v56 = vmax.f32 %v2020_v50, 0.0  ;;  %v2093_v30 = vadd.f32 %v2092_v43, %v3542_v1 }
 0x143   : > { %v2349_v3 = vmax.f32 %v2022_v60, 0.0  ;;  %v2350_v10 = vmax.f32 %v2091_v7, 0.0 }
 0x144   : > { %2554 = vrot.lane.b32.xlu1 %v2341_v44, %s3107_s23  ;;  %v2351_v8 = vmax.f32 %v2093_v30, 0.0 }
 0x145   : > { %2596 = vrot.lane.b32.xlu0 %v2346_v46, %s3109_s25 }
 0x147   : > { %v2161_v51 = vpop.f32.mrb[22].mxu0 }
 0x148   : > { %v2232_v52 = vpop.f32.mrb[22].mxu1  ;;  %v2163_v53 = vpop.f32.mrb[23].mxu0  ;;  %2576 = vrot.lane.b32.xlu1 %v2344_v48, %s3108_s24  ;;  %v2162_v9 = vadd.f32 %v2161_v51, %v3542_v1 }
 0x149   : > { %v2234_v54 = vpop.f32.mrb[23].mxu1  ;;  %2578 = vrot.lane.b32.xlu0 %v2345_v49, %s3108_s24  ;;  %v2233_v12 = vadd.f32 %v2232_v52, %v3542_v1  ;;  %v2164_v15 = vadd.f32 %v2163_v53, %v3542_v1 }
 0x14a   : > { %v2352_v11 = vmax.f32 %v2162_v9, 0.0  ;;  %v2235_v14 = vadd.f32 %v2234_v54, %v3542_v1 }
 0x14b   : > { %v2354_v13 = vmax.f32 %v2233_v12, 0.0  ;;  %v2353_v19 = vmax.f32 %v2164_v15, 0.0 }
 0x14c   : > { %2594 = vrot.lane.b32.xlu1 %v2345_v49, %s3109_s25  ;;  %v2355_v17 = vmax.f32 %v2235_v14, 0.0 }
 0x14d   : > { %2600 = vrot.lane.b32.xlu0 %v2348_v56, %s3109_s25 }
 0x14f   : > { %v2303_v5 = vpop.f32.mrb[24].mxu0 }
 0x150   : > { %v2305_v6 = vpop.f32.mrb[25].mxu0  ;;  %2598 = vrot.lane.b32.xlu1 %v2347_v2, %s3109_s25  ;;  %v2304_v20 = vadd.f32 %v2303_v5, %v3542_v1 }
 0x151   : > { %2618 = vrot.lane.b32.xlu0 %v2349_v3, %s3110_s26  ;;  %v2306_v18 = vadd.f32 %v2305_v6, %v3542_v1 }
 0x152   : > { %v2356_v22 = vmax.f32 %v2304_v20, 0.0 }
 0x153   : > { %v2357_v21 = vmax.f32 %v2306_v18, 0.0 }
 0x154   : > { %2616 = vrot.lane.b32.xlu1 %v2348_v56, %s3110_s26 }
 0x155   : > { %2622 = vrot.lane.b32.xlu0 %v2351_v8, %s3110_s26 }
 0x158   : > { %2620 = vrot.lane.b32.xlu1 %v2350_v10, %s3110_s26 }
 0x159   : > { %2640 = vrot.lane.b32.xlu0 %v2352_v11, %s3111_s27 }
 0x15c   : > { %2638 = vrot.lane.b32.xlu1 %v2351_v8, %s3111_s27 }
 0x15d   : > { %2644 = vrot.lane.b32.xlu0 %v2354_v13, %s3111_s27 }
 0x160   : > { %2660 = vrot.lane.b32.xlu1 %v2354_v13, %s3112_s28 }
 0x161   : > { %2662 = vrot.lane.b32.xlu0 %v2355_v17, %s3112_s28 }
 0x164   : > { %2642 = vrot.lane.b32.xlu1 %v2353_v19, %s3111_s27 }
 0x165   : > { %2666 = vrot.lane.b32.xlu0 %v2357_v21, %s3112_s28 }
 0x168   : > { %2664 = vrot.lane.b32.xlu1 %v2356_v22, %s3112_s28  ;;  %v2363_v24 = vpop.permute.xlu0 %2362 }
 0x16e   : > { %v2365_v26 = vpop.permute.xlu1 %2364 }
 0x16f   : > { %v2369_v28 = vpop.permute.xlu0 %2368  ;;  %v2371_v29 = vsel %vm2370_vm4, %v2363_v24, %v2365_v26 }
 0x170   : > { %v2378_v31 = vmax.f32 %v2308_v27, %v2371_v29  ;;  %v2381_v62 = vmax.f32 %v2311_v0, %v2369_v28  ;;  %v1523_v29 = vadd.f32 %v3586_v57, %v3542_v1 }
 0x172   : > { %v2386_v34 = vpop.permute.xlu1 %2385 }
 0x173   : > { %v2388_v35 = vpop.permute.xlu0 %2387 }
 0x174   : > { %v2394_v36 = vsel %vm2393_vm5, %v2386_v34, %v2388_v35  ;;  %v1525_v34 = vadd.f32 %v3591_v59, %v3542_v1  ;;  %v2334_v59 = vmax.f32 %v1523_v29, 0.0 }
 0x175   : > { %v2401_v37 = vmax.f32 %v2378_v31, %v2394_v36 }
 0x176   : > { %v2367_v39 = vpop.permute.xlu1 %2366 }
 0x177   : > { %v2411_v40 = vpop.permute.xlu0 %2410  ;;  %v2372_v41 = vsel %vm2370_vm4, %v2365_v26, %v2367_v39  ;;  %v2373_v42 = vsel %vm2370_vm4, %v2367_v39, %v2369_v28 }
 0x178   : > { %v2379_v43 = vmax.f32 %v2309_v61, %v2372_v41  ;;  %v2380_v44 = vmax.f32 %v2310_v38, %v2373_v42  ;;  %v2333_v61 = vmax.f32 %v1454_v25, 0.0 }
 0x17a   : > { %v2390_v45 = vpop.permute.xlu1 %2389 }
 0x17b   : > { %v2392_v63 = vpop.permute.xlu0 %2391  ;;  %v2395_v46 = vsel %vm2393_vm5, %v2388_v35, %v2390_v45 }
 0x17c   : > { %v2404_v47 = vmax.f32 %v2381_v62, %v2392_v63  ;;  %v2396_v48 = vsel %vm2393_vm5, %v2390_v45, %v2392_v63  ;;  %v2402_v49 = vmax.f32 %v2379_v43, %v2395_v46  ;;  %v2335_v45 = vmax.f32 %v1525_v34, 0.0 }
 0x17d   : > { %v2403_v50 = vmax.f32 %v2380_v44, %v2396_v48 }
 0x17e   : > { %v2409_v51 = vpop.permute.xlu1 %2408 }
 0x17f   : > { %v2415_v52 = vpop.permute.xlu0 %2414  ;;  %v2417_v53 = vsel %vm2416_vm6, %v2409_v51, %v2411_v40 }
 0x180   : > { %v3675_v54 = vmax.f32 %v2404_v47, %v2415_v52  ;;  %v2424_v55 = vmax.f32 %v2401_v37, %v2417_v53 }
 0x182   : > { %v2413_v56 = vpop.permute.xlu1 %2412 }
 0x183   : > { %v2434_v4 = vpop.permute.xlu0 %2433  ;;  %v2418_v0 = vsel %vm2416_vm6, %v2411_v40, %v2413_v56  ;;  %v2419_v60 = vsel %vm2416_vm6, %v2413_v56, %v2415_v52 }
 0x184   : > { %v2425_v2 = vmax.f32 %v2402_v49, %v2418_v0  ;;  %v2426_v3 = vmax.f32 %v2403_v50, %v2419_v60 }
 0x186   : > { %v2432_v30 = vpop.permute.xlu1 %2431 }
 0x187   : > { %v3679_v5 = vpop.permute.xlu0 %2437  ;;  %v2440_v15 = vsel %vm2439_vm7, %v2432_v30, %v2434_v4 }
 0x188   : > { %v2447_v19 = vmax.f32 %v2424_v55, %v2440_v15 }
 0x18a   : > { %v2436_v6 = vpop.permute.xlu1 %2435 }
 0x18b   : > { %v2457_v7 = vpop.permute.xlu0 %2456  ;;  %v2441_v8 = vsel %vm2439_vm7, %v2434_v4, %v2436_v6  ;;  %v2442_v21 = vsel %vm2439_vm7, %v2436_v6, %v3679_v5 }
 0x18c   : > { %v2448_v9 = vmax.f32 %v2425_v2, %v2441_v8  ;;  %v2449_v31 = vmax.f32 %v2426_v3, %v2442_v21 }
 0x18e   : > { %v2455_v10 = vpop.permute.xlu1 %2454 }
 0x18f   : > { %v2461_v11 = vpop.permute.xlu0 %2460  ;;  %v2463_v18 = vsel %vm2462_vm8, %v2455_v10, %v2457_v7 }
 0x190   : > { %v2470_v26 = vmax.f32 %v2447_v19, %v2463_v18 }
 0x192   : > { %v2478_v12 = vpop.permute.xlu1 %2477 }
 0x193   : > { %v2480_v13 = vpop.permute.xlu0 %2479 }
 0x194   : > { %v2486_v22 = vsel %vm2485_vm9, %v2478_v12, %v2480_v13 }
 0x195   : > { %v2493_v32 = vmax.f32 %v2470_v26, %v2486_v22 }
 0x196   : > { %v2459_v14 = vpop.permute.xlu1 %2458 }
 0x197   : > { %v2503_v17 = vpop.permute.xlu0 %2502  ;;  %v2464_v27 = vsel %vm2462_vm8, %v2457_v7, %v2459_v14  ;;  %v2465_v28 = vsel %vm2462_vm8, %v2459_v14, %v2461_v11  ;;  %v2450_v7 = vmax.f32 %v3675_v54, %v3679_v5 }
 0x198   : > { %v2471_v38 = vmax.f32 %v2448_v9, %v2464_v27  ;;  %v2472_v39 = vmax.f32 %v2449_v31, %v2465_v28 }
 0x199   : > { %v2473_v8 = vmax.f32 %v2450_v7, %v2461_v11 }
 0x19a   : > { %v2482_v20 = vpop.permute.xlu1 %2481 }
 0x19b   : > { %v2484_v24 = vpop.permute.xlu0 %2483  ;;  %v2487_v35 = vsel %vm2485_vm9, %v2480_v13, %v2482_v20 }
 0x19c   : > { %v2488_v36 = vsel %vm2485_vm9, %v2482_v20, %v2484_v24  ;;  %v2494_v41 = vmax.f32 %v2471_v38, %v2487_v35  ;;  %v2496_v12 = vmax.f32 %v2473_v8, %v2484_v24 }
 0x19d   : > { %v2495_v42 = vmax.f32 %v2472_v39, %v2488_v36 }
 0x19e   : > { %v2501_v33 = vpop.permute.xlu1 %2500 }
 0x19f   : > { %v2507_v58 = vpop.permute.xlu0 %2506  ;;  %v2509_v37 = vsel %vm2508_vm10, %v2501_v33, %v2503_v17 }
 0x1a0   : > { %v2516_v40 = vmax.f32 %v2493_v32, %v2509_v37  ;;  %v2519_v13 = vmax.f32 %v2496_v12, %v2507_v58 }
 0x1a2   : > { %v2505_v57 = vpop.permute.xlu1 %2504  ;;  %v2520_v43 = vmax.f32 %v2516_v40, %v2333_v61  ;;  %v2523_v20 = vmax.f32 %v2519_v13, %v2336_v23 }
 0x1a3   : > { %v2531_v44 = vpop.permute.xlu0 %2530  ;;  %v2510_v62 = vsel %vm2508_vm10, %v2503_v17, %v2505_v57  ;;  %v2511_v1 = vsel %vm2508_vm10, %v2505_v57, %v2507_v58 }
 0x1a4   : > { %v2517_v63 = vmax.f32 %v2494_v41, %v2510_v62  ;;  %v2518_v46 = vmax.f32 %v2495_v42, %v2511_v1 }
 0x1a6   : > { %v2529_v47 = vpop.permute.xlu1 %2528  ;;  %v2522_v48 = vmax.f32 %v2518_v46, %v2335_v45  ;;  %v2521_v49 = vmax.f32 %v2517_v63, %v2334_v59 }
 0x1a7   : > { %v2535_v50 = vpop.permute.xlu0 %2534  ;;  %v2536_v14 = vsel %vm2370_vm4, %v2529_v47, %v2531_v44 }
 0x1a8   : > { %v2543_v19 = vmax.f32 %v2520_v43, %v2536_v14  ;;  %v2546_v5 = vmax.f32 %v2523_v20, %v2535_v50 }
 0x1aa   : > { %v2533_v51 = vpop.permute.xlu1 %2532 }
 0x1ab   : > { %v2553_v52 = vpop.permute.xlu0 %2552  ;;  %v2537_v24 = vsel %vm2370_vm4, %v2531_v44, %v2533_v51  ;;  %v2538_v26 = vsel %vm2370_vm4, %v2533_v51, %v2535_v50 }
 0x1ac   : > { %v2544_v34 = vmax.f32 %v2521_v49, %v2537_v24  ;;  %v2545_v35 = vmax.f32 %v2522_v48, %v2538_v26 }
 0x1ae   : > { %v2551_v53 = vpop.permute.xlu1 %2550 }
 0x1af   : > { %v2557_v55 = vpop.permute.xlu0 %2556  ;;  %v2558_v18 = vsel %vm2393_vm5, %v2551_v53, %v2553_v52 }
 0x1b0   : > { %v2565_v25 = vmax.f32 %v2543_v19, %v2558_v18  ;;  %v2568_v28 = vmax.f32 %v2546_v5, %v2557_v55 }
 0x1b2   : > { %v2573_v56 = vpop.permute.xlu1 %2572 }
 0x1b3   : > { %v2575_v4 = vpop.permute.xlu0 %2574 }
 0x1b4   : > { %v2580_v21 = vsel %vm2416_vm6, %v2573_v56, %v2575_v4 }
 0x1b5   : > { %v2587_v27 = vmax.f32 %v2565_v25, %v2580_v21 }
 0x1b6   : > { %v2555_v0 = vpop.permute.xlu1 %2554 }
 0x1b7   : > { %v2597_v60 = vpop.permute.xlu0 %2596  ;;  %v2559_v16 = vsel %vm2393_vm5, %v2553_v52, %v2555_v0  ;;  %v2560_v23 = vsel %vm2393_vm5, %v2555_v0, %v2557_v55 }
 0x1b8   : > { %v2566_v39 = vmax.f32 %v2544_v34, %v2559_v16  ;;  %v2567_v40 = vmax.f32 %v2545_v35, %v2560_v23 }
 0x1ba   : > { %v2577_v2 = vpop.permute.xlu1 %2576 }
 0x1bb   : > { %v2579_v3 = vpop.permute.xlu0 %2578  ;;  %v2581_v37 = vsel %vm2416_vm6, %v2575_v4, %v2577_v2 }
 0x1bc   : > { %v2590_v36 = vmax.f32 %v2568_v28, %v2579_v3  ;;  %v2582_v61 = vsel %vm2416_vm6, %v2577_v2, %v2579_v3  ;;  %v2588_v1 = vmax.f32 %v2566_v39, %v2581_v37 }
 0x1bd   : > { %v2589_v59 = vmax.f32 %v2567_v40, %v2582_v61 }
 0x1be   : > { %v2595_v30 = vpop.permute.xlu1 %2594 }
 0x1bf   : > { %v2601_v6 = vpop.permute.xlu0 %2600  ;;  %v2602_v11 = vsel %vm2439_vm7, %v2595_v30, %v2597_v60 }
 0x1c0   : > { %v2609_v32 = vmax.f32 %v2587_v27, %v2602_v11  ;;  %v2612_v41 = vmax.f32 %v2590_v36, %v2601_v6 }
 0x1c2   : > { %v2599_v9 = vpop.permute.xlu1 %2598 }
 0x1c3   : > { %v2619_v10 = vpop.permute.xlu0 %2618  ;;  %v2603_v57 = vsel %vm2439_vm7, %v2597_v60, %v2599_v9  ;;  %v2604_v43 = vsel %vm2439_vm7, %v2599_v9, %v2601_v6 }
 0x1c4   : > { %v2610_v49 = vmax.f32 %v2588_v1, %v2603_v57  ;;  %v2611_v50 = vmax.f32 %v2589_v59, %v2604_v43 }
 0x1c6   : > { %v2617_v15 = vpop.permute.xlu1 %2616 }
 0x1c7   : > { %v2623_v17 = vpop.permute.xlu0 %2622  ;;  %v2624_v29 = vsel %vm2462_vm8, %v2617_v15, %v2619_v10 }
 0x1c8   : > { %v2631_v38 = vmax.f32 %v2609_v32, %v2624_v29  ;;  %v2634_v45 = vmax.f32 %v2612_v41, %v2623_v17 }
 0x1ca   : > { %v2621_v22 = vpop.permute.xlu1 %2620 }
 0x1cb   : > { %v2641_v54 = vpop.permute.xlu0 %2640  ;;  %v2625_v46 = vsel %vm2462_vm8, %v2619_v10, %v2621_v22  ;;  %v2626_v47 = vsel %vm2462_vm8, %v2621_v22, %v2623_v17 }
 0x1cc   : > { %v2632_v4 = vmax.f32 %v2610_v49, %v2625_v46  ;;  %v2633_v0 = vmax.f32 %v2611_v50, %v2626_v47 }
 0x1ce   : > { %v2639_v31 = vpop.permute.xlu1 %2638 }
 0x1cf   : > { %v2645_v33 = vpop.permute.xlu0 %2644  ;;  %v2646_v58 = vsel %vm2485_vm9, %v2639_v31, %v2641_v54 }
 0x1d0   : > { %v2653_v44 = vmax.f32 %v2631_v38, %v2646_v58  ;;  %v2656_v51 = vmax.f32 %v2634_v45, %v2645_v33 }
 0x1d2   : > { %v2661_v42 = vpop.permute.xlu1 %2660 }
 0x1d3   : > { %v2663_v62 = vpop.permute.xlu0 %2662 }
 0x1d4   : > { %v2668_v63 = vsel %vm2508_vm10, %v2661_v42, %v2663_v62 }
 0x1d5   : > { %v2675_v48 = vmax.f32 %v2653_v44, %v2668_v63 }
 0x1d6   : > { %v2643_v52 = vpop.permute.xlu1 %2642 }
 0x1d7   : > { %2679 = vst [vmem:[%s170_s5] sm:$0x3f] %v2675_v48  ;;  %v2667_v53 = vpop.permute.xlu0 %2666  ;;  %v2647_v55 = vsel %vm2485_vm9, %v2641_v54, %v2643_v52  ;;  %v2648_v56 = vsel %vm2485_vm9, %v2643_v52, %v2645_v33 }
 0x1d8   : > { %v2678_v60 = vmax.f32 %v2656_v51, %v2667_v53  ;;  %v2654_v2 = vmax.f32 %v2632_v4, %v2647_v55  ;;  %v2655_v3 = vmax.f32 %v2633_v0, %v2648_v56 }
 0x1da   : > { %2683 = vst.msk [vmem:[%s170_s5 + $0x18] sm:$0x3f] %vm2682_vm11, %v2678_v60  ;;  %v2665_v30 = vpop.permute.xlu1 %2664 }
 0x1db   : > { %v2669_v6 = vsel %vm2508_vm10, %v2663_v62, %v2665_v30  ;;  %v2670_v7 = vsel %vm2508_vm10, %v2665_v30, %v2667_v53 }
 0x1dc   : > { %v2676_v8 = vmax.f32 %v2654_v2, %v2669_v6  ;;  %v2677_v9 = vmax.f32 %v2655_v3, %v2670_v7 }
 0x1de   : > { %2680 = vst [vmem:[%s170_s5 + $0x8] sm:$0x3f] %v2676_v8  ;;  %2681 = vst [vmem:[%s170_s5 + $0x10] sm:$0x3f] %v2677_v9 }
 0x1df PF: > { %s13_s12 = sadd.s32 1, %s3101_s12  }
 0x1e0   : > { %p10_p4 = scmp.ge.s32.totalorder %s13_s12, 4  }
 0x1e2   :  { %12 = sbr.rel (!%p10_p4) target bundleno = 1 (0x1), region = 62 }

// kernel: qmodel_forward.4
= control target key start
LH: loop header
LB: loop body
LE: loop exit
PB: predicated region body
PF: predicated region fallthrough
CT: control target
= control target key end

     0   :  { %s513_s12 = smov 0   ;;  %s592_s0 = inlined_call_operand.vmem [shape: f32[2,150,256], index: 0, kind: input, shape index: {}]   ;;  %s593_s1 = inlined_call_operand.vmem [shape: f32[16,150], index: 1, kind: input, shape index: {}]   ;;  %s594_s2 = inlined_call_operand.vmem [shape: f32[16,1], index: 2, kind: input, shape index: {}]   ;;  %s595_s3 = inlined_call_operand.vmem [shape: f32[2,16,64], index: 3, kind: output, shape index: {}]  }
   0x1 LB: > { %s400_s13 = sadd.s32 4294967295, %s489_s12   ;;  %p404_p0 = scmp.ge.s32.totalorder %s489_s12, 1  ;;  %s489_s12 = sphi %s513_s12, %s13_s12  }
   0x2   : > { %p137_p1 = scmp.lt.s32.totalorder %s489_s12, 3 }
   0x4   : > { %p138_p2 = pnand %p404_p0, %p137_p1 }
   0x5   : > { %p161_p3 = scmp.lt.s32.totalorder (!%p138_p2), %s400_s13, 1  ;;  %v172_v0 = vld [vmem:[%s593_s1 + $0x8] sm:$0xff] (!%p138_p2)  ;;  %vm225_vm0 = vcmask (!%p138_p2), 179200   ;;  %v174_v1 = vld [vmem:[%s593_s1 + $0x18] sm:$0xff] (!%p138_p2)  ;;  %v213_v2 = vld [vmem:[%s594_s2] sm:$0xff] (!%p138_p2)  ;;  %v491_v3 = vmov (!%p138_p2), 0  }
   0x6   : > { %141 = sbr.rel (%p138_p2) target bundleno = 400 (0x190), region = 32  ;;  %410 = vmatprep.mubr.msk.f32.mxu0 (!%p138_p2), %vm225_vm0, %v172_v0  ;;  %411 = vmatprep.mubr.msk.f32.mxu1 (!%p138_p2), %vm225_vm0, %v174_v1  ;;  %v214_v4 = vld [vmem:[%s594_s2 + $0x8] sm:$0xff] (!%p138_p2)  ;;  %vm232_vm1 = vcmask (!%p138_p2), 1045504   ;;  %v171_v61 = vld [vmem:[%s593_s1] sm:$0xff] (!%p138_p2)  ;;  %v173_v62 = vld [vmem:[%s593_s1 + $0x10] sm:$0xff] (!%p138_p2)  ;;  %s492_s30 = smov (!%p138_p2), 64  }
   0x7   : > { %482 = vset.pattern.permute.xlu0 (!%p138_p2), %v491_v3  ;;  %vm342_vm2 = vcmask (!%p138_p2), 523264  }
   0x8   : > { %217 = vperm.xlu0 (!%p138_p2), %482, %v213_v2  }
   0xc   : > { %222 = vperm.xlu0 (!%p138_p2), %482, %v214_v4  }
   0xd   : > { %s597_s13 = smov (!%p161_p3, %s400_s13), 1 }
   0xe   : > { %s471_s20 = smul.u32 304, %s597_s13  ;;  %s414_s4 = sshll.u32 %s597_s13, 4 }
   0xf   : > { %s170_s7 = scalar_lea.vmem %s595_s3, %s414_s4 }
  0x10   : > { %s539_s25 = scalar_lea.vmem %s592_s0, %s471_s20 }
  0x11   : > { %v176_v5 = vld [vmem:[%s539_s25 + $0x8] sm:$0xff]  ;;  %v178_v6 = vld [vmem:[%s539_s25 + $0x18] sm:$0xff]  ;;  %v175_v7 = vld [vmem:[%s539_s25] sm:$0xff] }
  0x12   : > { %v415_v8 = vpack.c.bf16 %v178_v6, %v176_v5  ;;  %v177_v9 = vld [vmem:[%s539_s25 + $0x10] sm:$0xff]  ;;  %v180_v10 = vld [vmem:[%s539_s25 + $0x28] sm:$0xff]  ;;  %v182_v11 = vld [vmem:[%s539_s25 + $0x38] sm:$0xff] }
  0x13   : > { %v417_v12 = vpack.c.bf16 %v177_v9, %v175_v7  ;;  %v419_v13 = vpack.c.bf16 %v182_v11, %v180_v10  ;;  %v179_v14 = vld [vmem:[%s539_s25 + $0x20] sm:$0xff]  ;;  %v181_v15 = vld [vmem:[%s539_s25 + $0x30] sm:$0xff]  ;;  %v184_v16 = vld [vmem:[%s539_s25 + $0x48] sm:$0xff] }
  0x14   : > { %416 = vmatprep.subr.bf16.mxu0 %v415_v8  ;;  %451 = vmatprep.subr.bf16.mxu1 %v415_v8  ;;  %v186_v17 = vld [vmem:[%s539_s25 + $0x58] sm:$0xff]  ;;  %v421_v18 = vpack.c.bf16 %v181_v15, %v179_v14  ;;  %v183_v20 = vld [vmem:[%s539_s25 + $0x40] sm:$0xff]  ;;  %v185_v21 = vld [vmem:[%s539_s25 + $0x50] sm:$0xff] }
  0x15   : > { %418 = vmatpush1.bf16.msra.mxu0 %v417_v12  ;;  %461 = vmatpush1.bf16.msra.mxu1 %v417_v12  ;;  %v423_v19 = vpack.c.bf16 %v186_v17, %v184_v16  ;;  %v188_v22 = vld [vmem:[%s539_s25 + $0x68] sm:$0xff]  ;;  %v190_v23 = vld [vmem:[%s539_s25 + $0x78] sm:$0xff]  ;;  %v425_v24 = vpack.c.bf16 %v185_v21, %v183_v20  ;;  %v187_v26 = vld [vmem:[%s539_s25 + $0x60] sm:$0xff] }
  0x16   : > { %420 = vmatprep.subr.bf16.mxu0 %v419_v13  ;;  %452 = vmatprep.subr.bf16.mxu1 %v419_v13  ;;  %v427_v25 = vpack.c.bf16 %v190_v23, %v188_v22  ;;  %v189_v27 = vld [vmem:[%s539_s25 + $0x70] sm:$0xff]  ;;  %v192_v28 = vld [vmem:[%s539_s25 + $0x88] sm:$0xff]  ;;  %v194_v29 = vld [vmem:[%s539_s25 + $0x98] sm:$0xff] }
  0x17   : > { %v429_v30 = vpack.c.bf16 %v189_v27, %v187_v26  ;;  %v431_v31 = vpack.c.bf16 %v194_v29, %v192_v28  ;;  %v191_v32 = vld [vmem:[%s539_s25 + $0x80] sm:$0xff]  ;;  %v193_v33 = vld [vmem:[%s539_s25 + $0x90] sm:$0xff]  ;;  %v196_v34 = vld [vmem:[%s539_s25 + $0xa8] sm:$0xff] }
  0x18   : > { %v198_v35 = vld [vmem:[%s539_s25 + $0xb8] sm:$0xff]  ;;  %v433_v36 = vpack.c.bf16 %v193_v33, %v191_v32  ;;  %v195_v38 = vld [vmem:[%s539_s25 + $0xa0] sm:$0xff]  ;;  %v197_v39 = vld [vmem:[%s539_s25 + $0xb0] sm:$0xff] }
  0x19   : > { %422 = vmatpush1.bf16.msra.mxu0 %v421_v18  ;;  %462 = vmatpush1.bf16.msra.mxu1 %v421_v18  ;;  %v435_v37 = vpack.c.bf16 %v198_v35, %v196_v34  ;;  %v200_v40 = vld [vmem:[%s539_s25 + $0xc8] sm:$0xff]  ;;  %v202_v41 = vld [vmem:[%s539_s25 + $0xd8] sm:$0xff]  ;;  %v437_v42 = vpack.c.bf16 %v197_v39, %v195_v38  ;;  %v199_v44 = vld [vmem:[%s539_s25 + $0xc0] sm:$0xff] }
  0x1a   : > { %424 = vmatprep.subr.bf16.mxu0 %v423_v19  ;;  %453 = vmatprep.subr.bf16.mxu1 %v423_v19  ;;  %v439_v43 = vpack.c.bf16 %v202_v41, %v200_v40  ;;  %v201_v45 = vld [vmem:[%s539_s25 + $0xd0] sm:$0xff]  ;;  %v204_v46 = vld [vmem:[%s539_s25 + $0xe8] sm:$0xff]  ;;  %v206_v47 = vld [vmem:[%s539_s25 + $0xf8] sm:$0xff] }
  0x1b   : > { %v441_v48 = vpack.c.bf16 %v201_v45, %v199_v44  ;;  %v443_v49 = vpack.c.bf16 %v206_v47, %v204_v46  ;;  %v203_v50 = vld [vmem:[%s539_s25 + $0xe0] sm:$0xff]  ;;  %v205_v51 = vld [vmem:[%s539_s25 + $0xf0] sm:$0xff]  ;;  %v208_v52 = vld [vmem:[%s539_s25 + $0x108] sm:$0xff] }
  0x1c   : > { %v210_v53 = vld [vmem:[%s539_s25 + $0x118] sm:$0xff]  ;;  %v445_v54 = vpack.c.bf16 %v205_v51, %v203_v50  ;;  %v207_v56 = vld [vmem:[%s539_s25 + $0x100] sm:$0xff]  ;;  %v209_v57 = vld [vmem:[%s539_s25 + $0x110] sm:$0xff] }
  0x1d   : > { %426 = vmatpush1.bf16.msra.mxu0 %v425_v24  ;;  %463 = vmatpush1.bf16.msra.mxu1 %v425_v24  ;;  %v447_v55 = vpack.c.bf16 %v210_v53, %v208_v52  ;;  %v449_v58 = vpack.c.bf16 %v209_v57, %v207_v56  ;;  %v212_v59 = vld [vmem:[%s539_s25 + $0x128] sm:$0x3f]  ;;  %v211_v60 = vld [vmem:[%s539_s25 + $0x120] sm:$0x3f] }
  0x1e   : > { %428 = vmatprep.subr.bf16.mxu0 %v427_v25  ;;  %454 = vmatprep.subr.bf16.mxu1 %v427_v25 }
  0x21   : > { %430 = vmatpush1.bf16.msra.mxu0 %v429_v30  ;;  %464 = vmatpush1.bf16.msra.mxu1 %v429_v30 }
  0x22   : > { %432 = vmatprep.subr.bf16.mxu0 %v431_v31  ;;  %455 = vmatprep.subr.bf16.mxu1 %v431_v31 }
  0x25   : > { %434 = vmatpush1.bf16.msra.mxu0 %v433_v36  ;;  %465 = vmatpush1.bf16.msra.mxu1 %v433_v36 }
  0x26   : > { %436 = vmatprep.subr.bf16.mxu0 %v435_v37  ;;  %456 = vmatprep.subr.bf16.mxu1 %v435_v37 }
  0x29   : > { %438 = vmatpush1.bf16.msra.mxu0 %v437_v42  ;;  %466 = vmatpush1.bf16.msra.mxu1 %v437_v42 }
  0x2a   : > { %440 = vmatprep.subr.bf16.mxu0 %v439_v43  ;;  %457 = vmatprep.subr.bf16.mxu1 %v439_v43 }
  0x2d   : > { %442 = vmatpush1.bf16.msra.mxu0 %v441_v48  ;;  %467 = vmatpush1.bf16.msra.mxu1 %v441_v48 }
  0x2e   : > { %444 = vmatprep.subr.bf16.mxu0 %v443_v49  ;;  %458 = vmatprep.subr.bf16.mxu1 %v443_v49 }
  0x31   : > { %446 = vmatpush1.bf16.msra.mxu0 %v445_v54  ;;  %468 = vmatpush1.bf16.msra.mxu1 %v445_v54 }
  0x32   : > { %448 = vmatprep.subr.bf16.mxu0 %v447_v55  ;;  %459 = vmatprep.subr.bf16.mxu1 %v447_v55 }
  0x35   : > { %450 = vmatpush1.bf16.msra.mxu0 %v449_v58  ;;  %469 = vmatpush1.bf16.msra.mxu1 %v449_v58 }
  0x36   : > { %408 = vmatprep.subr.msk.mxu0 %vm232_vm1, %v212_v59  ;;  %460 = vmatprep.subr.msk.mxu1 %vm232_vm1, %v212_v59 }
  0x39   : > { %409 = vmatpush1.msk.msra.mxu0 %vm232_vm1, %v211_v60  ;;  %470 = vmatpush1.msk.msra.mxu1 %vm232_vm1, %v211_v60 }
  0x3a   : > { %304 = vmatmul.mubr.f32.vlgmr.msra.gmra.mrb[0].mxu0 %v171_v61  ;;  %310 = vmatmul.mubr.f32.vlgmr.msra.gmra.mrb[0].mxu1 %v173_v62 }
  0x87   : > { %v218_v63 = vpop.permute.xlu0 %217 }
  0x8b   : > { %v223_v0 = vpop.permute.xlu0 %222 }
 0x10d   : > { %v305_v1 = vpop.f32.mrb[0].mxu0  ;;  %v311_v2 = vpop.f32.mrb[0].mxu1 }
 0x10e   : > { %v306_v3 = vadd.f32 %v305_v1, %v218_v63  ;;  %v307_v4 = vpop.f32.mrb[1].mxu0  ;;  %v313_v5 = vpop.f32.mrb[1].mxu1  ;;  %v312_v8 = vadd.f32 %v311_v2, %v223_v0 }
 0x10f   : > { %v308_v6 = vadd.f32 %v307_v4, %v218_v63  ;;  %v314_v11 = vadd.f32 %v313_v5, %v223_v0 }
 0x110   : > { %v316_v7 = vmax.f32 %v306_v3, 0.0  ;;  %v318_v10 = vmax.f32 %v312_v8, 0.0 }
 0x111   : > { %v317_v9 = vmax.f32 %v308_v6, 0.0  ;;  %v319_v12 = vmax.f32 %v314_v11, 0.0 }
 0x112   : > { %322 = vrot.lane.b32.xlu1 %v316_v7, %s492_s30 }
 0x113   : > { %334 = vrot.lane.b32.xlu0 %v317_v9, %s492_s30 }
 0x116   : > { %324 = vrot.lane.b32.xlu1 %v318_v10, %s492_s30 }
 0x11a   : > { %336 = vrot.lane.b32.xlu1 %v319_v12, %s492_s30 }
 0x184   : > { %v323_v13 = vpop.permute.xlu1 %322 }
 0x185   : > { %v328_v14 = vmax.f32 %v316_v7, %v323_v13  ;;  %v335_v16 = vpop.permute.xlu0 %334 }
 0x187   : > { %v330_v15 = vmax.f32 %v328_v14, %v317_v9 }
 0x188   : > { %v325_v17 = vpop.permute.xlu1 %324 }
 0x189   : > { %v340_v18 = vmax.f32 %v330_v15, %v335_v16  ;;  %v329_v19 = vmax.f32 %v318_v10, %v325_v17 }
 0x18b   : > { %343 = vst.msk [vmem:[%s170_s7] sm:$0xff] %vm342_vm2, %v340_v18  ;;  %v331_v20 = vmax.f32 %v329_v19, %v319_v12 }
 0x18c   : > { %v337_v21 = vpop.permute.xlu1 %336 }
 0x18d   : > { %v341_v22 = vmax.f32 %v331_v20, %v337_v21 }
 0x18f   : > { %344 = vst.msk [vmem:[%s170_s7 + $0x8] sm:$0xff] %vm342_vm2, %v341_v22 }
 0x190 PF: > { %s13_s12 = sadd.s32 1, %s489_s12  }
 0x191   : > { %p10_p4 = scmp.ge.s32.totalorder %s13_s12, 4  }
 0x193   :  { %12 = sbr.rel (!%p10_p4) target bundleno = 1 (0x1), region = 62 }

// kernel: qmodel_forward.5
= control target key start
LH: loop header
LB: loop body
LE: loop exit
PB: predicated region body
PF: predicated region fallthrough
CT: control target
= control target key end

     0   :  { %s2278_s0 = inlined_call_operand.vmem [shape: f32[2,1024], index: 0, kind: input, shape index: {}]   ;;  %s2279_s1 = inlined_call_operand.vmem [shape: f32[1024,256], index: 1, kind: input, shape index: {}]   ;;  %s2280_s2 = inlined_call_operand.vmem [shape: f32[1,256], index: 2, kind: input, shape index: {}]   ;;  %s2281_s3 = inlined_call_operand.vmem [shape: f32[256,84], index: 3, kind: input, shape index: {}]   ;;  %s2282_s4 = inlined_call_operand.vmem [shape: f32[1,84], index: 4, kind: input, shape index: {}]   ;;  %s2283_s5 = inlined_call_operand.vmem [shape: f32[84,4], index: 5, kind: input, shape index: {}]   ;;  %s2284_s6 = inlined_call_operand.vmem [shape: f32[1,4], index: 6, kind: input, shape index: {}]   ;;  %s2285_s7 = inlined_call_operand.hbm [shape: f32[2,4], index: 7, kind: output, shape index: {}]  }
   0x1   :  { %v30_v0 = vld [vmem:[%s2279_s1 + $0x8] sm:$0xff]  ;;  %v32_v1 = vld [vmem:[%s2279_s1 + $0x18] sm:$0xff]  ;;  %v29_v5 = vld [vmem:[%s2279_s1] sm:$0xff] }
   0x2   :  { %v158_v2 = vld [vmem:[%s2279_s1 + $0x408] sm:$0xff]  ;;  %v926_v3 = vpack.c.bf16 %v32_v1, %v30_v0  ;;  %v160_v4 = vld [vmem:[%s2279_s1 + $0x418] sm:$0xff]  ;;  %v31_v6 = vld [vmem:[%s2279_s1 + $0x10] sm:$0xff] }
   0x3   :  { %v1054_v7 = vpack.c.bf16 %v160_v4, %v158_v2  ;;  %v928_v8 = vpack.c.bf16 %v31_v6, %v29_v5  ;;  %v157_v9 = vld [vmem:[%s2279_s1 + $0x400] sm:$0xff]  ;;  %v159_v10 = vld [vmem:[%s2279_s1 + $0x410] sm:$0xff]  ;;  %v34_v11 = vld [vmem:[%s2279_s1 + $0x28] sm:$0xff] }
   0x4   :  { %927 = vmatprep.subr.bf16.mxu1 %v926_v3  ;;  %v1056_v12 = vpack.c.bf16 %v159_v10, %v157_v9  ;;  %v36_v13 = vld [vmem:[%s2279_s1 + $0x38] sm:$0xff]  ;;  %v162_v14 = vld [vmem:[%s2279_s1 + $0x428] sm:$0xff]  ;;  %v33_v18 = vld [vmem:[%s2279_s1 + $0x20] sm:$0xff] }
   0x5   :  { %v164_v15 = vld [vmem:[%s2279_s1 + $0x438] sm:$0xff]  ;;  %1055 = vmatprep.subr.bf16.mxu0 %v1054_v7  ;;  %929 = vmatpush1.bf16.msra.mxu1 %v928_v8  ;;  %v930_v16 = vpack.c.bf16 %v36_v13, %v34_v11  ;;  %v35_v19 = vld [vmem:[%s2279_s1 + $0x30] sm:$0xff]  ;;  %v161_v20 = vld [vmem:[%s2279_s1 + $0x420] sm:$0xff] }
   0x6   :  { %v1058_v17 = vpack.c.bf16 %v164_v15, %v162_v14  ;;  %1057 = vmatpush1.bf16.msra.mxu0 %v1056_v12  ;;  %v932_v21 = vpack.c.bf16 %v35_v19, %v33_v18  ;;  %v163_v22 = vld [vmem:[%s2279_s1 + $0x430] sm:$0xff]  ;;  %v38_v23 = vld [vmem:[%s2279_s1 + $0x48] sm:$0xff]  ;;  %v40_v24 = vld [vmem:[%s2279_s1 + $0x58] sm:$0xff] }
   0x7   :  { %931 = vmatprep.subr.bf16.mxu1 %v930_v16  ;;  %v1060_v25 = vpack.c.bf16 %v163_v22, %v161_v20  ;;  %v934_v26 = vpack.c.bf16 %v40_v24, %v38_v23  ;;  %v166_v27 = vld [vmem:[%s2279_s1 + $0x448] sm:$0xff]  ;;  %v168_v28 = vld [vmem:[%s2279_s1 + $0x458] sm:$0xff]  ;;  %v37_v29 = vld [vmem:[%s2279_s1 + $0x40] sm:$0xff] }
   0x8   :  { %1059 = vmatprep.subr.bf16.mxu0 %v1058_v17  ;;  %v1062_v30 = vpack.c.bf16 %v168_v28, %v166_v27  ;;  %v39_v31 = vld [vmem:[%s2279_s1 + $0x50] sm:$0xff]  ;;  %v165_v32 = vld [vmem:[%s2279_s1 + $0x440] sm:$0xff]  ;;  %v42_v35 = vld [vmem:[%s2279_s1 + $0x68] sm:$0xff] }
   0x9   :  { %v167_v33 = vld [vmem:[%s2279_s1 + $0x450] sm:$0xff]  ;;  %933 = vmatpush1.bf16.msra.mxu1 %v932_v21  ;;  %v936_v34 = vpack.c.bf16 %v39_v31, %v37_v29  ;;  %v44_v36 = vld [vmem:[%s2279_s1 + $0x78] sm:$0xff]  ;;  %v170_v37 = vld [vmem:[%s2279_s1 + $0x468] sm:$0xff] }
   0xa   :  { %1061 = vmatpush1.bf16.msra.mxu0 %v1060_v25  ;;  %935 = vmatprep.subr.bf16.mxu1 %v934_v26  ;;  %v1064_v38 = vpack.c.bf16 %v167_v33, %v165_v32  ;;  %v938_v39 = vpack.c.bf16 %v44_v36, %v42_v35  ;;  %v172_v40 = vld [vmem:[%s2279_s1 + $0x478] sm:$0xff]  ;;  %v41_v41 = vld [vmem:[%s2279_s1 + $0x60] sm:$0xff]  ;;  %v43_v42 = vld [vmem:[%s2279_s1 + $0x70] sm:$0xff] }
   0xb   :  { %1063 = vmatprep.subr.bf16.mxu0 %v1062_v30  ;;  %v1066_v43 = vpack.c.bf16 %v172_v40, %v170_v37  ;;  %v169_v44 = vld [vmem:[%s2279_s1 + $0x460] sm:$0xff]  ;;  %v171_v45 = vld [vmem:[%s2279_s1 + $0x470] sm:$0xff]  ;;  %v46_v46 = vld [vmem:[%s2279_s1 + $0x88] sm:$0xff]  ;;  %v940_v50 = vpack.c.bf16 %v43_v42, %v41_v41 }
   0xc   :  { %v48_v47 = vld [vmem:[%s2279_s1 + $0x98] sm:$0xff]  ;;  %v174_v48 = vld [vmem:[%s2279_s1 + $0x488] sm:$0xff]  ;;  %v1068_v51 = vpack.c.bf16 %v171_v45, %v169_v44  ;;  %v45_v53 = vld [vmem:[%s2279_s1 + $0x80] sm:$0xff] }
   0xd   :  { %v176_v49 = vld [vmem:[%s2279_s1 + $0x498] sm:$0xff]  ;;  %937 = vmatpush1.bf16.msra.mxu1 %v936_v34  ;;  %v942_v52 = vpack.c.bf16 %v48_v47, %v46_v46  ;;  %v47_v54 = vld [vmem:[%s2279_s1 + $0x90] sm:$0xff]  ;;  %v173_v55 = vld [vmem:[%s2279_s1 + $0x480] sm:$0xff]  ;;  %v287_v46 = vlaneseq  ;;  %v1268_v47 = vmov 1983009808  }
   0xe   :  { %1065 = vmatpush1.bf16.msra.mxu0 %v1064_v38  ;;  %939 = vmatprep.subr.bf16.mxu1 %v938_v39  ;;  %v1070_v56 = vpack.c.bf16 %v176_v49, %v174_v48  ;;  %v175_v57 = vld [vmem:[%s2279_s1 + $0x490] sm:$0xff]  ;;  %v50_v58 = vld [vmem:[%s2279_s1 + $0xa8] sm:$0xff]  ;;  %v52_v59 = vld [vmem:[%s2279_s1 + $0xb8] sm:$0xff]  ;;  %v944_v62 = vpack.c.bf16 %v47_v54, %v45_v53  ;;  %v301_v48 = vunpack.c.l.s4 %v1268_v47 }
   0xf   :  { %1067 = vmatprep.subr.bf16.mxu0 %v1066_v43  ;;  %v178_v60 = vld [vmem:[%s2279_s1 + $0x4a8] sm:$0xff]  ;;  %v180_v61 = vld [vmem:[%s2279_s1 + $0x4b8] sm:$0xff]  ;;  %v1072_v63 = vpack.c.bf16 %v175_v57, %v173_v55  ;;  %v946_v0 = vpack.c.bf16 %v52_v59, %v50_v58  ;;  %v49_v1 = vld [vmem:[%s2279_s1 + $0xa0] sm:$0xff] }
  0x10   :  { %v51_v2 = vld [vmem:[%s2279_s1 + $0xb0] sm:$0xff]  ;;  %v177_v3 = vld [vmem:[%s2279_s1 + $0x4a0] sm:$0xff]  ;;  %v1074_v4 = vpack.c.bf16 %v180_v61, %v178_v60  ;;  %v54_v6 = vld [vmem:[%s2279_s1 + $0xc8] sm:$0xff]  ;;  %v1565_v61 = vshrl.u32 %v287_v46, 7 }
  0x11   :  { %941 = vmatpush1.bf16.msra.mxu1 %v940_v50  ;;  %v179_v5 = vld [vmem:[%s2279_s1 + $0x4b0] sm:$0xff]  ;;  %v56_v7 = vld [vmem:[%s2279_s1 + $0xd8] sm:$0xff]  ;;  %v182_v8 = vld [vmem:[%s2279_s1 + $0x4c8] sm:$0xff]  ;;  %v948_v10 = vpack.c.bf16 %v51_v2, %v49_v1 }
  0x12   :  { %1069 = vmatpush1.bf16.msra.mxu0 %v1068_v51  ;;  %943 = vmatprep.subr.bf16.mxu1 %v942_v52  ;;  %v184_v9 = vld [vmem:[%s2279_s1 + $0x4d8] sm:$0xff]  ;;  %v1076_v11 = vpack.c.bf16 %v179_v5, %v177_v3  ;;  %v950_v12 = vpack.c.bf16 %v56_v7, %v54_v6  ;;  %v53_v13 = vld [vmem:[%s2279_s1 + $0xc0] sm:$0xff]  ;;  %v55_v14 = vld [vmem:[%s2279_s1 + $0xd0] sm:$0xff] }
  0x13   :  { %1071 = vmatprep.subr.bf16.mxu0 %v1070_v56  ;;  %v181_v15 = vld [vmem:[%s2279_s1 + $0x4c0] sm:$0xff]  ;;  %v1078_v16 = vpack.c.bf16 %v184_v9, %v182_v8  ;;  %v183_v17 = vld [vmem:[%s2279_s1 + $0x4d0] sm:$0xff]  ;;  %v58_v18 = vld [vmem:[%s2279_s1 + $0xe8] sm:$0xff]  ;;  %v952_v22 = vpack.c.bf16 %v55_v14, %v53_v13 }
  0x14   :  { %v60_v19 = vld [vmem:[%s2279_s1 + $0xf8] sm:$0xff]  ;;  %v186_v20 = vld [vmem:[%s2279_s1 + $0x4e8] sm:$0xff]  ;;  %v1080_v23 = vpack.c.bf16 %v183_v17, %v181_v15  ;;  %v57_v25 = vld [vmem:[%s2279_s1 + $0xe0] sm:$0xff] }
  0x15   :  { %945 = vmatpush1.bf16.msra.mxu1 %v944_v62  ;;  %v188_v21 = vld [vmem:[%s2279_s1 + $0x4f8] sm:$0xff]  ;;  %v954_v24 = vpack.c.bf16 %v60_v19, %v58_v18  ;;  %v59_v26 = vld [vmem:[%s2279_s1 + $0xf0] sm:$0xff]  ;;  %v185_v27 = vld [vmem:[%s2279_s1 + $0x4e0] sm:$0xff]  ;;  %v302_v62 = vunpack.c.0.s8 %v301_v48 }
  0x16   :  { %1073 = vmatpush1.bf16.msra.mxu0 %v1072_v63  ;;  %947 = vmatprep.subr.bf16.mxu1 %v946_v0  ;;  %v1082_v28 = vpack.c.bf16 %v188_v21, %v186_v20  ;;  %v187_v29 = vld [vmem:[%s2279_s1 + $0x4f0] sm:$0xff]  ;;  %v62_v30 = vld [vmem:[%s2279_s1 + $0x108] sm:$0xff]  ;;  %v64_v31 = vld [vmem:[%s2279_s1 + $0x118] sm:$0xff]  ;;  %v956_v34 = vpack.c.bf16 %v59_v26, %v57_v25 }
  0x17   :  { %1075 = vmatprep.subr.bf16.mxu0 %v1074_v4  ;;  %v190_v32 = vld [vmem:[%s2279_s1 + $0x508] sm:$0xff]  ;;  %v192_v33 = vld [vmem:[%s2279_s1 + $0x518] sm:$0xff]  ;;  %v1084_v35 = vpack.c.bf16 %v187_v29, %v185_v27  ;;  %v958_v36 = vpack.c.bf16 %v64_v31, %v62_v30  ;;  %v61_v37 = vld [vmem:[%s2279_s1 + $0x100] sm:$0xff] }
  0x18   :  { %v63_v38 = vld [vmem:[%s2279_s1 + $0x110] sm:$0xff]  ;;  %v189_v39 = vld [vmem:[%s2279_s1 + $0x500] sm:$0xff]  ;;  %v1086_v40 = vpack.c.bf16 %v192_v33, %v190_v32  ;;  %v66_v42 = vld [vmem:[%s2279_s1 + $0x128] sm:$0xff] }
  0x19   :  { %949 = vmatpush1.bf16.msra.mxu1 %v948_v10  ;;  %v191_v41 = vld [vmem:[%s2279_s1 + $0x510] sm:$0xff]  ;;  %v68_v43 = vld [vmem:[%s2279_s1 + $0x138] sm:$0xff]  ;;  %v194_v44 = vld [vmem:[%s2279_s1 + $0x528] sm:$0xff]  ;;  %v960_v49 = vpack.c.bf16 %v63_v38, %v61_v37 }
  0x1a   :  { %1077 = vmatpush1.bf16.msra.mxu0 %v1076_v11  ;;  %951 = vmatprep.subr.bf16.mxu1 %v950_v12  ;;  %v196_v45 = vld [vmem:[%s2279_s1 + $0x538] sm:$0xff]  ;;  %v1088_v50 = vpack.c.bf16 %v191_v41, %v189_v39  ;;  %v962_v51 = vpack.c.bf16 %v68_v43, %v66_v42  ;;  %v65_v52 = vld [vmem:[%s2279_s1 + $0x120] sm:$0xff]  ;;  %v67_v53 = vld [vmem:[%s2279_s1 + $0x130] sm:$0xff]  ;;  %v1592_v11 = vsub.s32 %v302_v62, %v1565_v61 }
  0x1b   :  { %1079 = vmatprep.subr.bf16.mxu0 %v1078_v16  ;;  %v193_v54 = vld [vmem:[%s2279_s1 + $0x520] sm:$0xff]  ;;  %v1090_v55 = vpack.c.bf16 %v196_v45, %v194_v44  ;;  %v195_v56 = vld [vmem:[%s2279_s1 + $0x530] sm:$0xff]  ;;  %v70_v57 = vld [vmem:[%s2279_s1 + $0x148] sm:$0xff]  ;;  %v964_v63 = vpack.c.bf16 %v67_v53, %v65_v52 }
  0x1c   :  { %v72_v58 = vld [vmem:[%s2279_s1 + $0x158] sm:$0xff]  ;;  %v198_v59 = vld [vmem:[%s2279_s1 + $0x548] sm:$0xff]  ;;  %v1092_v0 = vpack.c.bf16 %v195_v56, %v193_v54  ;;  %v69_v2 = vld [vmem:[%s2279_s1 + $0x140] sm:$0xff] }
  0x1d   :  { %953 = vmatpush1.bf16.msra.mxu1 %v952_v22  ;;  %v200_v60 = vld [vmem:[%s2279_s1 + $0x558] sm:$0xff]  ;;  %v966_v1 = vpack.c.bf16 %v72_v58, %v70_v57  ;;  %v71_v3 = vld [vmem:[%s2279_s1 + $0x150] sm:$0xff]  ;;  %v197_v4 = vld [vmem:[%s2279_s1 + $0x540] sm:$0xff] }
  0x1e   :  { %1081 = vmatpush1.bf16.msra.mxu0 %v1080_v23  ;;  %955 = vmatprep.subr.bf16.mxu1 %v954_v24  ;;  %v1094_v5 = vpack.c.bf16 %v200_v60, %v198_v59  ;;  %v199_v6 = vld [vmem:[%s2279_s1 + $0x550] sm:$0xff]  ;;  %v74_v7 = vld [vmem:[%s2279_s1 + $0x168] sm:$0xff]  ;;  %v76_v8 = vld [vmem:[%s2279_s1 + $0x178] sm:$0xff]  ;;  %v968_v12 = vpack.c.bf16 %v71_v3, %v69_v2 }
  0x1f   :  { %1083 = vmatprep.subr.bf16.mxu0 %v1082_v28  ;;  %v202_v9 = vld [vmem:[%s2279_s1 + $0x568] sm:$0xff]  ;;  %v204_v10 = vld [vmem:[%s2279_s1 + $0x578] sm:$0xff]  ;;  %v73_v13 = vld [vmem:[%s2279_s1 + $0x160] sm:$0xff]  ;;  %v1096_v14 = vpack.c.bf16 %v199_v6, %v197_v4  ;;  %v970_v15 = vpack.c.bf16 %v76_v8, %v74_v7 }
  0x20   :  { %v75_v16 = vld [vmem:[%s2279_s1 + $0x170] sm:$0xff]  ;;  %v201_v17 = vld [vmem:[%s2279_s1 + $0x560] sm:$0xff]  ;;  %v1098_v19 = vpack.c.bf16 %v204_v10, %v202_v9  ;;  %v78_v20 = vld [vmem:[%s2279_s1 + $0x188] sm:$0xff] }
  0x21   :  { %957 = vmatpush1.bf16.msra.mxu1 %v956_v34  ;;  %v203_v18 = vld [vmem:[%s2279_s1 + $0x570] sm:$0xff]  ;;  %v80_v21 = vld [vmem:[%s2279_s1 + $0x198] sm:$0xff]  ;;  %v1615_v22 = vld [vmem:[%s2278_s0] sm:$0xff]  ;;  %v972_v27 = vpack.c.bf16 %v75_v16, %v73_v13 }
  0x22   :  { %1085 = vmatpush1.bf16.msra.mxu0 %v1084_v35  ;;  %959 = vmatprep.subr.bf16.mxu1 %v958_v36  ;;  %v206_v23 = vld [vmem:[%s2279_s1 + $0x588] sm:$0xff]  ;;  %v208_v24 = vld [vmem:[%s2279_s1 + $0x598] sm:$0xff]  ;;  %v1625_v25 = vrot.slane %v1615_v22, %v1592_v11  ;;  %v1100_v29 = vpack.c.bf16 %v203_v18, %v201_v17  ;;  %v974_v30 = vpack.c.bf16 %v80_v21, %v78_v20  ;;  %v77_v31 = vld [vmem:[%s2279_s1 + $0x180] sm:$0xff] }
  0x23   :  { %1087 = vmatprep.subr.bf16.mxu0 %v1086_v40  ;;  %v1630_v26 = vld [vmem:[%s2278_s0 + $0x8] sm:$0xff]  ;;  %v79_v32 = vld [vmem:[%s2279_s1 + $0x190] sm:$0xff]  ;;  %v205_v33 = vld [vmem:[%s2279_s1 + $0x580] sm:$0xff]  ;;  %v1102_v35 = vpack.c.bf16 %v208_v24, %v206_v23 }
  0x24   :  { %v1634_v28 = vrot.slane %v1630_v26, %v1592_v11  ;;  %v314_v34 = vcombine.high %v1625_v25, %v1625_v25  ;;  %v207_v36 = vld [vmem:[%s2279_s1 + $0x590] sm:$0xff]  ;;  %v82_v37 = vld [vmem:[%s2279_s1 + $0x1a8] sm:$0xff]  ;;  %v84_v38 = vld [vmem:[%s2279_s1 + $0x1b8] sm:$0xff]  ;;  %v976_v42 = vpack.c.bf16 %v79_v32, %v77_v31 }
  0x25   :  { %961 = vmatpush1.bf16.msra.mxu1 %v960_v49  ;;  %v210_v40 = vld [vmem:[%s2279_s1 + $0x5a8] sm:$0xff]  ;;  %v212_v41 = vld [vmem:[%s2279_s1 + $0x5b8] sm:$0xff]  ;;  %v1104_v43 = vpack.c.bf16 %v207_v36, %v205_v33  ;;  %v978_v44 = vpack.c.bf16 %v84_v38, %v82_v37  ;;  %v81_v45 = vld [vmem:[%s2279_s1 + $0x1a0] sm:$0xff] }
  0x26   :  { %1089 = vmatpush1.bf16.msra.mxu0 %v1088_v50  ;;  %963 = vmatprep.subr.bf16.mxu1 %v962_v51  ;;  %v331_v39 = vcombine.high %v1634_v28, %v1634_v28  ;;  %v83_v46 = vld [vmem:[%s2279_s1 + $0x1b0] sm:$0xff]  ;;  %v209_v47 = vld [vmem:[%s2279_s1 + $0x5a0] sm:$0xff]  ;;  %v1106_v48 = vpack.c.bf16 %v212_v41, %v210_v40  ;;  %v86_v50 = vld [vmem:[%s2279_s1 + $0x1c8] sm:$0xff] }
  0x27   :  { %1091 = vmatprep.subr.bf16.mxu0 %v1090_v55  ;;  %405 = vmatprep.mubr.f32.mxu1 %v314_v34  ;;  %v211_v49 = vld [vmem:[%s2279_s1 + $0x5b0] sm:$0xff]  ;;  %v88_v51 = vld [vmem:[%s2279_s1 + $0x1d8] sm:$0xff]  ;;  %v214_v52 = vld [vmem:[%s2279_s1 + $0x5c8] sm:$0xff]  ;;  %v980_v54 = vpack.c.bf16 %v83_v46, %v81_v45 }
  0x28   :  { %547 = vmatprep.mubr.f32.mxu0 %v331_v39  ;;  %v216_v53 = vld [vmem:[%s2279_s1 + $0x5d8] sm:$0xff]  ;;  %v1108_v55 = vpack.c.bf16 %v211_v49, %v209_v47  ;;  %v982_v56 = vpack.c.bf16 %v88_v51, %v86_v50  ;;  %v85_v57 = vld [vmem:[%s2279_s1 + $0x1c0] sm:$0xff]  ;;  %v87_v58 = vld [vmem:[%s2279_s1 + $0x1d0] sm:$0xff] }
  0x29   :  { %965 = vmatpush1.bf16.msra.mxu1 %v964_v63  ;;  %v213_v59 = vld [vmem:[%s2279_s1 + $0x5c0] sm:$0xff]  ;;  %v1110_v60 = vpack.c.bf16 %v216_v53, %v214_v52  ;;  %v215_v62 = vld [vmem:[%s2279_s1 + $0x5d0] sm:$0xff]  ;;  %v90_v63 = vld [vmem:[%s2279_s1 + $0x1e8] sm:$0xff]  ;;  %v984_v3 = vpack.c.bf16 %v87_v58, %v85_v57 }
  0x2a   :  { %1093 = vmatpush1.bf16.msra.mxu0 %v1092_v0  ;;  %967 = vmatprep.subr.bf16.mxu1 %v966_v1  ;;  %v92_v0 = vld [vmem:[%s2279_s1 + $0x1f8] sm:$0xff]  ;;  %v218_v1 = vld [vmem:[%s2279_s1 + $0x5e8] sm:$0xff]  ;;  %v1112_v4 = vpack.c.bf16 %v215_v62, %v213_v59  ;;  %v89_v6 = vld [vmem:[%s2279_s1 + $0x1e0] sm:$0xff] }
  0x2b   :  { %1095 = vmatprep.subr.bf16.mxu0 %v1094_v5  ;;  %v220_v2 = vld [vmem:[%s2279_s1 + $0x5f8] sm:$0xff]  ;;  %v986_v5 = vpack.c.bf16 %v92_v0, %v90_v63  ;;  %v91_v7 = vld [vmem:[%s2279_s1 + $0x1f0] sm:$0xff]  ;;  %v217_v8 = vld [vmem:[%s2279_s1 + $0x5e0] sm:$0xff] }
  0x2c   :  { %v1114_v9 = vpack.c.bf16 %v220_v2, %v218_v1  ;;  %v219_v10 = vld [vmem:[%s2279_s1 + $0x5f0] sm:$0xff]  ;;  %v94_v13 = vld [vmem:[%s2279_s1 + $0x208] sm:$0xff]  ;;  %v224_v17 = vld [vmem:[%s2279_s1 + $0x618] sm:$0xff]  ;;  %v988_v18 = vpack.c.bf16 %v91_v7, %v89_v6 }
  0x2d   :  { %969 = vmatpush1.bf16.msra.mxu1 %v968_v12  ;;  %v299_v12 = vcombine.high %v1615_v22, %v1615_v22  ;;  %v222_v16 = vld [vmem:[%s2279_s1 + $0x608] sm:$0xff]  ;;  %v93_v21 = vld [vmem:[%s2279_s1 + $0x200] sm:$0xff]  ;;  %v95_v22 = vld [vmem:[%s2279_s1 + $0x210] sm:$0xff] }
  0x2e   :  { %1097 = vmatpush1.bf16.msra.mxu0 %v1096_v14  ;;  %971 = vmatprep.subr.bf16.mxu1 %v970_v15  ;;  %v96_v14 = vld [vmem:[%s2279_s1 + $0x218] sm:$0xff]  ;;  %v316_v15 = vcombine.high %v1630_v26, %v1630_v26  ;;  %v221_v23 = vld [vmem:[%s2279_s1 + $0x600] sm:$0xff]  ;;  %v1118_v24 = vpack.c.bf16 %v224_v17, %v222_v16  ;;  %v223_v26 = vld [vmem:[%s2279_s1 + $0x610] sm:$0xff]  ;;  %v992_v34 = vpack.c.bf16 %v95_v22, %v93_v21 }
  0x2f   :  { %1099 = vmatprep.subr.bf16.mxu0 %v1098_v19  ;;  %v1116_v19 = vpack.c.bf16 %v219_v10, %v217_v8  ;;  %v990_v20 = vpack.c.bf16 %v96_v14, %v94_v13  ;;  %v226_v31 = vld [vmem:[%s2279_s1 + $0x628] sm:$0xff]  ;;  %v228_v32 = vld [vmem:[%s2279_s1 + $0x638] sm:$0xff]  ;;  %v97_v37 = vld [vmem:[%s2279_s1 + $0x220] sm:$0xff] }
  0x30   :  { %v1768_v33 = vrot.slane %v316_v15, %v1592_v11  ;;  %v99_v38 = vld [vmem:[%s2279_s1 + $0x230] sm:$0xff]  ;;  %v225_v39 = vld [vmem:[%s2279_s1 + $0x620] sm:$0xff]  ;;  %v102_v41 = vld [vmem:[%s2279_s1 + $0x248] sm:$0xff] }
  0x31   :  { %973 = vmatpush1.bf16.msra.mxu1 %v972_v27  ;;  %v98_v27 = vld [vmem:[%s2279_s1 + $0x228] sm:$0xff]  ;;  %v227_v40 = vld [vmem:[%s2279_s1 + $0x630] sm:$0xff]  ;;  %v232_v45 = vld [vmem:[%s2279_s1 + $0x658] sm:$0xff]  ;;  %v996_v47 = vpack.c.bf16 %v99_v38, %v97_v37 }
  0x32   :  { %1101 = vmatpush1.bf16.msra.mxu0 %v1100_v29  ;;  %975 = vmatprep.subr.bf16.mxu1 %v974_v30  ;;  %v100_v29 = vld [vmem:[%s2279_s1 + $0x238] sm:$0xff]  ;;  %v1759_v30 = vrot.slane %v299_v12, %v1592_v11  ;;  %v1122_v11 = vpack.c.bf16 %v228_v32, %v226_v31  ;;  %v332_v46 = vcombine.high %v1768_v33, %v1768_v33  ;;  %v103_v50 = vld [vmem:[%s2279_s1 + $0x250] sm:$0xff]  ;;  %v229_v51 = vld [vmem:[%s2279_s1 + $0x640] sm:$0xff] }
  0x33   :  { %1103 = vmatprep.subr.bf16.mxu0 %v1102_v35  ;;  %v1120_v35 = vpack.c.bf16 %v223_v26, %v221_v23  ;;  %v994_v36 = vpack.c.bf16 %v100_v29, %v98_v27  ;;  %v106_v53 = vld [vmem:[%s2279_s1 + $0x268] sm:$0xff]  ;;  %v107_v62 = vld [vmem:[%s2279_s1 + $0x270] sm:$0xff]  ;;  %v233_v63 = vld [vmem:[%s2279_s1 + $0x660] sm:$0xff] }
  0x34   :  { %v235_v1 = vld [vmem:[%s2279_s1 + $0x670] sm:$0xff]  ;;  %v110_v2 = vld [vmem:[%s2279_s1 + $0x288] sm:$0xff]  ;;  %v237_v12 = vld [vmem:[%s2279_s1 + $0x680] sm:$0xff] }
  0x35   :  { %977 = vmatpush1.bf16.msra.mxu1 %v976_v42  ;;  %v104_v42 = vld [vmem:[%s2279_s1 + $0x258] sm:$0xff]  ;;  %v1132_v7 = vpack.c.bf16 %v235_v1, %v233_v63  ;;  %v111_v10 = vld [vmem:[%s2279_s1 + $0x290] sm:$0xff]  ;;  %v114_v15 = vld [vmem:[%s2279_s1 + $0x2a8] sm:$0xff] }
  0x36   :  { %1105 = vmatpush1.bf16.msra.mxu0 %v1104_v43  ;;  %979 = vmatprep.subr.bf16.mxu1 %v978_v44  ;;  %v315_v43 = vcombine.high %v1759_v30, %v1759_v30  ;;  %v230_v44 = vld [vmem:[%s2279_s1 + $0x648] sm:$0xff]  ;;  %v998_v49 = vpack.c.bf16 %v104_v42, %v102_v41  ;;  %v239_v14 = vld [vmem:[%s2279_s1 + $0x690] sm:$0xff]  ;;  %v116_v16 = vld [vmem:[%s2279_s1 + $0x2b8] sm:$0xff] }
  0x37   :  { %1107 = vmatprep.subr.bf16.mxu0 %v1106_v48  ;;  %v1124_v48 = vpack.c.bf16 %v227_v40, %v225_v39  ;;  %v1126_v52 = vpack.c.bf16 %v232_v45, %v230_v44  ;;  %v242_v17 = vld [vmem:[%s2279_s1 + $0x6a8] sm:$0xff]  ;;  %v1010_v21 = vpack.c.bf16 %v116_v16, %v114_v15  ;;  %v113_v22 = vld [vmem:[%s2279_s1 + $0x2a0] sm:$0xff]  ;;  %v115_v23 = vld [vmem:[%s2279_s1 + $0x2b0] sm:$0xff] }
  0x38   :  { %v243_v27 = vld [vmem:[%s2279_s1 + $0x6b0] sm:$0xff]  ;;  %v118_v29 = vld [vmem:[%s2279_s1 + $0x2c8] sm:$0xff]  ;;  %v120_v31 = vld [vmem:[%s2279_s1 + $0x2d8] sm:$0xff] }
  0x39   :  { %981 = vmatpush1.bf16.msra.mxu1 %v980_v54  ;;  %v108_v54 = vld [vmem:[%s2279_s1 + $0x278] sm:$0xff]  ;;  %v246_v32 = vld [vmem:[%s2279_s1 + $0x6c8] sm:$0xff]  ;;  %v1014_v37 = vpack.c.bf16 %v120_v31, %v118_v29  ;;  %v117_v38 = vld [vmem:[%s2279_s1 + $0x2c0] sm:$0xff] }
  0x3a   :  { %1109 = vmatpush1.bf16.msra.mxu0 %v1108_v55  ;;  %983 = vmatprep.subr.bf16.mxu1 %v982_v56  ;;  %v234_v55 = vld [vmem:[%s2279_s1 + $0x668] sm:$0xff]  ;;  %v236_v56 = vld [vmem:[%s2279_s1 + $0x678] sm:$0xff]  ;;  %v1002_v59 = vpack.c.bf16 %v108_v54, %v106_v53  ;;  %v119_v39 = vld [vmem:[%s2279_s1 + $0x2d0] sm:$0xff] }
  0x3b   :  { %1111 = vmatprep.subr.bf16.mxu0 %v1110_v60  ;;  %v105_v60 = vld [vmem:[%s2279_s1 + $0x260] sm:$0xff]  ;;  %v1130_v0 = vpack.c.bf16 %v236_v56, %v234_v55  ;;  %v247_v41 = vld [vmem:[%s2279_s1 + $0x6d0] sm:$0xff]  ;;  %v122_v42 = vld [vmem:[%s2279_s1 + $0x2e8] sm:$0xff] }
  0x3c   :  { %v1004_v6 = vpack.c.bf16 %v107_v62, %v105_v60  ;;  %v250_v44 = vld [vmem:[%s2279_s1 + $0x6e8] sm:$0xff]  ;;  %v252_v45 = vld [vmem:[%s2279_s1 + $0x6f8] sm:$0xff]  ;;  %v127_v60 = vld [vmem:[%s2279_s1 + $0x310] sm:$0xff] }
  0x3d   :  { %985 = vmatpush1.bf16.msra.mxu1 %v984_v3  ;;  %v112_v3 = vld [vmem:[%s2279_s1 + $0x298] sm:$0xff]  ;;  %v254_v54 = vld [vmem:[%s2279_s1 + $0x708] sm:$0xff]  ;;  %v253_v62 = vld [vmem:[%s2279_s1 + $0x700] sm:$0xff] }
  0x3e   :  { %1113 = vmatpush1.bf16.msra.mxu0 %v1112_v4  ;;  %987 = vmatprep.subr.bf16.mxu1 %v986_v5  ;;  %v238_v4 = vld [vmem:[%s2279_s1 + $0x688] sm:$0xff]  ;;  %v240_v5 = vld [vmem:[%s2279_s1 + $0x698] sm:$0xff]  ;;  %v1006_v8 = vpack.c.bf16 %v112_v3, %v110_v2  ;;  %v255_v63 = vld [vmem:[%s2279_s1 + $0x710] sm:$0xff] }
  0x3f   :  { %1115 = vmatprep.subr.bf16.mxu0 %v1114_v9  ;;  %v109_v9 = vld [vmem:[%s2279_s1 + $0x280] sm:$0xff]  ;;  %v1134_v13 = vpack.c.bf16 %v240_v5, %v238_v4  ;;  %v128_v53 = vld [vmem:[%s2279_s1 + $0x318] sm:$0xff]  ;;  %v130_v1 = vld [vmem:[%s2279_s1 + $0x328] sm:$0xff] }
  0x40   :  { %v256_v55 = vld [vmem:[%s2279_s1 + $0x718] sm:$0xff] }
  0x41   :  { %989 = vmatpush1.bf16.msra.mxu1 %v988_v18  ;;  %v244_v18 = vld [vmem:[%s2279_s1 + $0x6b8] sm:$0xff] }
  0x42   :  { %1117 = vmatpush1.bf16.msra.mxu0 %v1116_v19  ;;  %991 = vmatprep.subr.bf16.mxu1 %v990_v20  ;;  %v1008_v19 = vpack.c.bf16 %v111_v10, %v109_v9  ;;  %v1136_v20 = vpack.c.bf16 %v239_v14, %v237_v12  ;;  %v1138_v26 = vpack.c.bf16 %v244_v18, %v242_v17  ;;  %v132_v2 = vld [vmem:[%s2279_s1 + $0x338] sm:$0xff] }
  0x43   :  { %1119 = vmatprep.subr.bf16.mxu0 %v1118_v24  ;;  %v241_v24 = vld [vmem:[%s2279_s1 + $0x6a0] sm:$0xff] }
  0x44   :  { %406 = vmatmul.mubr.f32.vlgmr.msra.gmra.mrb[0].mxu1 %v1625_v25  ;;  %v101_v25 = vld [vmem:[%s2279_s1 + $0x240] sm:$0xff] }
  0x45   :  { %993 = vmatpush1.bf16.msra.mxu1 %v992_v34  ;;  %548 = vmatmul.mubr.f32.vlgmr.msra.gmra.mrb[0].mxu0 %v1634_v28  ;;  %v231_v28 = vld [vmem:[%s2279_s1 + $0x650] sm:$0xff]  ;;  %v1000_v57 = vpack.c.bf16 %v103_v50, %v101_v25  ;;  %v248_v34 = vld [vmem:[%s2279_s1 + $0x6d8] sm:$0xff]  ;;  %v249_v50 = vld [vmem:[%s2279_s1 + $0x6e0] sm:$0xff] }
  0x46   :  { %1121 = vmatpush1.bf16.msra.mxu0 %v1120_v35  ;;  %995 = vmatprep.subr.bf16.mxu1 %v994_v36  ;;  %v1128_v58 = vpack.c.bf16 %v231_v28, %v229_v51  ;;  %v1012_v35 = vpack.c.bf16 %v115_v23, %v113_v22  ;;  %v1140_v36 = vpack.c.bf16 %v243_v27, %v241_v24  ;;  %v123_v25 = vld [vmem:[%s2279_s1 + $0x2f0] sm:$0xff]  ;;  %v126_v28 = vld [vmem:[%s2279_s1 + $0x308] sm:$0xff] }
  0x47   :  { %1123 = vmatprep.subr.bf16.mxu0 %v1122_v11  ;;  %476 = vmatprep.mubr.f32.mxu1 %v315_v43  ;;  %v245_v11 = vld [vmem:[%s2279_s1 + $0x6c0] sm:$0xff]  ;;  %v1142_v40 = vpack.c.bf16 %v248_v34, %v246_v32  ;;  %v124_v43 = vld [vmem:[%s2279_s1 + $0x2f8] sm:$0xff]  ;;  %v1146_v51 = vpack.c.bf16 %v252_v45, %v250_v44 }
  0x48   :  { %618 = vmatprep.mubr.f32.mxu0 %v332_v46  ;;  %v1016_v46 = vpack.c.bf16 %v119_v39, %v117_v38 }
  0x49   :  { %997 = vmatpush1.bf16.msra.mxu1 %v996_v47  ;;  %v1144_v47 = vpack.c.bf16 %v247_v41, %v245_v11 }
  0x4a   :  { %1125 = vmatpush1.bf16.msra.mxu0 %v1124_v48  ;;  %999 = vmatprep.subr.bf16.mxu1 %v998_v49  ;;  %v1018_v48 = vpack.c.bf16 %v124_v43, %v122_v42  ;;  %v121_v49 = vld [vmem:[%s2279_s1 + $0x2e0] sm:$0xff] }
  0x4b   :  { %1127 = vmatprep.subr.bf16.mxu0 %v1126_v52  ;;  %v251_v52 = vld [vmem:[%s2279_s1 + $0x6f0] sm:$0xff]  ;;  %v1020_v56 = vpack.c.bf16 %v123_v25, %v121_v49 }
  0x4d   :  { %1001 = vmatpush1.bf16.msra.mxu1 %v1000_v57  ;;  %v125_v57 = vld [vmem:[%s2279_s1 + $0x300] sm:$0xff] }
  0x4e   :  { %1129 = vmatpush1.bf16.msra.mxu0 %v1128_v58  ;;  %1003 = vmatprep.subr.bf16.mxu1 %v1002_v59  ;;  %v1148_v58 = vpack.c.bf16 %v251_v52, %v249_v50  ;;  %v1022_v59 = vpack.c.bf16 %v128_v53, %v126_v28 }
  0x4f   :  { %1131 = vmatprep.subr.bf16.mxu0 %v1130_v0  ;;  %v1150_v0 = vpack.c.bf16 %v256_v55, %v254_v54 }
  0x51   :  { %1005 = vmatpush1.bf16.msra.mxu1 %v1004_v6 }
  0x52   :  { %1133 = vmatpush1.bf16.msra.mxu0 %v1132_v7  ;;  %1007 = vmatprep.subr.bf16.mxu1 %v1006_v8 }
  0x53   :  { %1135 = vmatprep.subr.bf16.mxu0 %v1134_v13 }
  0x55   :  { %1009 = vmatpush1.bf16.msra.mxu1 %v1008_v19 }
  0x56   :  { %1137 = vmatpush1.bf16.msra.mxu0 %v1136_v20  ;;  %1011 = vmatprep.subr.bf16.mxu1 %v1010_v21 }
  0x57   :  { %1139 = vmatprep.subr.bf16.mxu0 %v1138_v26 }
  0x59   :  { %1013 = vmatpush1.bf16.msra.mxu1 %v1012_v35 }
  0x5a   :  { %1141 = vmatpush1.bf16.msra.mxu0 %v1140_v36  ;;  %1015 = vmatprep.subr.bf16.mxu1 %v1014_v37 }
  0x5b   :  { %1143 = vmatprep.subr.bf16.mxu0 %v1142_v40 }
  0x5d   :  { %1017 = vmatpush1.bf16.msra.mxu1 %v1016_v46 }
  0x5e   :  { %1145 = vmatpush1.bf16.msra.mxu0 %v1144_v47  ;;  %1019 = vmatprep.subr.bf16.mxu1 %v1018_v48 }
  0x5f   :  { %1147 = vmatprep.subr.bf16.mxu0 %v1146_v51 }
  0x60   :  { %12 = vsyncpa [#allocation3], 0  ;;  %v258_v3 = vld [vmem:[%s2279_s1 + $0x728] sm:$0xff]  ;;  %v260_v4 = vld [vmem:[%s2279_s1 + $0x738] sm:$0xff]  ;;  %v1024_v5 = vpack.c.bf16 %v127_v60, %v125_v57  ;;  %v1152_v6 = vpack.c.bf16 %v255_v63, %v253_v62  ;;  %v1026_v7 = vpack.c.bf16 %v132_v2, %v130_v1  ;;  %vm759_vm0 = vcmask 1043456  }
  0x61   :  { %1021 = vmatpush1.bf16.msra.mxu1 %v1020_v56  ;;  %v129_v8 = vld [vmem:[%s2279_s1 + $0x320] sm:$0xff]  ;;  %v131_v9 = vld [vmem:[%s2279_s1 + $0x330] sm:$0xff]  ;;  %v1154_v12 = vpack.c.bf16 %v260_v4, %v258_v3  ;;  %v134_v14 = vld [vmem:[%s2279_s1 + $0x348] sm:$0xff]  ;;  %vm1271_vm1 = vmmov 0   ;;  %vm755_vm2 = vcmask 687104   ;;  %vm834_vm3 = vcmask 25600  }
  0x62   :  { %1149 = vmatpush1.bf16.msra.mxu0 %v1148_v58  ;;  %1023 = vmatprep.subr.bf16.mxu1 %v1022_v59  ;;  %v257_v10 = vld [vmem:[%s2279_s1 + $0x720] sm:$0xff]  ;;  %v259_v13 = vld [vmem:[%s2279_s1 + $0x730] sm:$0xff]  ;;  %v136_v15 = vld [vmem:[%s2279_s1 + $0x358] sm:$0xff]  ;;  %v1028_v18 = vpack.c.bf16 %v131_v9, %v129_v8 }
  0x63   :  { %1151 = vmatprep.subr.bf16.mxu0 %v1150_v0  ;;  %v262_v16 = vld [vmem:[%s2279_s1 + $0x748] sm:$0xff]  ;;  %v264_v17 = vld [vmem:[%s2279_s1 + $0x758] sm:$0xff]  ;;  %v1156_v19 = vpack.c.bf16 %v259_v13, %v257_v10  ;;  %v1030_v20 = vpack.c.bf16 %v136_v15, %v134_v14  ;;  %v133_v21 = vld [vmem:[%s2279_s1 + $0x340] sm:$0xff] }
  0x64   :  { %v135_v22 = vld [vmem:[%s2279_s1 + $0x350] sm:$0xff]  ;;  %v261_v23 = vld [vmem:[%s2279_s1 + $0x740] sm:$0xff]  ;;  %v1158_v24 = vpack.c.bf16 %v264_v17, %v262_v16  ;;  %v138_v27 = vld [vmem:[%s2279_s1 + $0x368] sm:$0xff] }
  0x65   :  { %1025 = vmatpush1.bf16.msra.mxu1 %v1024_v5  ;;  %v263_v26 = vld [vmem:[%s2279_s1 + $0x750] sm:$0xff]  ;;  %v140_v29 = vld [vmem:[%s2279_s1 + $0x378] sm:$0xff]  ;;  %v266_v31 = vld [vmem:[%s2279_s1 + $0x768] sm:$0xff]  ;;  %v1032_v34 = vpack.c.bf16 %v135_v22, %v133_v21 }
  0x66   :  { %1153 = vmatpush1.bf16.msra.mxu0 %v1152_v6  ;;  %1027 = vmatprep.subr.bf16.mxu1 %v1026_v7  ;;  %v268_v32 = vld [vmem:[%s2279_s1 + $0x778] sm:$0xff]  ;;  %v1160_v35 = vpack.c.bf16 %v263_v26, %v261_v23  ;;  %v1034_v36 = vpack.c.bf16 %v140_v29, %v138_v27  ;;  %v137_v37 = vld [vmem:[%s2279_s1 + $0x360] sm:$0xff]  ;;  %v139_v38 = vld [vmem:[%s2279_s1 + $0x370] sm:$0xff] }
  0x67   :  { %1155 = vmatprep.subr.bf16.mxu0 %v1154_v12  ;;  %v265_v39 = vld [vmem:[%s2279_s1 + $0x760] sm:$0xff]  ;;  %v1162_v11 = vpack.c.bf16 %v268_v32, %v266_v31  ;;  %v267_v40 = vld [vmem:[%s2279_s1 + $0x770] sm:$0xff]  ;;  %v142_v41 = vld [vmem:[%s2279_s1 + $0x388] sm:$0xff]  ;;  %v1036_v45 = vpack.c.bf16 %v139_v38, %v137_v37 }
  0x68   :  { %v144_v42 = vld [vmem:[%s2279_s1 + $0x398] sm:$0xff]  ;;  %v270_v43 = vld [vmem:[%s2279_s1 + $0x788] sm:$0xff]  ;;  %v1164_v46 = vpack.c.bf16 %v267_v40, %v265_v39  ;;  %v141_v48 = vld [vmem:[%s2279_s1 + $0x380] sm:$0xff] }
  0x69   :  { %1029 = vmatpush1.bf16.msra.mxu1 %v1028_v18  ;;  %v272_v44 = vld [vmem:[%s2279_s1 + $0x798] sm:$0xff]  ;;  %v1038_v47 = vpack.c.bf16 %v144_v42, %v142_v41  ;;  %v143_v49 = vld [vmem:[%s2279_s1 + $0x390] sm:$0xff]  ;;  %v269_v25 = vld [vmem:[%s2279_s1 + $0x780] sm:$0xff] }
  0x6a   :  { %1157 = vmatpush1.bf16.msra.mxu0 %v1156_v19  ;;  %1031 = vmatprep.subr.bf16.mxu1 %v1030_v20  ;;  %v1166_v50 = vpack.c.bf16 %v272_v44, %v270_v43  ;;  %v271_v51 = vld [vmem:[%s2279_s1 + $0x790] sm:$0xff]  ;;  %v146_v52 = vld [vmem:[%s2279_s1 + $0x3a8] sm:$0xff]  ;;  %v148_v28 = vld [vmem:[%s2279_s1 + $0x3b8] sm:$0xff]  ;;  %v1040_v55 = vpack.c.bf16 %v143_v49, %v141_v48 }
  0x6b   :  { %1159 = vmatprep.subr.bf16.mxu0 %v1158_v24  ;;  %v274_v53 = vld [vmem:[%s2279_s1 + $0x7a8] sm:$0xff]  ;;  %v276_v54 = vld [vmem:[%s2279_s1 + $0x7b8] sm:$0xff]  ;;  %v1168_v56 = vpack.c.bf16 %v271_v51, %v269_v25  ;;  %v1042_v57 = vpack.c.bf16 %v148_v28, %v146_v52  ;;  %v145_v58 = vld [vmem:[%s2279_s1 + $0x3a0] sm:$0xff] }
  0x6c   :  { %v147_v59 = vld [vmem:[%s2279_s1 + $0x3b0] sm:$0xff]  ;;  %v273_v60 = vld [vmem:[%s2279_s1 + $0x7a0] sm:$0xff]  ;;  %v1170_v62 = vpack.c.bf16 %v276_v54, %v274_v53  ;;  %v150_v0 = vld [vmem:[%s2279_s1 + $0x3c8] sm:$0xff] }
  0x6d   :  { %1033 = vmatpush1.bf16.msra.mxu1 %v1032_v34  ;;  %v275_v63 = vld [vmem:[%s2279_s1 + $0x7b0] sm:$0xff]  ;;  %v152_v1 = vld [vmem:[%s2279_s1 + $0x3d8] sm:$0xff]  ;;  %v278_v2 = vld [vmem:[%s2279_s1 + $0x7c8] sm:$0xff]  ;;  %v1044_v4 = vpack.c.bf16 %v147_v59, %v145_v58 }
  0x6e   :  { %1161 = vmatpush1.bf16.msra.mxu0 %v1160_v35  ;;  %1035 = vmatprep.subr.bf16.mxu1 %v1034_v36  ;;  %v280_v3 = vld [vmem:[%s2279_s1 + $0x7d8] sm:$0xff]  ;;  %v1172_v5 = vpack.c.bf16 %v275_v63, %v273_v60  ;;  %v1046_v6 = vpack.c.bf16 %v152_v1, %v150_v0  ;;  %v149_v7 = vld [vmem:[%s2279_s1 + $0x3c0] sm:$0xff]  ;;  %v151_v8 = vld [vmem:[%s2279_s1 + $0x3d0] sm:$0xff] }
  0x6f   :  { %1163 = vmatprep.subr.bf16.mxu0 %v1162_v11  ;;  %v277_v9 = vld [vmem:[%s2279_s1 + $0x7c0] sm:$0xff]  ;;  %v1174_v10 = vpack.c.bf16 %v280_v3, %v278_v2  ;;  %v279_v12 = vld [vmem:[%s2279_s1 + $0x7d0] sm:$0xff]  ;;  %v154_v13 = vld [vmem:[%s2279_s1 + $0x3e8] sm:$0xff]  ;;  %v1048_v17 = vpack.c.bf16 %v151_v8, %v149_v7 }
  0x70   :  { %v156_v14 = vld [vmem:[%s2279_s1 + $0x3f8] sm:$0xff]  ;;  %v282_v15 = vld [vmem:[%s2279_s1 + $0x7e8] sm:$0xff]  ;;  %v1176_v18 = vpack.c.bf16 %v279_v12, %v277_v9  ;;  %v153_v20 = vld [vmem:[%s2279_s1 + $0x3e0] sm:$0xff] }
  0x71   :  { %1037 = vmatpush1.bf16.msra.mxu1 %v1036_v45  ;;  %v284_v16 = vld [vmem:[%s2279_s1 + $0x7f8] sm:$0xff]  ;;  %v1050_v19 = vpack.c.bf16 %v156_v14, %v154_v13  ;;  %v155_v21 = vld [vmem:[%s2279_s1 + $0x3f0] sm:$0xff]  ;;  %v281_v23 = vld [vmem:[%s2279_s1 + $0x7e0] sm:$0xff] }
  0x72   :  { %1165 = vmatpush1.bf16.msra.mxu0 %v1164_v46  ;;  %1039 = vmatprep.subr.bf16.mxu1 %v1038_v47  ;;  %v1178_v22 = vpack.c.bf16 %v284_v16, %v282_v15  ;;  %v283_v24 = vld [vmem:[%s2279_s1 + $0x7f0] sm:$0xff]  ;;  %v643_v26 = vld [vmem:[%s2281_s3 + $0x80] sm:$0xff]  ;;  %v644_v27 = vld [vmem:[%s2281_s3 + $0x88] sm:$0xff]  ;;  %v1052_v29 = vpack.c.bf16 %v155_v21, %v153_v20  ;;  %v1269_v15 = vmov 0.0|0.0  }
  0x73   :  { %1167 = vmatprep.subr.bf16.mxu0 %v1166_v50  ;;  %v1180_v31 = vpack.c.bf16 %v283_v24, %v281_v23  ;;  %v1182_v32 = vpack.c.bf16 %v644_v27, %v643_v26  ;;  %v627_v34 = vld [vmem:[%s2281_s3] sm:$0xff]  ;;  %v628_v35 = vld [vmem:[%s2281_s3 + $0x8] sm:$0xff]  ;;  %v645_v36 = vld [vmem:[%s2281_s3 + $0x90] sm:$0xff]  ;;  %v289_v26 = vsub.s32 0, %v1565_v61 }
  0x74   :  { %v646_v37 = vld [vmem:[%s2281_s3 + $0x98] sm:$0xff]  ;;  %v1184_v38 = vpack.c.bf16 %v628_v35, %v627_v34  ;;  %v629_v11 = vld [vmem:[%s2281_s3 + $0x10] sm:$0xff]  ;;  %v647_v41 = vld [vmem:[%s2281_s3 + $0xa0] sm:$0xff] }
  0x75   :  { %1041 = vmatpush1.bf16.msra.mxu1 %v1040_v55  ;;  %v1186_v39 = vpack.c.bf16 %v646_v37, %v645_v36  ;;  %v630_v40 = vld [vmem:[%s2281_s3 + $0x18] sm:$0xff]  ;;  %v648_v42 = vld [vmem:[%s2281_s3 + $0xa8] sm:$0xff]  ;;  %v631_v45 = vld [vmem:[%s2281_s3 + $0x20] sm:$0xff] }
  0x76   :  { %1169 = vmatpush1.bf16.msra.mxu0 %v1168_v56  ;;  %1043 = vmatprep.subr.bf16.mxu1 %v1042_v57  ;;  %v1188_v43 = vpack.c.bf16 %v630_v40, %v629_v11  ;;  %v1190_v44 = vpack.c.bf16 %v648_v42, %v647_v41  ;;  %v649_v46 = vld [vmem:[%s2281_s3 + $0xb0] sm:$0xff]  ;;  %v634_v25 = vld [vmem:[%s2281_s3 + $0x38] sm:$0xff]  ;;  %v651_v50 = vld [vmem:[%s2281_s3 + $0xc0] sm:$0xff] }
  0x77   :  { %1171 = vmatprep.subr.bf16.mxu0 %v1170_v62  ;;  %v633_v49 = vld [vmem:[%s2281_s3 + $0x30] sm:$0xff]  ;;  %v652_v51 = vld [vmem:[%s2281_s3 + $0xc8] sm:$0xff]  ;;  %v635_v53 = vld [vmem:[%s2281_s3 + $0x40] sm:$0xff] }
  0x78   :  { %v1196_v52 = vpack.c.bf16 %v634_v25, %v633_v49  ;;  %v1198_v28 = vpack.c.bf16 %v652_v51, %v651_v50  ;;  %v636_v54 = vld [vmem:[%s2281_s3 + $0x48] sm:$0xff]  ;;  %v653_v55 = vld [vmem:[%s2281_s3 + $0xd0] sm:$0xff]  ;;  %v654_v56 = vld [vmem:[%s2281_s3 + $0xd8] sm:$0xff] }
  0x79   :  { %1045 = vmatpush1.bf16.msra.mxu1 %v1044_v4  ;;  %v1200_v57 = vpack.c.bf16 %v636_v54, %v635_v53  ;;  %v1202_v58 = vpack.c.bf16 %v654_v56, %v653_v55  ;;  %v637_v59 = vld [vmem:[%s2281_s3 + $0x50] sm:$0xff]  ;;  %v638_v60 = vld [vmem:[%s2281_s3 + $0x58] sm:$0xff]  ;;  %v655_v63 = vld [vmem:[%s2281_s3 + $0xe0] sm:$0xff] }
  0x7a   :  { %1173 = vmatpush1.bf16.msra.mxu0 %v1172_v5  ;;  %1047 = vmatprep.subr.bf16.mxu1 %v1046_v6  ;;  %v1204_v62 = vpack.c.bf16 %v638_v60, %v637_v59  ;;  %v656_v0 = vld [vmem:[%s2281_s3 + $0xe8] sm:$0xff]  ;;  %v639_v2 = vld [vmem:[%s2281_s3 + $0x60] sm:$0xff]  ;;  %v657_v5 = vld [vmem:[%s2281_s3 + $0xf0] sm:$0xff] }
  0x7b   :  { %1175 = vmatprep.subr.bf16.mxu0 %v1174_v10  ;;  %v1206_v1 = vpack.c.bf16 %v656_v0, %v655_v63  ;;  %v640_v3 = vld [vmem:[%s2281_s3 + $0x68] sm:$0xff]  ;;  %v658_v6 = vld [vmem:[%s2281_s3 + $0xf8] sm:$0xff]  ;;  %v641_v8 = vld [vmem:[%s2281_s3 + $0x70] sm:$0xff] }
  0x7c   :  { %v1208_v4 = vpack.c.bf16 %v640_v3, %v639_v2  ;;  %v1210_v7 = vpack.c.bf16 %v658_v6, %v657_v5  ;;  %v642_v9 = vld [vmem:[%s2281_s3 + $0x78] sm:$0xff]  ;;  %v737_v12 = vld [vmem:[%s2283_s5] sm:$0xff]  ;;  %v738_v13 = vld [vmem:[%s2283_s5 + $0x8] sm:$0xff] }
  0x7d   :  { %1049 = vmatpush1.bf16.msra.mxu1 %v1048_v17  ;;  %v1212_v10 = vpack.c.bf16 %v642_v9, %v641_v8  ;;  %v739_v14 = vld [vmem:[%s2283_s5 + $0x10] sm:$0xff]  ;;  %v1215_v16 = vpack.c.bf16 %v738_v13, %v737_v12  ;;  %v740_v17 = vld [vmem:[%s2283_s5 + $0x18] sm:$0xff]  ;;  %v742_v20 = vld [vmem:[%s2283_s5 + $0x28] sm:$0xff] }
  0x7e   :  { %1177 = vmatpush1.bf16.msra.mxu0 %v1176_v18  ;;  %1051 = vmatprep.subr.bf16.mxu1 %v1050_v19  ;;  %v1218_v18 = vpack.c.bf16 %v740_v17, %v739_v14  ;;  %v741_v19 = vld [vmem:[%s2283_s5 + $0x20] sm:$0xff]  ;;  %v744_v23 = vld [vmem:[%s2283_s5 + $0x38] sm:$0xff] }
  0x7f   :  { %1179 = vmatprep.subr.bf16.mxu0 %v1178_v22  ;;  %v1221_v21 = vpack.c.bf16 %v742_v20, %v741_v19  ;;  %v743_v22 = vld [vmem:[%s2283_s5 + $0x30] sm:$0xff]  ;;  %v285_v27 = vld [vmem:[%s2280_s2] sm:$0x3] }
  0x80   :  { %v1224_v24 = vpack.c.bf16 %v744_v23, %v743_v22  ;;  %v851_v50 = vld [vmem:[%s2284_s6] ss:$0 sm:$0xff] }
  0x81   :  { %1053 = vmatpush1.bf16.msra.mxu1 %v1052_v29  ;;  %v293_v29 = vsub.s32 1, %v1565_v61  ;;  %v746_v61 = vld [vmem:[%s2283_s5 + $0x48] sm:$0xff] }
  0x82   :  { %1181 = vmatpush1.bf16.msra.mxu0 %v1180_v31  ;;  %1214 = vmatprep.subr.bf16.mxu1 %v1269_v15  ;;  %v290_v31 = vrot.slane %v285_v27, %v289_v26 }
  0x83   :  { %1183 = vmatprep.subr.bf16.mxu0 %v1182_v32  ;;  %v294_v32 = vrot.slane %v285_v27, %v293_v29 }
  0x84   :  { %477 = vmatmul.mubr.f32.vlgmr.msra.gmra.mrb[0].mxu1 %v1759_v30  ;;  %v632_v30 = vld [vmem:[%s2281_s3 + $0x28] sm:$0xff] }
  0x85   :  { %619 = vmatmul.mubr.f32.vlgmr.msra.gmra.mrb[0].mxu0 %v1768_v33  ;;  %v650_v33 = vld [vmem:[%s2281_s3 + $0xb8] sm:$0xff]  ;;  %v1192_v47 = vpack.c.bf16 %v632_v30, %v631_v45  ;;  %1216 = vmatpush3.bf16.msra.mxu1 %v1215_v16  ;;  %v747_v45 = vld [vmem:[%s2283_s5 + $0x50] sm:$0xf]  ;;  %v1270_v30 = vmov 0.0  }
  0x86   :  { %1185 = vmatpush3.bf16.msra.mxu0 %v1184_v38  ;;  %v1194_v48 = vpack.c.bf16 %v650_v33, %v649_v46  ;;  %1217 = vmatprep.subr.bf16.mxu1 %v1269_v15  ;;  %v850_v33 = vld [vmem:[%s2282_s4] ss:$0 sm:$0xff] }
  0x87   :  { %1187 = vmatprep.subr.bf16.mxu0 %v1186_v39  ;;  %923 = vmatprep.mubr.msk.f32.mxu1 %vm1271_vm1, %v1270_v30 }
  0x89   :  { %1219 = vmatpush3.bf16.msra.mxu1 %v1218_v18 }
  0x8a   :  { %1189 = vmatpush3.bf16.msra.mxu0 %v1188_v43  ;;  %1220 = vmatprep.subr.bf16.mxu1 %v1269_v15  ;;  %v745_v43 = vld [vmem:[%s2283_s5 + $0x40] sm:$0xff]  ;;  %s1272_s5 = smov [#allocation2]  }
  0x8b   :  { %1191 = vmatprep.subr.bf16.mxu0 %v1190_v44  ;;  %v1227_v44 = vpack.c.bf16 %v746_v61, %v745_v43  ;;  %s842_s11 = sshll.u32 %s1272_s5, 4  ;;  %s843_s11 = int_to_ptr.vmem [resolvable:$true] %s842_s11 }
  0x8c   :  { %s1244_s4 = scalar_lea.vmem %s843_s11, 32  ;;  %p1249_p1 = scmp.lt.s32.totalorder %s843_s11, %s843_s11 }
  0x8d   :  { %1222 = vmatpush3.bf16.msra.mxu1 %v1221_v21  ;;  %p1245_p0 = scmp.ne.s32.totalorder %s843_s11, %s1244_s4  ;;  %p1250_p2 = scmp.lt.s32.totalorder %s1244_s4, %s1244_s4 }
  0x8e   :  { %1193 = vmatpush3.bf16.msra.mxu0 %v1192_v47  ;;  %1223 = vmatprep.subr.bf16.mxu1 %v1269_v15 }
  0x8f   :  { %1195 = vmatprep.subr.bf16.mxu0 %v1194_v48  ;;  %p1251_p3 = por %p1250_p2, %p1249_p1 }
  0x91   :  { %1225 = vmatpush3.bf16.msra.mxu1 %v1224_v24  ;;  %p1252_p4 = pnand %p1251_p3, %p1245_p0 }
  0x92   :  { %1197 = vmatpush3.bf16.msra.mxu0 %v1196_v52  ;;  %1226 = vmatprep.subr.bf16.mxu1 %v1269_v15 }
  0x93   :  { %1199 = vmatprep.subr.bf16.mxu0 %v1198_v28 }
  0x95   :  { %1228 = vmatpush3.bf16.msra.mxu1 %v1227_v44 }
  0x96   :  { %1201 = vmatpush3.bf16.msra.mxu0 %v1200_v57  ;;  %921 = vmatprep.subr.mxu1 %v1270_v30 }
  0x97   :  { %1203 = vmatprep.subr.bf16.mxu0 %v1202_v58 }
  0x99   :  { %922 = vmatpush3.msk.msra.mxu1 %vm759_vm0, %v747_v45 }
  0x9a   :  { %1205 = vmatpush3.bf16.msra.mxu0 %v1204_v62 }
  0x9b   :  { %1207 = vmatprep.subr.bf16.mxu0 %v1206_v1 }
  0x9e   :  { %1209 = vmatpush3.bf16.msra.mxu0 %v1208_v4 }
  0x9f   :  { %1211 = vmatprep.subr.bf16.mxu0 %v1210_v7 }
  0xa2   :  { %1213 = vmatpush3.bf16.msra.mxu0 %v1212_v10 }
 0x157   :  { %v478_v34 = vpop.f32.mrb[0].mxu1 }
 0x158   :  { %v1229_v35 = vadd.f32 %v478_v34, %v290_v31  ;;  %v620_v36 = vpop.f32.mrb[0].mxu0  ;;  %v480_v37 = vpop.f32.mrb[1].mxu1 }
 0x159   :  { %v1231_v38 = vadd.f32 %v480_v37, %v294_v32  ;;  %v622_v39 = vpop.f32.mrb[1].mxu0 }
 0x15a   :  { %v1230_v11 = vadd.f32 %v1229_v35, %v620_v36 }
 0x15b   :  { %v1232_v40 = vadd.f32 %v1231_v38, %v622_v39 }
 0x15c   :  { %v625_v42 = vmax.f32 %v1230_v11, 0.0 }
 0x15d   :  { %v626_v41 = vmax.f32 %v1232_v40, 0.0 }
 0x15f   :  { %730 = vmatprep.mubr.f32.mxu0 %v626_v41 }
 0x160   :  { %731 = vmatmul.mubr.f32.vlgmr.msra.gmra.mrb[2].mxu0 %v625_v42 }
 0x233   :  { %v886_v46 = vpop.f32.mrb[2].mxu0 }
 0x234   :  { %v887_v47 = vpop.f32.mrb[3].mxu0 }
 0x235   :  { %v888_v48 = vadd.f32 %v887_v47, %v886_v46 }
 0x237   :  { %v733_v49 = vadd.f32 %v888_v48, %v850_v33 }
 0x239   :  { %v736_v25 = vmax.f32 %v733_v49, 0.0 }
 0x23b   :  { %924 = vmatmul.mubr.msk.f32.vlgmr.msra.gmra.mrb[2].mxu1 %vm755_vm2, %v736_v25 }
 0x30e   :  { %v829_v51 = vpop.f32.mrb[2].mxu1 }
 0x30f   :  { %v830_v52 = vadd.f32 %v851_v50, %v829_v51  ;;  %v925_v28 = vpop.f32.mrb[3].mxu1 }
 0x311   :  { %v833_v53 = vmax.f32 %v830_v52, 0.0 }
 0x313   :  { %835 = vst.msk [vmem:[#allocation2] sm:$0x3] %vm834_vm3, %v833_v53 }
 0x314   :  { %1255 = shalt.err (!%p1252_p4)
}
 0x315   :  { %s1256_s6 = scalar_lea.hbm %s2285_s7, 32 }
 0x316   :  { %p1257_p5 = scmp.ne.s32.totalorder %s2285_s7, %s1256_s6  ;;  %p1260_p6 = scmp.lt.u32.totalorder %s1256_s6, %s2285_s7 }
 0x318   :  { %p1262_p7 = pnand %p1260_p6, %p1257_p5 }
 0x31a   :  { %1265 = shalt.err (!%p1262_p7)
}
 0x31b   :  { %845 = dma.vmem_to_hbm [thread:$0]  %s843_s11, 32, %s2285_s7, [#allocation3]  }
 0x31c   :  { %1266 = dma.done.wait [#allocation3], 32  }
 0x31d   :  { %1267 = vsyncadd [#allocation3], 4294967264 }
 0x31e   :  { %849 = vsyncpa [#allocation3], 1 }

</bundles_post_ra>
